<compile_context>
chip_gen: v5e
topology: v5e:2x2
jax: 0.10.0
libtpu: 0.0.40
codegen_flags: <defaults>
</compile_context>

<pallas_src>
import functools

import jax
import jax.numpy as jnp
from jax.experimental import pallas as pl
from jax.experimental.pallas import tpu as pltpu


# ---------------------------------------------------------------------------
# Fused kernel: hoisted layer-1 input projection + wavefronted 2-layer LSTM
# recurrence + vocab head epilogue.  One pallas_call, no grid: all operands are
# whole-array VMEM blocks (weights resident once, no double-buffering).
# ---------------------------------------------------------------------------
def _lstm_lm_kernel(x_ref, wih1_ref, whh1_ref, b1_ref, w2_ref, b2_ref,
                    wout_ref, bout_ref, out_ref, gx1_scr, h2_scr,
                    *, seq_len, batch_p):
    H = whh1_ref.shape[0]

    # ---- layer-1 input projection hoisted out of the recurrence (one big MXU
    # matmul over all T*Bp rows, off the serial critical path) ----
    gx1_scr[...] = (
        jnp.dot(x_ref[...], wih1_ref[...], preferred_element_type=jnp.float32)
        + b1_ref[...]
    )

    # Hoist weight / bias reads out of the unrolled time loop.
    whh1 = whh1_ref[...]                                   # (H, 4H) bf16
    w2 = w2_ref[...]                                       # (2H, 4H) bf16
    b2 = jnp.broadcast_to(b2_ref[...], (batch_p, 4 * H))   # hoisted broadcast

    def gates(g):
        # sigmoid(x) == 0.5*tanh(0.5*x) + 0.5  -> single EUP op per gate.
        i = 0.5 * jnp.tanh(0.5 * g[:, 0 * H:1 * H]) + 0.5
        f = 0.5 * jnp.tanh(0.5 * g[:, 1 * H:2 * H]) + 0.5
        gg = jnp.tanh(g[:, 2 * H:3 * H])
        o = 0.5 * jnp.tanh(0.5 * g[:, 3 * H:4 * H]) + 0.5
        return i, f, gg, o

    zero = jnp.zeros((batch_p, H), jnp.float32)
    h1, c1, h2, c2 = zero, zero, zero, zero

    # Wavefront with a 1-step skew: iteration t runs layer-1 step t and
    # layer-2 step t-1 (independent given h1_prev), fully unrolled (T small,
    # static; all slices are static & (8,128)-aligned).
    for t in range(seq_len + 1):
        h1_prev = h1

        if t < seq_len:
            g1 = gx1_scr[pl.ds(t * batch_p, batch_p), :] + jnp.dot(
                h1_prev.astype(jnp.bfloat16), whh1,
                preferred_element_type=jnp.float32)
            i, f, gg, o = gates(g1)
            c1 = f * c1 + i * gg
            h1 = o * jnp.tanh(c1)

        if t >= 1:
            # Fused input+recurrent matmul for layer 2: K = 2H = 256.
            lhs2 = jnp.concatenate(
                [h1_prev.astype(jnp.bfloat16), h2.astype(jnp.bfloat16)], axis=1)
            g2 = jnp.dot(lhs2, w2, preferred_element_type=jnp.float32) + b2
            i, f, gg, o = gates(g2)
            c2 = f * c2 + i * gg
            h2 = o * jnp.tanh(c2)
            h2_scr[pl.ds((t - 1) * batch_p, batch_p), :] = h2

    # ---- fused vocab head epilogue: (T*Bp, H) @ (H, V) + b ----
    out_ref[...] = (
        jnp.dot(h2_scr[...].astype(jnp.bfloat16), wout_ref[...],
                preferred_element_type=jnp.float32)
        + bout_ref[...]
    ).astype(out_ref.dtype)


def fused_lstm_lm(x_tm, w_ih1, w_hh1, b1, w2, b2, w_out, b_out,
                  *, seq_len, batch_p):
    """x_tm: (T*Bp, H) bf16 time-major embeddings. Returns (T*Bp, V) f32 logits."""
    TB, H = x_tm.shape
    V = w_out.shape[1]
    assert TB == seq_len * batch_p
    assert batch_p % 8 == 0 and H % 128 == 0 and V % 128 == 0
    kernel = functools.partial(_lstm_lm_kernel, seq_len=seq_len, batch_p=batch_p)
    return pl.pallas_call(
        kernel,
        out_shape=jax.ShapeDtypeStruct((TB, V), jnp.float32),
        scratch_shapes=[
            pltpu.VMEM((TB, 4 * H), jnp.float32),  # layer-1 gate pre-activations
            pltpu.VMEM((TB, H), jnp.float32),      # layer-2 hidden states (head LHS)
        ],
    )(x_tm, w_ih1, w_hh1, b1, w2, b2, w_out, b_out)


# ---------------------------------------------------------------------------
# Parameter construction (deterministic, PyTorch-style init, bf16 weights).
# ---------------------------------------------------------------------------
def init_params(key, vocab_size, hidden_size, num_layers):
    keys = jax.random.split(key, 2 + 4 * num_layers + 2)
    k_it = iter(keys)
    H = hidden_size
    bound = 1.0 / jnp.sqrt(H)

    params = {}
    # nn.Embedding default init: N(0, 1).  Stored bf16 (MXU input precision).
    params["embedding"] = jax.random.normal(
        next(k_it), (vocab_size, H), dtype=jnp.float32).astype(jnp.bfloat16)

    params["lstm"] = []
    for _ in range(num_layers):
        w_ih = jax.random.uniform(next(k_it), (H, 4 * H), jnp.float32,
                                  -bound, bound).astype(jnp.bfloat16)
        w_hh = jax.random.uniform(next(k_it), (H, 4 * H), jnp.float32,
                                  -bound, bound).astype(jnp.bfloat16)
        b_ih = jax.random.uniform(next(k_it), (1, 4 * H), jnp.float32, -bound, bound)
        b_hh = jax.random.uniform(next(k_it), (1, 4 * H), jnp.float32, -bound, bound)
        # PyTorch adds b_ih + b_hh inside the cell; pre-fuse them (kept f32).
        params["lstm"].append((w_ih, w_hh, b_ih + b_hh))

    params["linear_w"] = jax.random.uniform(
        next(k_it), (H, vocab_size), jnp.float32, -bound, bound).astype(jnp.bfloat16)
    params["linear_b"] = jax.random.uniform(
        next(k_it), (1, vocab_size), jnp.float32, -bound, bound)
    return params


# ---------------------------------------------------------------------------
# Forward pass equivalent to TestLSTM.forward (batch_first semantics outside).
# ---------------------------------------------------------------------------
@jax.jit
def test_lstm_forward(params, x_tokens):
    """x_tokens: (B, T) int32 token ids. Returns (B, T, vocab) f32 logits."""
    B, T = x_tokens.shape
    V = params["linear_w"].shape[1]
    assert len(params["lstm"]) == 2, "fused kernel is specialized for 2 layers"

    # Pad the batch up to a full sublane tile so every per-timestep slice in the
    # kernel is (8,128)-aligned; padded rows are independent and dropped below.
    Bp = ((B + 7) // 8) * 8

    # Embedding gather directly in TIME-MAJOR row order (t*Bp + b); only the tiny
    # int index array is transposed/padded, never the activations.
    tok_t = jnp.pad(jnp.transpose(x_tokens), ((0, 0), (0, Bp - B)))   # (T, Bp)
    x_tm = jnp.take(params["embedding"], tok_t.reshape(T * Bp), axis=0)  # bf16

    (w_ih1, w_hh1, b1), (w_ih2, w_hh2, b2) = params["lstm"]
    # Stack layer-2 input + recurrent weights for the fused K=2H matmul.
    w2 = jnp.concatenate([w_ih2, w_hh2], axis=0)                      # (2H, 4H)

    logits_tm = fused_lstm_lm(x_tm, w_ih1, w_hh1, b1, w2, b2,
                              params["linear_w"], params["linear_b"],
                              seq_len=T, batch_p=Bp)                  # (T*Bp, V)

    # Drop padded batch rows; final layout swap back to batch_first.
    logits = logits_tm.reshape(T, Bp, V)[:, :B, :]
    return jnp.transpose(logits, (1, 0, 2))


# ---------------------------------------------------------------------------
# Pure-JAX f32 reference for a numerical self-check.
# ---------------------------------------------------------------------------
def reference_forward(params, x_tokens):
    emb = jnp.take(params["embedding"].astype(jnp.float32), x_tokens, axis=0)

    def run_layer(x_bth, w_ih, w_hh, bias):
        B, T, H = x_bth.shape
        w_ih = w_ih.astype(jnp.float32)
        w_hh = w_hh.astype(jnp.float32)

        def step(carry, x_t):
            h, c = carry
            g = x_t @ w_ih + h @ w_hh + bias
            i = jax.nn.sigmoid(g[:, :H])
            f = jax.nn.sigmoid(g[:, H:2 * H])
            gg = jnp.tanh(g[:, 2 * H:3 * H])
            o = jax.nn.sigmoid(g[:, 3 * H:])
            c = f * c + i * gg
            h = o * jnp.tanh(c)
            return (h, c), h

        x_tbh = jnp.transpose(x_bth, (1, 0, 2))
        init = (jnp.zeros((B, H), jnp.float32), jnp.zeros((B, H), jnp.float32))
        _, hs = jax.lax.scan(step, init, x_tbh)
        return jnp.transpose(hs, (1, 0, 2))

    h = emb
    for (w_ih, w_hh, bias) in params["lstm"]:
        h = run_layer(h, w_ih, w_hh, bias)
    B, T, H = h.shape
    logits = (h.reshape(B * T, H) @ params["linear_w"].astype(jnp.float32)
              + params["linear_b"])
    return logits.reshape(B, T, -1)


if __name__ == "__main__":
    # Small, TPU-friendly shapes consistent with the module's forward.
    VOCAB = 512
    HIDDEN = 128
    NUM_LAYERS = 2
    BATCH = 2
    SEQ = 8

    key = jax.random.PRNGKey(0)
    k_params, k_tokens = jax.random.split(key)

    params = init_params(k_params, VOCAB, HIDDEN, NUM_LAYERS)
    x = jax.random.randint(k_tokens, (BATCH, SEQ), 0, VOCAB, dtype=jnp.int32)

    out = test_lstm_forward(params, x)
    out = jax.block_until_ready(out)

    assert out.shape == (BATCH, SEQ, VOCAB), out.shape
    assert out.dtype == jnp.float32

    ref = reference_forward(params, x)
    max_err = float(jnp.max(jnp.abs(out - ref)))
    # bf16 MXU inputs (weights + per-step LHS casts) vs. the f32 reference:
    # expected drift is a few 1e-3; 3e-2 still catches any structural bug.
    assert max_err < 3e-2, f"mismatch vs reference: max abs err = {max_err}"

    print("KERNEL_OK")
</pallas_src>

<mosaic_0001>
module attributes {stable_mosaic.version = 11 : i64} {
  func.func @_lstm_lm_kernel(%arg0: memref<64x128xbf16, #tpu.memory_space<vmem>>, %arg1: memref<128x512xbf16, #tpu.memory_space<vmem>>, %arg2: memref<128x512xbf16, #tpu.memory_space<vmem>>, %arg3: memref<1x512xf32, #tpu.memory_space<vmem>>, %arg4: memref<256x512xbf16, #tpu.memory_space<vmem>>, %arg5: memref<1x512xf32, #tpu.memory_space<vmem>>, %arg6: memref<128x512xbf16, #tpu.memory_space<vmem>>, %arg7: memref<1x512xf32, #tpu.memory_space<vmem>>, %arg8: memref<64x512xf32, #tpu.memory_space<vmem>>, %arg9: memref<64x512xf32, #tpu.memory_space<vmem>>, %arg10: memref<64x128xf32, #tpu.memory_space<vmem>>) attributes {dimension_semantics = [], scalar_prefetch = 0 : i64, scratch_operands = 2 : i64, tpu.core_type = #tpu.core_type<tc>} {
    %c0 = arith.constant 0 : index
    %c0_0 = arith.constant 0 : index
    %0 = vector.load %arg0[%c0, %c0_0] : memref<64x128xbf16, #tpu.memory_space<vmem>>, vector<64x128xbf16>
    %c0_1 = arith.constant 0 : index
    %c0_2 = arith.constant 0 : index
    %1 = vector.load %arg1[%c0_1, %c0_2] : memref<128x512xbf16, #tpu.memory_space<vmem>>, vector<128x512xbf16>
    %cst = arith.constant dense<0.000000e+00> : vector<64x512xf32>
    %2 = tpu.matmul %0, %1, %cst {dimension_numbers = #tpu.dot_dimension_numbers<[1], [0], [0], [1], [0, 0, 1, 1], [], []>} : vector<64x128xbf16>, vector<128x512xbf16>, vector<64x512xf32> -> vector<64x512xf32>
    %c0_3 = arith.constant 0 : index
    %c0_4 = arith.constant 0 : index
    %3 = vector.load %arg3[%c0_3, %c0_4] : memref<1x512xf32, #tpu.memory_space<vmem>>, vector<1x512xf32>
    %4 = vector.broadcast %3 : vector<1x512xf32> to vector<64x512xf32>
    %5 = arith.addf %2, %4 : vector<64x512xf32>
    %c0_5 = arith.constant 0 : index
    %c0_6 = arith.constant 0 : index
    %6 = vector.load %arg9[%c0_5, %c0_6] : memref<64x512xf32, #tpu.memory_space<vmem>>, vector<64x512xf32>
    tpu.vector_store %arg9[%c0_5, %c0_6], %5 {strides = array<i32>} : memref<64x512xf32, #tpu.memory_space<vmem>>, vector<64x512xf32>,
    %c0_7 = arith.constant 0 : index
    %c0_8 = arith.constant 0 : index
    %7 = vector.load %arg2[%c0_7, %c0_8] : memref<128x512xbf16, #tpu.memory_space<vmem>>, vector<128x512xbf16>
    %c0_9 = arith.constant 0 : index
    %c0_10 = arith.constant 0 : index
    %8 = vector.load %arg4[%c0_9, %c0_10] : memref<256x512xbf16, #tpu.memory_space<vmem>>, vector<256x512xbf16>
    %c0_11 = arith.constant 0 : index
    %c0_12 = arith.constant 0 : index
    %9 = vector.load %arg5[%c0_11, %c0_12] : memref<1x512xf32, #tpu.memory_space<vmem>>, vector<1x512xf32>
    %10 = vector.shape_cast %9 : vector<1x512xf32> to vector<1x512xf32>
    %11 = vector.broadcast %10 : vector<1x512xf32> to vector<8x512xf32>
    %cst_13 = arith.constant 0.000000e+00 : f32
    %12 = vector.broadcast %cst_13 : f32 to vector<8x128xf32>
    %c0_14 = arith.constant 0 : index
    %c0_15 = arith.constant 0 : index
    %13 = vector.load %arg9[%c0_14, %c0_15] : memref<64x512xf32, #tpu.memory_space<vmem>>, vector<8x512xf32>
    %14 = arith.truncf %12 : vector<8x128xf32> to vector<8x128xbf16>
    %cst_16 = arith.constant dense<0.000000e+00> : vector<8x512xf32>
    %15 = tpu.matmul %14, %7, %cst_16 {dimension_numbers = #tpu.dot_dimension_numbers<[1], [0], [0], [1], [0, 0, 1, 1], [], []>} : vector<8x128xbf16>, vector<128x512xbf16>, vector<8x512xf32> -> vector<8x512xf32>
    %16 = arith.addf %13, %15 : vector<8x512xf32>
    %17 = vector.extract_strided_slice %16 {offsets = [0, 0], sizes = [8, 128], strides = [1, 1]} : vector<8x512xf32> to vector<8x128xf32>
    %cst_17 = arith.constant 5.000000e-01 : f32
    %18 = vector.broadcast %cst_17 : f32 to vector<8x128xf32>
    %19 = arith.mulf %18, %17 : vector<8x128xf32>
    %20 = math.tanh %19 : vector<8x128xf32>
    %cst_18 = arith.constant 5.000000e-01 : f32
    %21 = vector.broadcast %cst_18 : f32 to vector<8x128xf32>
    %22 = arith.mulf %21, %20 : vector<8x128xf32>
    %cst_19 = arith.constant 5.000000e-01 : f32
    %23 = vector.broadcast %cst_19 : f32 to vector<8x128xf32>
    %24 = arith.addf %22, %23 : vector<8x128xf32>
    %25 = vector.extract_strided_slice %16 {offsets = [0, 128], sizes = [8, 128], strides = [1, 1]} : vector<8x512xf32> to vector<8x128xf32>
    %cst_20 = arith.constant 5.000000e-01 : f32
    %26 = vector.broadcast %cst_20 : f32 to vector<8x128xf32>
    %27 = arith.mulf %26, %25 : vector<8x128xf32>
    %28 = math.tanh %27 : vector<8x128xf32>
    %cst_21 = arith.constant 5.000000e-01 : f32
    %29 = vector.broadcast %cst_21 : f32 to vector<8x128xf32>
    %30 = arith.mulf %29, %28 : vector<8x128xf32>
    %cst_22 = arith.constant 5.000000e-01 : f32
    %31 = vector.broadcast %cst_22 : f32 to vector<8x128xf32>
    %32 = arith.addf %30, %31 : vector<8x128xf32>
    %33 = vector.extract_strided_slice %16 {offsets = [0, 256], sizes = [8, 128], strides = [1, 1]} : vector<8x512xf32> to vector<8x128xf32>
    %34 = math.tanh %33 : vector<8x128xf32>
    %35 = vector.extract_strided_slice %16 {offsets = [0, 384], sizes = [8, 128], strides = [1, 1]} : vector<8x512xf32> to vector<8x128xf32>
    %cst_23 = arith.constant 5.000000e-01 : f32
    %36 = vector.broadcast %cst_23 : f32 to vector<8x128xf32>
    %37 = arith.mulf %36, %35 : vector<8x128xf32>
    %38 = math.tanh %37 : vector<8x128xf32>
    %cst_24 = arith.constant 5.000000e-01 : f32
    %39 = vector.broadcast %cst_24 : f32 to vector<8x128xf32>
    %40 = arith.mulf %39, %38 : vector<8x128xf32>
    %cst_25 = arith.constant 5.000000e-01 : f32
    %41 = vector.broadcast %cst_25 : f32 to vector<8x128xf32>
    %42 = arith.addf %40, %41 : vector<8x128xf32>
    %43 = arith.mulf %32, %12 : vector<8x128xf32>
    %44 = arith.mulf %24, %34 : vector<8x128xf32>
    %45 = arith.addf %43, %44 : vector<8x128xf32>
    %46 = math.tanh %45 : vector<8x128xf32>
    %47 = arith.mulf %42, %46 : vector<8x128xf32>
    %c8 = arith.constant 8 : index
    %c0_26 = arith.constant 0 : index
    %48 = vector.load %arg9[%c8, %c0_26] : memref<64x512xf32, #tpu.memory_space<vmem>>, vector<8x512xf32>
    %49 = arith.truncf %47 : vector<8x128xf32> to vector<8x128xbf16>
    %cst_27 = arith.constant dense<0.000000e+00> : vector<8x512xf32>
    %50 = tpu.matmul %49, %7, %cst_27 {dimension_numbers = #tpu.dot_dimension_numbers<[1], [0], [0], [1], [0, 0, 1, 1], [], []>} : vector<8x128xbf16>, vector<128x512xbf16>, vector<8x512xf32> -> vector<8x512xf32>
    %51 = arith.addf %48, %50 : vector<8x512xf32>
    %52 = vector.extract_strided_slice %51 {offsets = [0, 0], sizes = [8, 128], strides = [1, 1]} : vector<8x512xf32> to vector<8x128xf32>
    %cst_28 = arith.constant 5.000000e-01 : f32
    %53 = vector.broadcast %cst_28 : f32 to vector<8x128xf32>
    %54 = arith.mulf %53, %52 : vector<8x128xf32>
    %55 = math.tanh %54 : vector<8x128xf32>
    %cst_29 = arith.constant 5.000000e-01 : f32
    %56 = vector.broadcast %cst_29 : f32 to vector<8x128xf32>
    %57 = arith.mulf %56, %55 : vector<8x128xf32>
    %cst_30 = arith.constant 5.000000e-01 : f32
    %58 = vector.broadcast %cst_30 : f32 to vector<8x128xf32>
    %59 = arith.addf %57, %58 : vector<8x128xf32>
    %60 = vector.extract_strided_slice %51 {offsets = [0, 128], sizes = [8, 128], strides = [1, 1]} : vector<8x512xf32> to vector<8x128xf32>
    %cst_31 = arith.constant 5.000000e-01 : f32
    %61 = vector.broadcast %cst_31 : f32 to vector<8x128xf32>
    %62 = arith.mulf %61, %60 : vector<8x128xf32>
    %63 = math.tanh %62 : vector<8x128xf32>
    %cst_32 = arith.constant 5.000000e-01 : f32
    %64 = vector.broadcast %cst_32 : f32 to vector<8x128xf32>
    %65 = arith.mulf %64, %63 : vector<8x128xf32>
    %cst_33 = arith.constant 5.000000e-01 : f32
    %66 = vector.broadcast %cst_33 : f32 to vector<8x128xf32>
    %67 = arith.addf %65, %66 : vector<8x128xf32>
    %68 = vector.extract_strided_slice %51 {offsets = [0, 256], sizes = [8, 128], strides = [1, 1]} : vector<8x512xf32> to vector<8x128xf32>
    %69 = math.tanh %68 : vector<8x128xf32>
    %70 = vector.extract_strided_slice %51 {offsets = [0, 384], sizes = [8, 128], strides = [1, 1]} : vector<8x512xf32> to vector<8x128xf32>
    %cst_34 = arith.constant 5.000000e-01 : f32
    %71 = vector.broadcast %cst_34 : f32 to vector<8x128xf32>
    %72 = arith.mulf %71, %70 : vector<8x128xf32>
    %73 = math.tanh %72 : vector<8x128xf32>
    %cst_35 = arith.constant 5.000000e-01 : f32
    %74 = vector.broadcast %cst_35 : f32 to vector<8x128xf32>
    %75 = arith.mulf %74, %73 : vector<8x128xf32>
    %cst_36 = arith.constant 5.000000e-01 : f32
    %76 = vector.broadcast %cst_36 : f32 to vector<8x128xf32>
    %77 = arith.addf %75, %76 : vector<8x128xf32>
    %78 = arith.mulf %67, %45 : vector<8x128xf32>
    %79 = arith.mulf %59, %69 : vector<8x128xf32>
    %80 = arith.addf %78, %79 : vector<8x128xf32>
    %81 = math.tanh %80 : vector<8x128xf32>
    %82 = arith.mulf %77, %81 : vector<8x128xf32>
    %83 = arith.truncf %47 : vector<8x128xf32> to vector<8x128xbf16>
    %84 = arith.truncf %12 : vector<8x128xf32> to vector<8x128xbf16>
    %85 = tpu.concatenate %83, %84 in 1 : vector<8x128xbf16>, vector<8x128xbf16> -> vector<8x256xbf16>
    %cst_37 = arith.constant dense<0.000000e+00> : vector<8x512xf32>
    %86 = tpu.matmul %85, %8, %cst_37 {dimension_numbers = #tpu.dot_dimension_numbers<[1], [0], [0], [1], [0, 0, 1, 1], [], []>} : vector<8x256xbf16>, vector<256x512xbf16>, vector<8x512xf32> -> vector<8x512xf32>
    %87 = arith.addf %86, %11 : vector<8x512xf32>
    %88 = vector.extract_strided_slice %87 {offsets = [0, 0], sizes = [8, 128], strides = [1, 1]} : vector<8x512xf32> to vector<8x128xf32>
    %cst_38 = arith.constant 5.000000e-01 : f32
    %89 = vector.broadcast %cst_38 : f32 to vector<8x128xf32>
    %90 = arith.mulf %89, %88 : vector<8x128xf32>
    %91 = math.tanh %90 : vector<8x128xf32>
    %cst_39 = arith.constant 5.000000e-01 : f32
    %92 = vector.broadcast %cst_39 : f32 to vector<8x128xf32>
    %93 = arith.mulf %92, %91 : vector<8x128xf32>
    %cst_40 = arith.constant 5.000000e-01 : f32
    %94 = vector.broadcast %cst_40 : f32 to vector<8x128xf32>
    %95 = arith.addf %93, %94 : vector<8x128xf32>
    %96 = vector.extract_strided_slice %87 {offsets = [0, 128], sizes = [8, 128], strides = [1, 1]} : vector<8x512xf32> to vector<8x128xf32>
    %cst_41 = arith.constant 5.000000e-01 : f32
    %97 = vector.broadcast %cst_41 : f32 to vector<8x128xf32>
    %98 = arith.mulf %97, %96 : vector<8x128xf32>
    %99 = math.tanh %98 : vector<8x128xf32>
    %cst_42 = arith.constant 5.000000e-01 : f32
    %100 = vector.broadcast %cst_42 : f32 to vector<8x128xf32>
    %101 = arith.mulf %100, %99 : vector<8x128xf32>
    %cst_43 = arith.constant 5.000000e-01 : f32
    %102 = vector.broadcast %cst_43 : f32 to vector<8x128xf32>
    %103 = arith.addf %101, %102 : vector<8x128xf32>
    %104 = vector.extract_strided_slice %87 {offsets = [0, 256], sizes = [8, 128], strides = [1, 1]} : vector<8x512xf32> to vector<8x128xf32>
    %105 = math.tanh %104 : vector<8x128xf32>
    %106 = vector.extract_strided_slice %87 {offsets = [0, 384], sizes = [8, 128], strides = [1, 1]} : vector<8x512xf32> to vector<8x128xf32>
    %cst_44 = arith.constant 5.000000e-01 : f32
    %107 = vector.broadcast %cst_44 : f32 to vector<8x128xf32>
    %108 = arith.mulf %107, %106 : vector<8x128xf32>
    %109 = math.tanh %108 : vector<8x128xf32>
    %cst_45 = arith.constant 5.000000e-01 : f32
    %110 = vector.broadcast %cst_45 : f32 to vector<8x128xf32>
    %111 = arith.mulf %110, %109 : vector<8x128xf32>
    %cst_46 = arith.constant 5.000000e-01 : f32
    %112 = vector.broadcast %cst_46 : f32 to vector<8x128xf32>
    %113 = arith.addf %111, %112 : vector<8x128xf32>
    %114 = arith.mulf %103, %12 : vector<8x128xf32>
    %115 = arith.mulf %95, %105 : vector<8x128xf32>
    %116 = arith.addf %114, %115 : vector<8x128xf32>
    %117 = math.tanh %116 : vector<8x128xf32>
    %118 = arith.mulf %113, %117 : vector<8x128xf32>
    %c0_47 = arith.constant 0 : index
    %c0_48 = arith.constant 0 : index
    %119 = vector.load %arg10[%c0_47, %c0_48] : memref<64x128xf32, #tpu.memory_space<vmem>>, vector<8x128xf32>
    tpu.vector_store %arg10[%c0_47, %c0_48], %118 {strides = array<i32>} : memref<64x128xf32, #tpu.memory_space<vmem>>, vector<8x128xf32>,
    %c16 = arith.constant 16 : index
    %c0_49 = arith.constant 0 : index
    %120 = vector.load %arg9[%c16, %c0_49] : memref<64x512xf32, #tpu.memory_space<vmem>>, vector<8x512xf32>
    %121 = arith.truncf %82 : vector<8x128xf32> to vector<8x128xbf16>
    %cst_50 = arith.constant dense<0.000000e+00> : vector<8x512xf32>
    %122 = tpu.matmul %121, %7, %cst_50 {dimension_numbers = #tpu.dot_dimension_numbers<[1], [0], [0], [1], [0, 0, 1, 1], [], []>} : vector<8x128xbf16>, vector<128x512xbf16>, vector<8x512xf32> -> vector<8x512xf32>
    %123 = arith.addf %120, %122 : vector<8x512xf32>
    %124 = vector.extract_strided_slice %123 {offsets = [0, 0], sizes = [8, 128], strides = [1, 1]} : vector<8x512xf32> to vector<8x128xf32>
    %cst_51 = arith.constant 5.000000e-01 : f32
    %125 = vector.broadcast %cst_51 : f32 to vector<8x128xf32>
    %126 = arith.mulf %125, %124 : vector<8x128xf32>
    %127 = math.tanh %126 : vector<8x128xf32>
    %cst_52 = arith.constant 5.000000e-01 : f32
    %128 = vector.broadcast %cst_52 : f32 to vector<8x128xf32>
    %129 = arith.mulf %128, %127 : vector<8x128xf32>
    %cst_53 = arith.constant 5.000000e-01 : f32
    %130 = vector.broadcast %cst_53 : f32 to vector<8x128xf32>
    %131 = arith.addf %129, %130 : vector<8x128xf32>
    %132 = vector.extract_strided_slice %123 {offsets = [0, 128], sizes = [8, 128], strides = [1, 1]} : vector<8x512xf32> to vector<8x128xf32>
    %cst_54 = arith.constant 5.000000e-01 : f32
    %133 = vector.broadcast %cst_54 : f32 to vector<8x128xf32>
    %134 = arith.mulf %133, %132 : vector<8x128xf32>
    %135 = math.tanh %134 : vector<8x128xf32>
    %cst_55 = arith.constant 5.000000e-01 : f32
    %136 = vector.broadcast %cst_55 : f32 to vector<8x128xf32>
    %137 = arith.mulf %136, %135 : vector<8x128xf32>
    %cst_56 = arith.constant 5.000000e-01 : f32
    %138 = vector.broadcast %cst_56 : f32 to vector<8x128xf32>
    %139 = arith.addf %137, %138 : vector<8x128xf32>
    %140 = vector.extract_strided_slice %123 {offsets = [0, 256], sizes = [8, 128], strides = [1, 1]} : vector<8x512xf32> to vector<8x128xf32>
    %141 = math.tanh %140 : vector<8x128xf32>
    %142 = vector.extract_strided_slice %123 {offsets = [0, 384], sizes = [8, 128], strides = [1, 1]} : vector<8x512xf32> to vector<8x128xf32>
    %cst_57 = arith.constant 5.000000e-01 : f32
    %143 = vector.broadcast %cst_57 : f32 to vector<8x128xf32>
    %144 = arith.mulf %143, %142 : vector<8x128xf32>
    %145 = math.tanh %144 : vector<8x128xf32>
    %cst_58 = arith.constant 5.000000e-01 : f32
    %146 = vector.broadcast %cst_58 : f32 to vector<8x128xf32>
    %147 = arith.mulf %146, %145 : vector<8x128xf32>
    %cst_59 = arith.constant 5.000000e-01 : f32
    %148 = vector.broadcast %cst_59 : f32 to vector<8x128xf32>
    %149 = arith.addf %147, %148 : vector<8x128xf32>
    %150 = arith.mulf %139, %80 : vector<8x128xf32>
    %151 = arith.mulf %131, %141 : vector<8x128xf32>
    %152 = arith.addf %150, %151 : vector<8x128xf32>
    %153 = math.tanh %152 : vector<8x128xf32>
    %154 = arith.mulf %149, %153 : vector<8x128xf32>
    %155 = arith.truncf %82 : vector<8x128xf32> to vector<8x128xbf16>
    %156 = arith.truncf %118 : vector<8x128xf32> to vector<8x128xbf16>
    %157 = tpu.concatenate %155, %156 in 1 : vector<8x128xbf16>, vector<8x128xbf16> -> vector<8x256xbf16>
    %cst_60 = arith.constant dense<0.000000e+00> : vector<8x512xf32>
    %158 = tpu.matmul %157, %8, %cst_60 {dimension_numbers = #tpu.dot_dimension_numbers<[1], [0], [0], [1], [0, 0, 1, 1], [], []>} : vector<8x256xbf16>, vector<256x512xbf16>, vector<8x512xf32> -> vector<8x512xf32>
    %159 = arith.addf %158, %11 : vector<8x512xf32>
    %160 = vector.extract_strided_slice %159 {offsets = [0, 0], sizes = [8, 128], strides = [1, 1]} : vector<8x512xf32> to vector<8x128xf32>
    %cst_61 = arith.constant 5.000000e-01 : f32
    %161 = vector.broadcast %cst_61 : f32 to vector<8x128xf32>
    %162 = arith.mulf %161, %160 : vector<8x128xf32>
    %163 = math.tanh %162 : vector<8x128xf32>
    %cst_62 = arith.constant 5.000000e-01 : f32
    %164 = vector.broadcast %cst_62 : f32 to vector<8x128xf32>
    %165 = arith.mulf %164, %163 : vector<8x128xf32>
    %cst_63 = arith.constant 5.000000e-01 : f32
    %166 = vector.broadcast %cst_63 : f32 to vector<8x128xf32>
    %167 = arith.addf %165, %166 : vector<8x128xf32>
    %168 = vector.extract_strided_slice %159 {offsets = [0, 128], sizes = [8, 128], strides = [1, 1]} : vector<8x512xf32> to vector<8x128xf32>
    %cst_64 = arith.constant 5.000000e-01 : f32
    %169 = vector.broadcast %cst_64 : f32 to vector<8x128xf32>
    %170 = arith.mulf %169, %168 : vector<8x128xf32>
    %171 = math.tanh %170 : vector<8x128xf32>
    %cst_65 = arith.constant 5.000000e-01 : f32
    %172 = vector.broadcast %cst_65 : f32 to vector<8x128xf32>
    %173 = arith.mulf %172, %171 : vector<8x128xf32>
    %cst_66 = arith.constant 5.000000e-01 : f32
    %174 = vector.broadcast %cst_66 : f32 to vector<8x128xf32>
    %175 = arith.addf %173, %174 : vector<8x128xf32>
    %176 = vector.extract_strided_slice %159 {offsets = [0, 256], sizes = [8, 128], strides = [1, 1]} : vector<8x512xf32> to vector<8x128xf32>
    %177 = math.tanh %176 : vector<8x128xf32>
    %178 = vector.extract_strided_slice %159 {offsets = [0, 384], sizes = [8, 128], strides = [1, 1]} : vector<8x512xf32> to vector<8x128xf32>
    %cst_67 = arith.constant 5.000000e-01 : f32
    %179 = vector.broadcast %cst_67 : f32 to vector<8x128xf32>
    %180 = arith.mulf %179, %178 : vector<8x128xf32>
    %181 = math.tanh %180 : vector<8x128xf32>
    %cst_68 = arith.constant 5.000000e-01 : f32
    %182 = vector.broadcast %cst_68 : f32 to vector<8x128xf32>
    %183 = arith.mulf %182, %181 : vector<8x128xf32>
    %cst_69 = arith.constant 5.000000e-01 : f32
    %184 = vector.broadcast %cst_69 : f32 to vector<8x128xf32>
    %185 = arith.addf %183, %184 : vector<8x128xf32>
    %186 = arith.mulf %175, %116 : vector<8x128xf32>
    %187 = arith.mulf %167, %177 : vector<8x128xf32>
    %188 = arith.addf %186, %187 : vector<8x128xf32>
    %189 = math.tanh %188 : vector<8x128xf32>
    %190 = arith.mulf %185, %189 : vector<8x128xf32>
    %c8_70 = arith.constant 8 : index
    %c0_71 = arith.constant 0 : index
    %191 = vector.load %arg10[%c8_70, %c0_71] : memref<64x128xf32, #tpu.memory_space<vmem>>, vector<8x128xf32>
    tpu.vector_store %arg10[%c8_70, %c0_71], %190 {strides = array<i32>} : memref<64x128xf32, #tpu.memory_space<vmem>>, vector<8x128xf32>,
    %c24 = arith.constant 24 : index
    %c0_72 = arith.constant 0 : index
    %192 = vector.load %arg9[%c24, %c0_72] : memref<64x512xf32, #tpu.memory_space<vmem>>, vector<8x512xf32>
    %193 = arith.truncf %154 : vector<8x128xf32> to vector<8x128xbf16>
    %cst_73 = arith.constant dense<0.000000e+00> : vector<8x512xf32>
    %194 = tpu.matmul %193, %7, %cst_73 {dimension_numbers = #tpu.dot_dimension_numbers<[1], [0], [0], [1], [0, 0, 1, 1], [], []>} : vector<8x128xbf16>, vector<128x512xbf16>, vector<8x512xf32> -> vector<8x512xf32>
    %195 = arith.addf %192, %194 : vector<8x512xf32>
    %196 = vector.extract_strided_slice %195 {offsets = [0, 0], sizes = [8, 128], strides = [1, 1]} : vector<8x512xf32> to vector<8x128xf32>
    %cst_74 = arith.constant 5.000000e-01 : f32
    %197 = vector.broadcast %cst_74 : f32 to vector<8x128xf32>
    %198 = arith.mulf %197, %196 : vector<8x128xf32>
    %199 = math.tanh %198 : vector<8x128xf32>
    %cst_75 = arith.constant 5.000000e-01 : f32
    %200 = vector.broadcast %cst_75 : f32 to vector<8x128xf32>
    %201 = arith.mulf %200, %199 : vector<8x128xf32>
    %cst_76 = arith.constant 5.000000e-01 : f32
    %202 = vector.broadcast %cst_76 : f32 to vector<8x128xf32>
    %203 = arith.addf %201, %202 : vector<8x128xf32>
    %204 = vector.extract_strided_slice %195 {offsets = [0, 128], sizes = [8, 128], strides = [1, 1]} : vector<8x512xf32> to vector<8x128xf32>
    %cst_77 = arith.constant 5.000000e-01 : f32
    %205 = vector.broadcast %cst_77 : f32 to vector<8x128xf32>
    %206 = arith.mulf %205, %204 : vector<8x128xf32>
    %207 = math.tanh %206 : vector<8x128xf32>
    %cst_78 = arith.constant 5.000000e-01 : f32
    %208 = vector.broadcast %cst_78 : f32 to vector<8x128xf32>
    %209 = arith.mulf %208, %207 : vector<8x128xf32>
    %cst_79 = arith.constant 5.000000e-01 : f32
    %210 = vector.broadcast %cst_79 : f32 to vector<8x128xf32>
    %211 = arith.addf %209, %210 : vector<8x128xf32>
    %212 = vector.extract_strided_slice %195 {offsets = [0, 256], sizes = [8, 128], strides = [1, 1]} : vector<8x512xf32> to vector<8x128xf32>
    %213 = math.tanh %212 : vector<8x128xf32>
    %214 = vector.extract_strided_slice %195 {offsets = [0, 384], sizes = [8, 128], strides = [1, 1]} : vector<8x512xf32> to vector<8x128xf32>
    %cst_80 = arith.constant 5.000000e-01 : f32
    %215 = vector.broadcast %cst_80 : f32 to vector<8x128xf32>
    %216 = arith.mulf %215, %214 : vector<8x128xf32>
    %217 = math.tanh %216 : vector<8x128xf32>
    %cst_81 = arith.constant 5.000000e-01 : f32
    %218 = vector.broadcast %cst_81 : f32 to vector<8x128xf32>
    %219 = arith.mulf %218, %217 : vector<8x128xf32>
    %cst_82 = arith.constant 5.000000e-01 : f32
    %220 = vector.broadcast %cst_82 : f32 to vector<8x128xf32>
    %221 = arith.addf %219, %220 : vector<8x128xf32>
    %222 = arith.mulf %211, %152 : vector<8x128xf32>
    %223 = arith.mulf %203, %213 : vector<8x128xf32>
    %224 = arith.addf %222, %223 : vector<8x128xf32>
    %225 = math.tanh %224 : vector<8x128xf32>
    %226 = arith.mulf %221, %225 : vector<8x128xf32>
    %227 = arith.truncf %154 : vector<8x128xf32> to vector<8x128xbf16>
    %228 = arith.truncf %190 : vector<8x128xf32> to vector<8x128xbf16>
    %229 = tpu.concatenate %227, %228 in 1 : vector<8x128xbf16>, vector<8x128xbf16> -> vector<8x256xbf16>
    %cst_83 = arith.constant dense<0.000000e+00> : vector<8x512xf32>
    %230 = tpu.matmul %229, %8, %cst_83 {dimension_numbers = #tpu.dot_dimension_numbers<[1], [0], [0], [1], [0, 0, 1, 1], [], []>} : vector<8x256xbf16>, vector<256x512xbf16>, vector<8x512xf32> -> vector<8x512xf32>
    %231 = arith.addf %230, %11 : vector<8x512xf32>
    %232 = vector.extract_strided_slice %231 {offsets = [0, 0], sizes = [8, 128], strides = [1, 1]} : vector<8x512xf32> to vector<8x128xf32>
    %cst_84 = arith.constant 5.000000e-01 : f32
    %233 = vector.broadcast %cst_84 : f32 to vector<8x128xf32>
    %234 = arith.mulf %233, %232 : vector<8x128xf32>
    %235 = math.tanh %234 : vector<8x128xf32>
    %cst_85 = arith.constant 5.000000e-01 : f32
    %236 = vector.broadcast %cst_85 : f32 to vector<8x128xf32>
    %237 = arith.mulf %236, %235 : vector<8x128xf32>
    %cst_86 = arith.constant 5.000000e-01 : f32
    %238 = vector.broadcast %cst_86 : f32 to vector<8x128xf32>
    %239 = arith.addf %237, %238 : vector<8x128xf32>
    %240 = vector.extract_strided_slice %231 {offsets = [0, 128], sizes = [8, 128], strides = [1, 1]} : vector<8x512xf32> to vector<8x128xf32>
    %cst_87 = arith.constant 5.000000e-01 : f32
    %241 = vector.broadcast %cst_87 : f32 to vector<8x128xf32>
    %242 = arith.mulf %241, %240 : vector<8x128xf32>
    %243 = math.tanh %242 : vector<8x128xf32>
    %cst_88 = arith.constant 5.000000e-01 : f32
    %244 = vector.broadcast %cst_88 : f32 to vector<8x128xf32>
    %245 = arith.mulf %244, %243 : vector<8x128xf32>
    %cst_89 = arith.constant 5.000000e-01 : f32
    %246 = vector.broadcast %cst_89 : f32 to vector<8x128xf32>
    %247 = arith.addf %245, %246 : vector<8x128xf32>
    %248 = vector.extract_strided_slice %231 {offsets = [0, 256], sizes = [8, 128], strides = [1, 1]} : vector<8x512xf32> to vector<8x128xf32>
    %249 = math.tanh %248 : vector<8x128xf32>
    %250 = vector.extract_strided_slice %231 {offsets = [0, 384], sizes = [8, 128], strides = [1, 1]} : vector<8x512xf32> to vector<8x128xf32>
    %cst_90 = arith.constant 5.000000e-01 : f32
    %251 = vector.broadcast %cst_90 : f32 to vector<8x128xf32>
    %252 = arith.mulf %251, %250 : vector<8x128xf32>
    %253 = math.tanh %252 : vector<8x128xf32>
    %cst_91 = arith.constant 5.000000e-01 : f32
    %254 = vector.broadcast %cst_91 : f32 to vector<8x128xf32>
    %255 = arith.mulf %254, %253 : vector<8x128xf32>
    %cst_92 = arith.constant 5.000000e-01 : f32
    %256 = vector.broadcast %cst_92 : f32 to vector<8x128xf32>
    %257 = arith.addf %255, %256 : vector<8x128xf32>
    %258 = arith.mulf %247, %188 : vector<8x128xf32>
    %259 = arith.mulf %239, %249 : vector<8x128xf32>
    %260 = arith.addf %258, %259 : vector<8x128xf32>
    %261 = math.tanh %260 : vector<8x128xf32>
    %262 = arith.mulf %257, %261 : vector<8x128xf32>
    %c16_93 = arith.constant 16 : index
    %c0_94 = arith.constant 0 : index
    %263 = vector.load %arg10[%c16_93, %c0_94] : memref<64x128xf32, #tpu.memory_space<vmem>>, vector<8x128xf32>
    tpu.vector_store %arg10[%c16_93, %c0_94], %262 {strides = array<i32>} : memref<64x128xf32, #tpu.memory_space<vmem>>, vector<8x128xf32>,
    %c32 = arith.constant 32 : index
    %c0_95 = arith.constant 0 : index
    %264 = vector.load %arg9[%c32, %c0_95] : memref<64x512xf32, #tpu.memory_space<vmem>>, vector<8x512xf32>
    %265 = arith.truncf %226 : vector<8x128xf32> to vector<8x128xbf16>
    %cst_96 = arith.constant dense<0.000000e+00> : vector<8x512xf32>
    %266 = tpu.matmul %265, %7, %cst_96 {dimension_numbers = #tpu.dot_dimension_numbers<[1], [0], [0], [1], [0, 0, 1, 1], [], []>} : vector<8x128xbf16>, vector<128x512xbf16>, vector<8x512xf32> -> vector<8x512xf32>
    %267 = arith.addf %264, %266 : vector<8x512xf32>
    %268 = vector.extract_strided_slice %267 {offsets = [0, 0], sizes = [8, 128], strides = [1, 1]} : vector<8x512xf32> to vector<8x128xf32>
    %cst_97 = arith.constant 5.000000e-01 : f32
    %269 = vector.broadcast %cst_97 : f32 to vector<8x128xf32>
    %270 = arith.mulf %269, %268 : vector<8x128xf32>
    %271 = math.tanh %270 : vector<8x128xf32>
    %cst_98 = arith.constant 5.000000e-01 : f32
    %272 = vector.broadcast %cst_98 : f32 to vector<8x128xf32>
    %273 = arith.mulf %272, %271 : vector<8x128xf32>
    %cst_99 = arith.constant 5.000000e-01 : f32
    %274 = vector.broadcast %cst_99 : f32 to vector<8x128xf32>
    %275 = arith.addf %273, %274 : vector<8x128xf32>
    %276 = vector.extract_strided_slice %267 {offsets = [0, 128], sizes = [8, 128], strides = [1, 1]} : vector<8x512xf32> to vector<8x128xf32>
    %cst_100 = arith.constant 5.000000e-01 : f32
    %277 = vector.broadcast %cst_100 : f32 to vector<8x128xf32>
    %278 = arith.mulf %277, %276 : vector<8x128xf32>
    %279 = math.tanh %278 : vector<8x128xf32>
    %cst_101 = arith.constant 5.000000e-01 : f32
    %280 = vector.broadcast %cst_101 : f32 to vector<8x128xf32>
    %281 = arith.mulf %280, %279 : vector<8x128xf32>
    %cst_102 = arith.constant 5.000000e-01 : f32
    %282 = vector.broadcast %cst_102 : f32 to vector<8x128xf32>
    %283 = arith.addf %281, %282 : vector<8x128xf32>
    %284 = vector.extract_strided_slice %267 {offsets = [0, 256], sizes = [8, 128], strides = [1, 1]} : vector<8x512xf32> to vector<8x128xf32>
    %285 = math.tanh %284 : vector<8x128xf32>
    %286 = vector.extract_strided_slice %267 {offsets = [0, 384], sizes = [8, 128], strides = [1, 1]} : vector<8x512xf32> to vector<8x128xf32>
    %cst_103 = arith.constant 5.000000e-01 : f32
    %287 = vector.broadcast %cst_103 : f32 to vector<8x128xf32>
    %288 = arith.mulf %287, %286 : vector<8x128xf32>
    %289 = math.tanh %288 : vector<8x128xf32>
    %cst_104 = arith.constant 5.000000e-01 : f32
    %290 = vector.broadcast %cst_104 : f32 to vector<8x128xf32>
    %291 = arith.mulf %290, %289 : vector<8x128xf32>
    %cst_105 = arith.constant 5.000000e-01 : f32
    %292 = vector.broadcast %cst_105 : f32 to vector<8x128xf32>
    %293 = arith.addf %291, %292 : vector<8x128xf32>
    %294 = arith.mulf %283, %224 : vector<8x128xf32>
    %295 = arith.mulf %275, %285 : vector<8x128xf32>
    %296 = arith.addf %294, %295 : vector<8x128xf32>
    %297 = math.tanh %296 : vector<8x128xf32>
    %298 = arith.mulf %293, %297 : vector<8x128xf32>
    %299 = arith.truncf %226 : vector<8x128xf32> to vector<8x128xbf16>
    %300 = arith.truncf %262 : vector<8x128xf32> to vector<8x128xbf16>
    %301 = tpu.concatenate %299, %300 in 1 : vector<8x128xbf16>, vector<8x128xbf16> -> vector<8x256xbf16>
    %cst_106 = arith.constant dense<0.000000e+00> : vector<8x512xf32>
    %302 = tpu.matmul %301, %8, %cst_106 {dimension_numbers = #tpu.dot_dimension_numbers<[1], [0], [0], [1], [0, 0, 1, 1], [], []>} : vector<8x256xbf16>, vector<256x512xbf16>, vector<8x512xf32> -> vector<8x512xf32>
    %303 = arith.addf %302, %11 : vector<8x512xf32>
    %304 = vector.extract_strided_slice %303 {offsets = [0, 0], sizes = [8, 128], strides = [1, 1]} : vector<8x512xf32> to vector<8x128xf32>
    %cst_107 = arith.constant 5.000000e-01 : f32
    %305 = vector.broadcast %cst_107 : f32 to vector<8x128xf32>
    %306 = arith.mulf %305, %304 : vector<8x128xf32>
    %307 = math.tanh %306 : vector<8x128xf32>
    %cst_108 = arith.constant 5.000000e-01 : f32
    %308 = vector.broadcast %cst_108 : f32 to vector<8x128xf32>
    %309 = arith.mulf %308, %307 : vector<8x128xf32>
    %cst_109 = arith.constant 5.000000e-01 : f32
    %310 = vector.broadcast %cst_109 : f32 to vector<8x128xf32>
    %311 = arith.addf %309, %310 : vector<8x128xf32>
    %312 = vector.extract_strided_slice %303 {offsets = [0, 128], sizes = [8, 128], strides = [1, 1]} : vector<8x512xf32> to vector<8x128xf32>
    %cst_110 = arith.constant 5.000000e-01 : f32
    %313 = vector.broadcast %cst_110 : f32 to vector<8x128xf32>
    %314 = arith.mulf %313, %312 : vector<8x128xf32>
    %315 = math.tanh %314 : vector<8x128xf32>
    %cst_111 = arith.constant 5.000000e-01 : f32
    %316 = vector.broadcast %cst_111 : f32 to vector<8x128xf32>
    %317 = arith.mulf %316, %315 : vector<8x128xf32>
    %cst_112 = arith.constant 5.000000e-01 : f32
    %318 = vector.broadcast %cst_112 : f32 to vector<8x128xf32>
    %319 = arith.addf %317, %318 : vector<8x128xf32>
    %320 = vector.extract_strided_slice %303 {offsets = [0, 256], sizes = [8, 128], strides = [1, 1]} : vector<8x512xf32> to vector<8x128xf32>
    %321 = math.tanh %320 : vector<8x128xf32>
    %322 = vector.extract_strided_slice %303 {offsets = [0, 384], sizes = [8, 128], strides = [1, 1]} : vector<8x512xf32> to vector<8x128xf32>
    %cst_113 = arith.constant 5.000000e-01 : f32
    %323 = vector.broadcast %cst_113 : f32 to vector<8x128xf32>
    %324 = arith.mulf %323, %322 : vector<8x128xf32>
    %325 = math.tanh %324 : vector<8x128xf32>
    %cst_114 = arith.constant 5.000000e-01 : f32
    %326 = vector.broadcast %cst_114 : f32 to vector<8x128xf32>
    %327 = arith.mulf %326, %325 : vector<8x128xf32>
    %cst_115 = arith.constant 5.000000e-01 : f32
    %328 = vector.broadcast %cst_115 : f32 to vector<8x128xf32>
    %329 = arith.addf %327, %328 : vector<8x128xf32>
    %330 = arith.mulf %319, %260 : vector<8x128xf32>
    %331 = arith.mulf %311, %321 : vector<8x128xf32>
    %332 = arith.addf %330, %331 : vector<8x128xf32>
    %333 = math.tanh %332 : vector<8x128xf32>
    %334 = arith.mulf %329, %333 : vector<8x128xf32>
    %c24_116 = arith.constant 24 : index
    %c0_117 = arith.constant 0 : index
    %335 = vector.load %arg10[%c24_116, %c0_117] : memref<64x128xf32, #tpu.memory_space<vmem>>, vector<8x128xf32>
    tpu.vector_store %arg10[%c24_116, %c0_117], %334 {strides = array<i32>} : memref<64x128xf32, #tpu.memory_space<vmem>>, vector<8x128xf32>,
    %c40 = arith.constant 40 : index
    %c0_118 = arith.constant 0 : index
    %336 = vector.load %arg9[%c40, %c0_118] : memref<64x512xf32, #tpu.memory_space<vmem>>, vector<8x512xf32>
    %337 = arith.truncf %298 : vector<8x128xf32> to vector<8x128xbf16>
    %cst_119 = arith.constant dense<0.000000e+00> : vector<8x512xf32>
    %338 = tpu.matmul %337, %7, %cst_119 {dimension_numbers = #tpu.dot_dimension_numbers<[1], [0], [0], [1], [0, 0, 1, 1], [], []>} : vector<8x128xbf16>, vector<128x512xbf16>, vector<8x512xf32> -> vector<8x512xf32>
    %339 = arith.addf %336, %338 : vector<8x512xf32>
    %340 = vector.extract_strided_slice %339 {offsets = [0, 0], sizes = [8, 128], strides = [1, 1]} : vector<8x512xf32> to vector<8x128xf32>
    %cst_120 = arith.constant 5.000000e-01 : f32
    %341 = vector.broadcast %cst_120 : f32 to vector<8x128xf32>
    %342 = arith.mulf %341, %340 : vector<8x128xf32>
    %343 = math.tanh %342 : vector<8x128xf32>
    %cst_121 = arith.constant 5.000000e-01 : f32
    %344 = vector.broadcast %cst_121 : f32 to vector<8x128xf32>
    %345 = arith.mulf %344, %343 : vector<8x128xf32>
    %cst_122 = arith.constant 5.000000e-01 : f32
    %346 = vector.broadcast %cst_122 : f32 to vector<8x128xf32>
    %347 = arith.addf %345, %346 : vector<8x128xf32>
    %348 = vector.extract_strided_slice %339 {offsets = [0, 128], sizes = [8, 128], strides = [1, 1]} : vector<8x512xf32> to vector<8x128xf32>
    %cst_123 = arith.constant 5.000000e-01 : f32
    %349 = vector.broadcast %cst_123 : f32 to vector<8x128xf32>
    %350 = arith.mulf %349, %348 : vector<8x128xf32>
    %351 = math.tanh %350 : vector<8x128xf32>
    %cst_124 = arith.constant 5.000000e-01 : f32
    %352 = vector.broadcast %cst_124 : f32 to vector<8x128xf32>
    %353 = arith.mulf %352, %351 : vector<8x128xf32>
    %cst_125 = arith.constant 5.000000e-01 : f32
    %354 = vector.broadcast %cst_125 : f32 to vector<8x128xf32>
    %355 = arith.addf %353, %354 : vector<8x128xf32>
    %356 = vector.extract_strided_slice %339 {offsets = [0, 256], sizes = [8, 128], strides = [1, 1]} : vector<8x512xf32> to vector<8x128xf32>
    %357 = math.tanh %356 : vector<8x128xf32>
    %358 = vector.extract_strided_slice %339 {offsets = [0, 384], sizes = [8, 128], strides = [1, 1]} : vector<8x512xf32> to vector<8x128xf32>
    %cst_126 = arith.constant 5.000000e-01 : f32
    %359 = vector.broadcast %cst_126 : f32 to vector<8x128xf32>
    %360 = arith.mulf %359, %358 : vector<8x128xf32>
    %361 = math.tanh %360 : vector<8x128xf32>
    %cst_127 = arith.constant 5.000000e-01 : f32
    %362 = vector.broadcast %cst_127 : f32 to vector<8x128xf32>
    %363 = arith.mulf %362, %361 : vector<8x128xf32>
    %cst_128 = arith.constant 5.000000e-01 : f32
    %364 = vector.broadcast %cst_128 : f32 to vector<8x128xf32>
    %365 = arith.addf %363, %364 : vector<8x128xf32>
    %366 = arith.mulf %355, %296 : vector<8x128xf32>
    %367 = arith.mulf %347, %357 : vector<8x128xf32>
    %368 = arith.addf %366, %367 : vector<8x128xf32>
    %369 = math.tanh %368 : vector<8x128xf32>
    %370 = arith.mulf %365, %369 : vector<8x128xf32>
    %371 = arith.truncf %298 : vector<8x128xf32> to vector<8x128xbf16>
    %372 = arith.truncf %334 : vector<8x128xf32> to vector<8x128xbf16>
    %373 = tpu.concatenate %371, %372 in 1 : vector<8x128xbf16>, vector<8x128xbf16> -> vector<8x256xbf16>
    %cst_129 = arith.constant dense<0.000000e+00> : vector<8x512xf32>
    %374 = tpu.matmul %373, %8, %cst_129 {dimension_numbers = #tpu.dot_dimension_numbers<[1], [0], [0], [1], [0, 0, 1, 1], [], []>} : vector<8x256xbf16>, vector<256x512xbf16>, vector<8x512xf32> -> vector<8x512xf32>
    %375 = arith.addf %374, %11 : vector<8x512xf32>
    %376 = vector.extract_strided_slice %375 {offsets = [0, 0], sizes = [8, 128], strides = [1, 1]} : vector<8x512xf32> to vector<8x128xf32>
    %cst_130 = arith.constant 5.000000e-01 : f32
    %377 = vector.broadcast %cst_130 : f32 to vector<8x128xf32>
    %378 = arith.mulf %377, %376 : vector<8x128xf32>
    %379 = math.tanh %378 : vector<8x128xf32>
    %cst_131 = arith.constant 5.000000e-01 : f32
    %380 = vector.broadcast %cst_131 : f32 to vector<8x128xf32>
    %381 = arith.mulf %380, %379 : vector<8x128xf32>
    %cst_132 = arith.constant 5.000000e-01 : f32
    %382 = vector.broadcast %cst_132 : f32 to vector<8x128xf32>
    %383 = arith.addf %381, %382 : vector<8x128xf32>
    %384 = vector.extract_strided_slice %375 {offsets = [0, 128], sizes = [8, 128], strides = [1, 1]} : vector<8x512xf32> to vector<8x128xf32>
    %cst_133 = arith.constant 5.000000e-01 : f32
    %385 = vector.broadcast %cst_133 : f32 to vector<8x128xf32>
    %386 = arith.mulf %385, %384 : vector<8x128xf32>
    %387 = math.tanh %386 : vector<8x128xf32>
    %cst_134 = arith.constant 5.000000e-01 : f32
    %388 = vector.broadcast %cst_134 : f32 to vector<8x128xf32>
    %389 = arith.mulf %388, %387 : vector<8x128xf32>
    %cst_135 = arith.constant 5.000000e-01 : f32
    %390 = vector.broadcast %cst_135 : f32 to vector<8x128xf32>
    %391 = arith.addf %389, %390 : vector<8x128xf32>
    %392 = vector.extract_strided_slice %375 {offsets = [0, 256], sizes = [8, 128], strides = [1, 1]} : vector<8x512xf32> to vector<8x128xf32>
    %393 = math.tanh %392 : vector<8x128xf32>
    %394 = vector.extract_strided_slice %375 {offsets = [0, 384], sizes = [8, 128], strides = [1, 1]} : vector<8x512xf32> to vector<8x128xf32>
    %cst_136 = arith.constant 5.000000e-01 : f32
    %395 = vector.broadcast %cst_136 : f32 to vector<8x128xf32>
    %396 = arith.mulf %395, %394 : vector<8x128xf32>
    %397 = math.tanh %396 : vector<8x128xf32>
    %cst_137 = arith.constant 5.000000e-01 : f32
    %398 = vector.broadcast %cst_137 : f32 to vector<8x128xf32>
    %399 = arith.mulf %398, %397 : vector<8x128xf32>
    %cst_138 = arith.constant 5.000000e-01 : f32
    %400 = vector.broadcast %cst_138 : f32 to vector<8x128xf32>
    %401 = arith.addf %399, %400 : vector<8x128xf32>
    %402 = arith.mulf %391, %332 : vector<8x128xf32>
    %403 = arith.mulf %383, %393 : vector<8x128xf32>
    %404 = arith.addf %402, %403 : vector<8x128xf32>
    %405 = math.tanh %404 : vector<8x128xf32>
    %406 = arith.mulf %401, %405 : vector<8x128xf32>
    %c32_139 = arith.constant 32 : index
    %c0_140 = arith.constant 0 : index
    %407 = vector.load %arg10[%c32_139, %c0_140] : memref<64x128xf32, #tpu.memory_space<vmem>>, vector<8x128xf32>
    tpu.vector_store %arg10[%c32_139, %c0_140], %406 {strides = array<i32>} : memref<64x128xf32, #tpu.memory_space<vmem>>, vector<8x128xf32>,
    %c48 = arith.constant 48 : index
    %c0_141 = arith.constant 0 : index
    %408 = vector.load %arg9[%c48, %c0_141] : memref<64x512xf32, #tpu.memory_space<vmem>>, vector<8x512xf32>
    %409 = arith.truncf %370 : vector<8x128xf32> to vector<8x128xbf16>
    %cst_142 = arith.constant dense<0.000000e+00> : vector<8x512xf32>
    %410 = tpu.matmul %409, %7, %cst_142 {dimension_numbers = #tpu.dot_dimension_numbers<[1], [0], [0], [1], [0, 0, 1, 1], [], []>} : vector<8x128xbf16>, vector<128x512xbf16>, vector<8x512xf32> -> vector<8x512xf32>
    %411 = arith.addf %408, %410 : vector<8x512xf32>
    %412 = vector.extract_strided_slice %411 {offsets = [0, 0], sizes = [8, 128], strides = [1, 1]} : vector<8x512xf32> to vector<8x128xf32>
    %cst_143 = arith.constant 5.000000e-01 : f32
    %413 = vector.broadcast %cst_143 : f32 to vector<8x128xf32>
    %414 = arith.mulf %413, %412 : vector<8x128xf32>
    %415 = math.tanh %414 : vector<8x128xf32>
    %cst_144 = arith.constant 5.000000e-01 : f32
    %416 = vector.broadcast %cst_144 : f32 to vector<8x128xf32>
    %417 = arith.mulf %416, %415 : vector<8x128xf32>
    %cst_145 = arith.constant 5.000000e-01 : f32
    %418 = vector.broadcast %cst_145 : f32 to vector<8x128xf32>
    %419 = arith.addf %417, %418 : vector<8x128xf32>
    %420 = vector.extract_strided_slice %411 {offsets = [0, 128], sizes = [8, 128], strides = [1, 1]} : vector<8x512xf32> to vector<8x128xf32>
    %cst_146 = arith.constant 5.000000e-01 : f32
    %421 = vector.broadcast %cst_146 : f32 to vector<8x128xf32>
    %422 = arith.mulf %421, %420 : vector<8x128xf32>
    %423 = math.tanh %422 : vector<8x128xf32>
    %cst_147 = arith.constant 5.000000e-01 : f32
    %424 = vector.broadcast %cst_147 : f32 to vector<8x128xf32>
    %425 = arith.mulf %424, %423 : vector<8x128xf32>
    %cst_148 = arith.constant 5.000000e-01 : f32
    %426 = vector.broadcast %cst_148 : f32 to vector<8x128xf32>
    %427 = arith.addf %425, %426 : vector<8x128xf32>
    %428 = vector.extract_strided_slice %411 {offsets = [0, 256], sizes = [8, 128], strides = [1, 1]} : vector<8x512xf32> to vector<8x128xf32>
    %429 = math.tanh %428 : vector<8x128xf32>
    %430 = vector.extract_strided_slice %411 {offsets = [0, 384], sizes = [8, 128], strides = [1, 1]} : vector<8x512xf32> to vector<8x128xf32>
    %cst_149 = arith.constant 5.000000e-01 : f32
    %431 = vector.broadcast %cst_149 : f32 to vector<8x128xf32>
    %432 = arith.mulf %431, %430 : vector<8x128xf32>
    %433 = math.tanh %432 : vector<8x128xf32>
    %cst_150 = arith.constant 5.000000e-01 : f32
    %434 = vector.broadcast %cst_150 : f32 to vector<8x128xf32>
    %435 = arith.mulf %434, %433 : vector<8x128xf32>
    %cst_151 = arith.constant 5.000000e-01 : f32
    %436 = vector.broadcast %cst_151 : f32 to vector<8x128xf32>
    %437 = arith.addf %435, %436 : vector<8x128xf32>
    %438 = arith.mulf %427, %368 : vector<8x128xf32>
    %439 = arith.mulf %419, %429 : vector<8x128xf32>
    %440 = arith.addf %438, %439 : vector<8x128xf32>
    %441 = math.tanh %440 : vector<8x128xf32>
    %442 = arith.mulf %437, %441 : vector<8x128xf32>
    %443 = arith.truncf %370 : vector<8x128xf32> to vector<8x128xbf16>
    %444 = arith.truncf %406 : vector<8x128xf32> to vector<8x128xbf16>
    %445 = tpu.concatenate %443, %444 in 1 : vector<8x128xbf16>, vector<8x128xbf16> -> vector<8x256xbf16>
    %cst_152 = arith.constant dense<0.000000e+00> : vector<8x512xf32>
    %446 = tpu.matmul %445, %8, %cst_152 {dimension_numbers = #tpu.dot_dimension_numbers<[1], [0], [0], [1], [0, 0, 1, 1], [], []>} : vector<8x256xbf16>, vector<256x512xbf16>, vector<8x512xf32> -> vector<8x512xf32>
    %447 = arith.addf %446, %11 : vector<8x512xf32>
    %448 = vector.extract_strided_slice %447 {offsets = [0, 0], sizes = [8, 128], strides = [1, 1]} : vector<8x512xf32> to vector<8x128xf32>
    %cst_153 = arith.constant 5.000000e-01 : f32
    %449 = vector.broadcast %cst_153 : f32 to vector<8x128xf32>
    %450 = arith.mulf %449, %448 : vector<8x128xf32>
    %451 = math.tanh %450 : vector<8x128xf32>
    %cst_154 = arith.constant 5.000000e-01 : f32
    %452 = vector.broadcast %cst_154 : f32 to vector<8x128xf32>
    %453 = arith.mulf %452, %451 : vector<8x128xf32>
    %cst_155 = arith.constant 5.000000e-01 : f32
    %454 = vector.broadcast %cst_155 : f32 to vector<8x128xf32>
    %455 = arith.addf %453, %454 : vector<8x128xf32>
    %456 = vector.extract_strided_slice %447 {offsets = [0, 128], sizes = [8, 128], strides = [1, 1]} : vector<8x512xf32> to vector<8x128xf32>
    %cst_156 = arith.constant 5.000000e-01 : f32
    %457 = vector.broadcast %cst_156 : f32 to vector<8x128xf32>
    %458 = arith.mulf %457, %456 : vector<8x128xf32>
    %459 = math.tanh %458 : vector<8x128xf32>
    %cst_157 = arith.constant 5.000000e-01 : f32
    %460 = vector.broadcast %cst_157 : f32 to vector<8x128xf32>
    %461 = arith.mulf %460, %459 : vector<8x128xf32>
    %cst_158 = arith.constant 5.000000e-01 : f32
    %462 = vector.broadcast %cst_158 : f32 to vector<8x128xf32>
    %463 = arith.addf %461, %462 : vector<8x128xf32>
    %464 = vector.extract_strided_slice %447 {offsets = [0, 256], sizes = [8, 128], strides = [1, 1]} : vector<8x512xf32> to vector<8x128xf32>
    %465 = math.tanh %464 : vector<8x128xf32>
    %466 = vector.extract_strided_slice %447 {offsets = [0, 384], sizes = [8, 128], strides = [1, 1]} : vector<8x512xf32> to vector<8x128xf32>
    %cst_159 = arith.constant 5.000000e-01 : f32
    %467 = vector.broadcast %cst_159 : f32 to vector<8x128xf32>
    %468 = arith.mulf %467, %466 : vector<8x128xf32>
    %469 = math.tanh %468 : vector<8x128xf32>
    %cst_160 = arith.constant 5.000000e-01 : f32
    %470 = vector.broadcast %cst_160 : f32 to vector<8x128xf32>
    %471 = arith.mulf %470, %469 : vector<8x128xf32>
    %cst_161 = arith.constant 5.000000e-01 : f32
    %472 = vector.broadcast %cst_161 : f32 to vector<8x128xf32>
    %473 = arith.addf %471, %472 : vector<8x128xf32>
    %474 = arith.mulf %463, %404 : vector<8x128xf32>
    %475 = arith.mulf %455, %465 : vector<8x128xf32>
    %476 = arith.addf %474, %475 : vector<8x128xf32>
    %477 = math.tanh %476 : vector<8x128xf32>
    %478 = arith.mulf %473, %477 : vector<8x128xf32>
    %c40_162 = arith.constant 40 : index
    %c0_163 = arith.constant 0 : index
    %479 = vector.load %arg10[%c40_162, %c0_163] : memref<64x128xf32, #tpu.memory_space<vmem>>, vector<8x128xf32>
    tpu.vector_store %arg10[%c40_162, %c0_163], %478 {strides = array<i32>} : memref<64x128xf32, #tpu.memory_space<vmem>>, vector<8x128xf32>,
    %c56 = arith.constant 56 : index
    %c0_164 = arith.constant 0 : index
    %480 = vector.load %arg9[%c56, %c0_164] : memref<64x512xf32, #tpu.memory_space<vmem>>, vector<8x512xf32>
    %481 = arith.truncf %442 : vector<8x128xf32> to vector<8x128xbf16>
    %cst_165 = arith.constant dense<0.000000e+00> : vector<8x512xf32>
    %482 = tpu.matmul %481, %7, %cst_165 {dimension_numbers = #tpu.dot_dimension_numbers<[1], [0], [0], [1], [0, 0, 1, 1], [], []>} : vector<8x128xbf16>, vector<128x512xbf16>, vector<8x512xf32> -> vector<8x512xf32>
    %483 = arith.addf %480, %482 : vector<8x512xf32>
    %484 = vector.extract_strided_slice %483 {offsets = [0, 0], sizes = [8, 128], strides = [1, 1]} : vector<8x512xf32> to vector<8x128xf32>
    %cst_166 = arith.constant 5.000000e-01 : f32
    %485 = vector.broadcast %cst_166 : f32 to vector<8x128xf32>
    %486 = arith.mulf %485, %484 : vector<8x128xf32>
    %487 = math.tanh %486 : vector<8x128xf32>
    %cst_167 = arith.constant 5.000000e-01 : f32
    %488 = vector.broadcast %cst_167 : f32 to vector<8x128xf32>
    %489 = arith.mulf %488, %487 : vector<8x128xf32>
    %cst_168 = arith.constant 5.000000e-01 : f32
    %490 = vector.broadcast %cst_168 : f32 to vector<8x128xf32>
    %491 = arith.addf %489, %490 : vector<8x128xf32>
    %492 = vector.extract_strided_slice %483 {offsets = [0, 128], sizes = [8, 128], strides = [1, 1]} : vector<8x512xf32> to vector<8x128xf32>
    %cst_169 = arith.constant 5.000000e-01 : f32
    %493 = vector.broadcast %cst_169 : f32 to vector<8x128xf32>
    %494 = arith.mulf %493, %492 : vector<8x128xf32>
    %495 = math.tanh %494 : vector<8x128xf32>
    %cst_170 = arith.constant 5.000000e-01 : f32
    %496 = vector.broadcast %cst_170 : f32 to vector<8x128xf32>
    %497 = arith.mulf %496, %495 : vector<8x128xf32>
    %cst_171 = arith.constant 5.000000e-01 : f32
    %498 = vector.broadcast %cst_171 : f32 to vector<8x128xf32>
    %499 = arith.addf %497, %498 : vector<8x128xf32>
    %500 = vector.extract_strided_slice %483 {offsets = [0, 256], sizes = [8, 128], strides = [1, 1]} : vector<8x512xf32> to vector<8x128xf32>
    %501 = math.tanh %500 : vector<8x128xf32>
    %502 = vector.extract_strided_slice %483 {offsets = [0, 384], sizes = [8, 128], strides = [1, 1]} : vector<8x512xf32> to vector<8x128xf32>
    %cst_172 = arith.constant 5.000000e-01 : f32
    %503 = vector.broadcast %cst_172 : f32 to vector<8x128xf32>
    %504 = arith.mulf %503, %502 : vector<8x128xf32>
    %505 = math.tanh %504 : vector<8x128xf32>
    %cst_173 = arith.constant 5.000000e-01 : f32
    %506 = vector.broadcast %cst_173 : f32 to vector<8x128xf32>
    %507 = arith.mulf %506, %505 : vector<8x128xf32>
    %cst_174 = arith.constant 5.000000e-01 : f32
    %508 = vector.broadcast %cst_174 : f32 to vector<8x128xf32>
    %509 = arith.addf %507, %508 : vector<8x128xf32>
    %510 = arith.mulf %499, %440 : vector<8x128xf32>
    %511 = arith.mulf %491, %501 : vector<8x128xf32>
    %512 = arith.addf %510, %511 : vector<8x128xf32>
    %513 = math.tanh %512 : vector<8x128xf32>
    %514 = arith.mulf %509, %513 : vector<8x128xf32>
    %515 = arith.truncf %442 : vector<8x128xf32> to vector<8x128xbf16>
    %516 = arith.truncf %478 : vector<8x128xf32> to vector<8x128xbf16>
    %517 = tpu.concatenate %515, %516 in 1 : vector<8x128xbf16>, vector<8x128xbf16> -> vector<8x256xbf16>
    %cst_175 = arith.constant dense<0.000000e+00> : vector<8x512xf32>
    %518 = tpu.matmul %517, %8, %cst_175 {dimension_numbers = #tpu.dot_dimension_numbers<[1], [0], [0], [1], [0, 0, 1, 1], [], []>} : vector<8x256xbf16>, vector<256x512xbf16>, vector<8x512xf32> -> vector<8x512xf32>
    %519 = arith.addf %518, %11 : vector<8x512xf32>
    %520 = vector.extract_strided_slice %519 {offsets = [0, 0], sizes = [8, 128], strides = [1, 1]} : vector<8x512xf32> to vector<8x128xf32>
    %cst_176 = arith.constant 5.000000e-01 : f32
    %521 = vector.broadcast %cst_176 : f32 to vector<8x128xf32>
    %522 = arith.mulf %521, %520 : vector<8x128xf32>
    %523 = math.tanh %522 : vector<8x128xf32>
    %cst_177 = arith.constant 5.000000e-01 : f32
    %524 = vector.broadcast %cst_177 : f32 to vector<8x128xf32>
    %525 = arith.mulf %524, %523 : vector<8x128xf32>
    %cst_178 = arith.constant 5.000000e-01 : f32
    %526 = vector.broadcast %cst_178 : f32 to vector<8x128xf32>
    %527 = arith.addf %525, %526 : vector<8x128xf32>
    %528 = vector.extract_strided_slice %519 {offsets = [0, 128], sizes = [8, 128], strides = [1, 1]} : vector<8x512xf32> to vector<8x128xf32>
    %cst_179 = arith.constant 5.000000e-01 : f32
    %529 = vector.broadcast %cst_179 : f32 to vector<8x128xf32>
    %530 = arith.mulf %529, %528 : vector<8x128xf32>
    %531 = math.tanh %530 : vector<8x128xf32>
    %cst_180 = arith.constant 5.000000e-01 : f32
    %532 = vector.broadcast %cst_180 : f32 to vector<8x128xf32>
    %533 = arith.mulf %532, %531 : vector<8x128xf32>
    %cst_181 = arith.constant 5.000000e-01 : f32
    %534 = vector.broadcast %cst_181 : f32 to vector<8x128xf32>
    %535 = arith.addf %533, %534 : vector<8x128xf32>
    %536 = vector.extract_strided_slice %519 {offsets = [0, 256], sizes = [8, 128], strides = [1, 1]} : vector<8x512xf32> to vector<8x128xf32>
    %537 = math.tanh %536 : vector<8x128xf32>
    %538 = vector.extract_strided_slice %519 {offsets = [0, 384], sizes = [8, 128], strides = [1, 1]} : vector<8x512xf32> to vector<8x128xf32>
    %cst_182 = arith.constant 5.000000e-01 : f32
    %539 = vector.broadcast %cst_182 : f32 to vector<8x128xf32>
    %540 = arith.mulf %539, %538 : vector<8x128xf32>
    %541 = math.tanh %540 : vector<8x128xf32>
    %cst_183 = arith.constant 5.000000e-01 : f32
    %542 = vector.broadcast %cst_183 : f32 to vector<8x128xf32>
    %543 = arith.mulf %542, %541 : vector<8x128xf32>
    %cst_184 = arith.constant 5.000000e-01 : f32
    %544 = vector.broadcast %cst_184 : f32 to vector<8x128xf32>
    %545 = arith.addf %543, %544 : vector<8x128xf32>
    %546 = arith.mulf %535, %476 : vector<8x128xf32>
    %547 = arith.mulf %527, %537 : vector<8x128xf32>
    %548 = arith.addf %546, %547 : vector<8x128xf32>
    %549 = math.tanh %548 : vector<8x128xf32>
    %550 = arith.mulf %545, %549 : vector<8x128xf32>
    %c48_185 = arith.constant 48 : index
    %c0_186 = arith.constant 0 : index
    %551 = vector.load %arg10[%c48_185, %c0_186] : memref<64x128xf32, #tpu.memory_space<vmem>>, vector<8x128xf32>
    tpu.vector_store %arg10[%c48_185, %c0_186], %550 {strides = array<i32>} : memref<64x128xf32, #tpu.memory_space<vmem>>, vector<8x128xf32>,
    %552 = arith.truncf %514 : vector<8x128xf32> to vector<8x128xbf16>
    %553 = arith.truncf %550 : vector<8x128xf32> to vector<8x128xbf16>
    %554 = tpu.concatenate %552, %553 in 1 : vector<8x128xbf16>, vector<8x128xbf16> -> vector<8x256xbf16>
    %cst_187 = arith.constant dense<0.000000e+00> : vector<8x512xf32>
    %555 = tpu.matmul %554, %8, %cst_187 {dimension_numbers = #tpu.dot_dimension_numbers<[1], [0], [0], [1], [0, 0, 1, 1], [], []>} : vector<8x256xbf16>, vector<256x512xbf16>, vector<8x512xf32> -> vector<8x512xf32>
    %556 = arith.addf %555, %11 : vector<8x512xf32>
    %557 = vector.extract_strided_slice %556 {offsets = [0, 0], sizes = [8, 128], strides = [1, 1]} : vector<8x512xf32> to vector<8x128xf32>
    %cst_188 = arith.constant 5.000000e-01 : f32
    %558 = vector.broadcast %cst_188 : f32 to vector<8x128xf32>
    %559 = arith.mulf %558, %557 : vector<8x128xf32>
    %560 = math.tanh %559 : vector<8x128xf32>
    %cst_189 = arith.constant 5.000000e-01 : f32
    %561 = vector.broadcast %cst_189 : f32 to vector<8x128xf32>
    %562 = arith.mulf %561, %560 : vector<8x128xf32>
    %cst_190 = arith.constant 5.000000e-01 : f32
    %563 = vector.broadcast %cst_190 : f32 to vector<8x128xf32>
    %564 = arith.addf %562, %563 : vector<8x128xf32>
    %565 = vector.extract_strided_slice %556 {offsets = [0, 128], sizes = [8, 128], strides = [1, 1]} : vector<8x512xf32> to vector<8x128xf32>
    %cst_191 = arith.constant 5.000000e-01 : f32
    %566 = vector.broadcast %cst_191 : f32 to vector<8x128xf32>
    %567 = arith.mulf %566, %565 : vector<8x128xf32>
    %568 = math.tanh %567 : vector<8x128xf32>
    %cst_192 = arith.constant 5.000000e-01 : f32
    %569 = vector.broadcast %cst_192 : f32 to vector<8x128xf32>
    %570 = arith.mulf %569, %568 : vector<8x128xf32>
    %cst_193 = arith.constant 5.000000e-01 : f32
    %571 = vector.broadcast %cst_193 : f32 to vector<8x128xf32>
    %572 = arith.addf %570, %571 : vector<8x128xf32>
    %573 = vector.extract_strided_slice %556 {offsets = [0, 256], sizes = [8, 128], strides = [1, 1]} : vector<8x512xf32> to vector<8x128xf32>
    %574 = math.tanh %573 : vector<8x128xf32>
    %575 = vector.extract_strided_slice %556 {offsets = [0, 384], sizes = [8, 128], strides = [1, 1]} : vector<8x512xf32> to vector<8x128xf32>
    %cst_194 = arith.constant 5.000000e-01 : f32
    %576 = vector.broadcast %cst_194 : f32 to vector<8x128xf32>
    %577 = arith.mulf %576, %575 : vector<8x128xf32>
    %578 = math.tanh %577 : vector<8x128xf32>
    %cst_195 = arith.constant 5.000000e-01 : f32
    %579 = vector.broadcast %cst_195 : f32 to vector<8x128xf32>
    %580 = arith.mulf %579, %578 : vector<8x128xf32>
    %cst_196 = arith.constant 5.000000e-01 : f32
    %581 = vector.broadcast %cst_196 : f32 to vector<8x128xf32>
    %582 = arith.addf %580, %581 : vector<8x128xf32>
    %583 = arith.mulf %572, %548 : vector<8x128xf32>
    %584 = arith.mulf %564, %574 : vector<8x128xf32>
    %585 = arith.addf %583, %584 : vector<8x128xf32>
    %586 = math.tanh %585 : vector<8x128xf32>
    %587 = arith.mulf %582, %586 : vector<8x128xf32>
    %c56_197 = arith.constant 56 : index
    %c0_198 = arith.constant 0 : index
    %588 = vector.load %arg10[%c56_197, %c0_198] : memref<64x128xf32, #tpu.memory_space<vmem>>, vector<8x128xf32>
    tpu.vector_store %arg10[%c56_197, %c0_198], %587 {strides = array<i32>} : memref<64x128xf32, #tpu.memory_space<vmem>>, vector<8x128xf32>,
    %c0_199 = arith.constant 0 : index
    %c0_200 = arith.constant 0 : index
    %589 = vector.load %arg10[%c0_199, %c0_200] : memref<64x128xf32, #tpu.memory_space<vmem>>, vector<64x128xf32>
    %590 = arith.truncf %589 : vector<64x128xf32> to vector<64x128xbf16>
    %c0_201 = arith.constant 0 : index
    %c0_202 = arith.constant 0 : index
    %591 = vector.load %arg6[%c0_201, %c0_202] : memref<128x512xbf16, #tpu.memory_space<vmem>>, vector<128x512xbf16>
    %cst_203 = arith.constant dense<0.000000e+00> : vector<64x512xf32>
    %592 = tpu.matmul %590, %591, %cst_203 {dimension_numbers = #tpu.dot_dimension_numbers<[1], [0], [0], [1], [0, 0, 1, 1], [], []>} : vector<64x128xbf16>, vector<128x512xbf16>, vector<64x512xf32> -> vector<64x512xf32>
    %c0_204 = arith.constant 0 : index
    %c0_205 = arith.constant 0 : index
    %593 = vector.load %arg7[%c0_204, %c0_205] : memref<1x512xf32, #tpu.memory_space<vmem>>, vector<1x512xf32>
    %594 = vector.broadcast %593 : vector<1x512xf32> to vector<64x512xf32>
    %595 = arith.addf %592, %594 : vector<64x512xf32>
    %c0_206 = arith.constant 0 : index
    %c0_207 = arith.constant 0 : index
    %596 = vector.load %arg8[%c0_206, %c0_207] : memref<64x512xf32, #tpu.memory_space<vmem>>, vector<64x512xf32>
    tpu.vector_store %arg8[%c0_206, %c0_207], %595 {strides = array<i32>} : memref<64x512xf32, #tpu.memory_space<vmem>>, vector<64x512xf32>,
    return
  }
}

</mosaic_0001>

<bundles_post_ra>
// kernel: test_lstm_forward.1
= control target key start
LH: loop header
LB: loop body
LE: loop exit
PB: predicated region body
PF: predicated region fallthrough
CT: control target
= control target key end

     0   :  { %s6454_s1 = inlined_call_operand.vmem [shape: bf16[128,512], index: 1, kind: input, shape index: {}]   ;;  %s6455_s2 = inlined_call_operand.vmem [shape: bf16[128,512], index: 2, kind: input, shape index: {}]   ;;  %s6456_s0 = inlined_call_operand.vmem [shape: bf16[64,128], index: 0, kind: input, shape index: {}]   ;;  %s6457_s3 = inlined_call_operand.vmem [shape: f32[1,512], index: 3, kind: input, shape index: {}]   ;;  %s6458_s4 = inlined_call_operand.vmem [shape: bf16[256,512], index: 4, kind: input, shape index: {}]   ;;  %s6459_s5 = inlined_call_operand.vmem [shape: f32[1,512], index: 5, kind: input, shape index: {}]   ;;  %s6460_s6 = inlined_call_operand.vmem [shape: bf16[128,512], index: 6, kind: input, shape index: {}]   ;;  %s6461_s7 = inlined_call_operand.vmem [shape: f32[1,512], index: 7, kind: input, shape index: {}]   ;;  %s6462_s8 = inlined_call_operand.vmem [shape: f32[64,512], index: 8, kind: output, shape index: {}]  }
   0x1   :  { %v3117_v0 = vld [vmem:[%s6454_s1 + $0xe0] sm:$0xf]  ;;  %v3677_v1 = vld [vmem:[%s6454_s1 + $0xec] sm:$0xf0]  ;;  %v3675_v2 = vld [vmem:[%s6454_s1 + $0xe4] sm:$0xf] }
   0x2   :  { %v3118_v3 = vor.u32 %v3677_v1, %v3117_v0  ;;  %v3119_v4 = vld [vmem:[%s6454_s1 + $0xf0] sm:$0xf0]  ;;  %v3125_v5 = vld [vmem:[%s6454_s1 + $0xe8] sm:$0xf]  ;;  %v3678_v6 = vld [vmem:[%s6454_s1 + $0xf4] sm:$0xf0] }
   0x3   :  { %v3122_v7 = vor.u32 %v3675_v2, %v3119_v4  ;;  %v3126_v8 = vor.u32 %v3678_v6, %v3125_v5  ;;  %v3676_v9 = vld [vmem:[%s6454_s1 + $0xec] sm:$0xf]  ;;  %v3127_v10 = vld [vmem:[%s6454_s1 + $0xf8] sm:$0xf0]  ;;  %v3101_v11 = vld [vmem:[%s6454_s1 + $0xc0] sm:$0xf] }
   0x4   :  { %264 = vmatpush.bf16.msra.mxu0 %v3118_v3  ;;  %v3130_v12 = vor.u32 %v3676_v9, %v3127_v10  ;;  %v3673_v13 = vld [vmem:[%s6454_s1 + $0xcc] sm:$0xf0]  ;;  %v3671_v14 = vld [vmem:[%s6454_s1 + $0xc4] sm:$0xf]  ;;  %v3103_v15 = vld [vmem:[%s6454_s1 + $0xd0] sm:$0xf0] }
   0x5   :  { %293 = vmatpush.bf16.msra.mxu1 %v3122_v7  ;;  %322 = vmatpush.bf16.msra.mxu2 %v3126_v8  ;;  %v3102_v16 = vor.u32 %v3673_v13, %v3101_v11  ;;  %v3106_v17 = vor.u32 %v3671_v14, %v3103_v15  ;;  %v3109_v18 = vld [vmem:[%s6454_s1 + $0xc8] sm:$0xf]  ;;  %v3674_v19 = vld [vmem:[%s6454_s1 + $0xd4] sm:$0xf0]  ;;  %v3672_v20 = vld [vmem:[%s6454_s1 + $0xcc] sm:$0xf] }
   0x6   :  { %351 = vmatpush.bf16.msra.mxu3 %v3130_v12  ;;  %v3110_v21 = vor.u32 %v3674_v19, %v3109_v18  ;;  %v3111_v22 = vld [vmem:[%s6454_s1 + $0xd8] sm:$0xf0]  ;;  %v3085_v23 = vld [vmem:[%s6454_s1 + $0xa0] sm:$0xf]  ;;  %v3669_v24 = vld [vmem:[%s6454_s1 + $0xac] sm:$0xf0] }
   0x7   :  { %v3114_v25 = vor.u32 %v3672_v20, %v3111_v22  ;;  %v3667_v26 = vld [vmem:[%s6454_s1 + $0xa4] sm:$0xf]  ;;  %v3087_v27 = vld [vmem:[%s6454_s1 + $0xb0] sm:$0xf0]  ;;  %v3093_v28 = vld [vmem:[%s6454_s1 + $0xa8] sm:$0xf]  ;;  %v3086_v29 = vor.u32 %v3669_v24, %v3085_v23 }
   0x8   :  { %265 = vmatpush.bf16.msra.mxu0 %v3102_v16  ;;  %v3670_v30 = vld [vmem:[%s6454_s1 + $0xb4] sm:$0xf0]  ;;  %v3668_v31 = vld [vmem:[%s6454_s1 + $0xac] sm:$0xf]  ;;  %v3095_v32 = vld [vmem:[%s6454_s1 + $0xb8] sm:$0xf0]  ;;  %v3090_v33 = vor.u32 %v3667_v26, %v3087_v27 }
   0x9   :  { %294 = vmatpush.bf16.msra.mxu1 %v3106_v17  ;;  %323 = vmatpush.bf16.msra.mxu2 %v3110_v21  ;;  %v3094_v34 = vor.u32 %v3670_v30, %v3093_v28  ;;  %v3069_v35 = vld [vmem:[%s6454_s1 + $0x80] sm:$0xf]  ;;  %v3665_v36 = vld [vmem:[%s6454_s1 + $0x8c] sm:$0xf0]  ;;  %v3663_v37 = vld [vmem:[%s6454_s1 + $0x84] sm:$0xf]  ;;  %v3098_v38 = vor.u32 %v3668_v31, %v3095_v32 }
   0xa   :  { %352 = vmatpush.bf16.msra.mxu3 %v3114_v25  ;;  %v3071_v39 = vld [vmem:[%s6454_s1 + $0x90] sm:$0xf0]  ;;  %v3077_v40 = vld [vmem:[%s6454_s1 + $0x88] sm:$0xf]  ;;  %v3666_v41 = vld [vmem:[%s6454_s1 + $0x94] sm:$0xf0]  ;;  %v3070_v44 = vor.u32 %v3665_v36, %v3069_v35 }
   0xb   :  { %v3664_v42 = vld [vmem:[%s6454_s1 + $0x8c] sm:$0xf]  ;;  %v3079_v43 = vld [vmem:[%s6454_s1 + $0x98] sm:$0xf0]  ;;  %v3074_v45 = vor.u32 %v3663_v37, %v3071_v39  ;;  %v3078_v46 = vor.u32 %v3666_v41, %v3077_v40  ;;  %v3053_v47 = vld [vmem:[%s6454_s1 + $0x60] sm:$0xf] }
   0xc   :  { %266 = vmatpush.bf16.msra.mxu0 %v3086_v29  ;;  %v3661_v48 = vld [vmem:[%s6454_s1 + $0x6c] sm:$0xf0]  ;;  %v3659_v49 = vld [vmem:[%s6454_s1 + $0x64] sm:$0xf]  ;;  %v3082_v50 = vor.u32 %v3664_v42, %v3079_v43  ;;  %v3055_v51 = vld [vmem:[%s6454_s1 + $0x70] sm:$0xf0] }
   0xd   :  { %295 = vmatpush.bf16.msra.mxu1 %v3090_v33  ;;  %324 = vmatpush.bf16.msra.mxu2 %v3094_v34  ;;  %v3061_v52 = vld [vmem:[%s6454_s1 + $0x68] sm:$0xf]  ;;  %v3662_v53 = vld [vmem:[%s6454_s1 + $0x74] sm:$0xf0]  ;;  %v3660_v54 = vld [vmem:[%s6454_s1 + $0x6c] sm:$0xf]  ;;  %v3054_v56 = vor.u32 %v3661_v48, %v3053_v47  ;;  %v3058_v57 = vor.u32 %v3659_v49, %v3055_v51 }
   0xe   :  { %353 = vmatpush.bf16.msra.mxu3 %v3098_v38  ;;  %v3063_v55 = vld [vmem:[%s6454_s1 + $0x78] sm:$0xf0]  ;;  %v3062_v58 = vor.u32 %v3662_v53, %v3061_v52  ;;  %v3037_v59 = vld [vmem:[%s6454_s1 + $0x40] sm:$0xf]  ;;  %v3657_v60 = vld [vmem:[%s6454_s1 + $0x4c] sm:$0xf0] }
   0xf   :  { %v3655_v61 = vld [vmem:[%s6454_s1 + $0x44] sm:$0xf]  ;;  %v3066_v62 = vor.u32 %v3660_v54, %v3063_v55  ;;  %v3039_v63 = vld [vmem:[%s6454_s1 + $0x50] sm:$0xf0]  ;;  %v3045_v0 = vld [vmem:[%s6454_s1 + $0x48] sm:$0xf]  ;;  %v3038_v4 = vor.u32 %v3657_v60, %v3037_v59 }
  0x10   :  { %267 = vmatpush.bf16.msra.mxu0 %v3070_v44  ;;  %v3658_v1 = vld [vmem:[%s6454_s1 + $0x54] sm:$0xf0]  ;;  %v3656_v2 = vld [vmem:[%s6454_s1 + $0x4c] sm:$0xf]  ;;  %v3047_v3 = vld [vmem:[%s6454_s1 + $0x58] sm:$0xf0]  ;;  %v3042_v5 = vor.u32 %v3655_v61, %v3039_v63 }
  0x11   :  { %296 = vmatpush.bf16.msra.mxu1 %v3074_v45  ;;  %325 = vmatpush.bf16.msra.mxu2 %v3078_v46  ;;  %v3046_v6 = vor.u32 %v3658_v1, %v3045_v0  ;;  %v3021_v7 = vld [vmem:[%s6454_s1 + $0x20] sm:$0xf]  ;;  %v3653_v8 = vld [vmem:[%s6454_s1 + $0x2c] sm:$0xf0]  ;;  %v3651_v9 = vld [vmem:[%s6454_s1 + $0x24] sm:$0xf]  ;;  %v3050_v10 = vor.u32 %v3656_v2, %v3047_v3 }
  0x12   :  { %354 = vmatpush.bf16.msra.mxu3 %v3082_v50  ;;  %v3023_v11 = vld [vmem:[%s6454_s1 + $0x30] sm:$0xf0]  ;;  %v3029_v12 = vld [vmem:[%s6454_s1 + $0x28] sm:$0xf]  ;;  %v3654_v13 = vld [vmem:[%s6454_s1 + $0x34] sm:$0xf0]  ;;  %v3022_v16 = vor.u32 %v3653_v8, %v3021_v7 }
  0x13   :  { %v3652_v14 = vld [vmem:[%s6454_s1 + $0x2c] sm:$0xf]  ;;  %v3031_v15 = vld [vmem:[%s6454_s1 + $0x38] sm:$0xf0]  ;;  %v3005_v17 = vld [vmem:[%s6454_s1] sm:$0xf]  ;;  %v3026_v18 = vor.u32 %v3651_v9, %v3023_v11  ;;  %v3030_v19 = vor.u32 %v3654_v13, %v3029_v12 }
  0x14   :  { %268 = vmatpush.bf16.msra.mxu0 %v3054_v56  ;;  %v3649_v20 = vld [vmem:[%s6454_s1 + $0xc] sm:$0xf0]  ;;  %v3647_v21 = vld [vmem:[%s6454_s1 + $0x4] sm:$0xf]  ;;  %v3007_v22 = vld [vmem:[%s6454_s1 + $0x10] sm:$0xf0]  ;;  %v3034_v23 = vor.u32 %v3652_v14, %v3031_v15 }
  0x15   :  { %297 = vmatpush.bf16.msra.mxu1 %v3058_v57  ;;  %326 = vmatpush.bf16.msra.mxu2 %v3062_v58  ;;  %v3013_v24 = vld [vmem:[%s6454_s1 + $0x8] sm:$0xf]  ;;  %v3650_v25 = vld [vmem:[%s6454_s1 + $0x14] sm:$0xf0]  ;;  %v3648_v26 = vld [vmem:[%s6454_s1 + $0xc] sm:$0xf]  ;;  %v3006_v30 = vor.u32 %v3649_v20, %v3005_v17  ;;  %v3010_v33 = vor.u32 %v3647_v21, %v3007_v22 }
  0x16   :  { %355 = vmatpush.bf16.msra.mxu3 %v3066_v62  ;;  %v3015_v27 = vld [vmem:[%s6454_s1 + $0x18] sm:$0xf0]  ;;  %v3245_v28 = vld [vmem:[%s6455_s2 + $0xe0] sm:$0xf]  ;;  %v3709_v29 = vld [vmem:[%s6455_s2 + $0xec] sm:$0xf0]  ;;  %v3014_v34 = vor.u32 %v3650_v25, %v3013_v24 }
  0x17   :  { %v3707_v31 = vld [vmem:[%s6455_s2 + $0xe4] sm:$0xf]  ;;  %v3247_v32 = vld [vmem:[%s6455_s2 + $0xf0] sm:$0xf0]  ;;  %v3018_v36 = vor.u32 %v3648_v26, %v3015_v27  ;;  %v4221_v37 = vor.u32 %v3709_v29, %v3245_v28  ;;  %v3253_v38 = vld [vmem:[%s6455_s2 + $0xe8] sm:$0xf] }
  0x18   :  { %269 = vmatpush.bf16.msra.mxu0 %v3038_v4  ;;  %v3643_v35 = vld [vmem:[%s6456_s0] sm:$0xff]  ;;  %v3710_v39 = vld [vmem:[%s6455_s2 + $0xf4] sm:$0xf0]  ;;  %v3708_v40 = vld [vmem:[%s6455_s2 + $0xec] sm:$0xf]  ;;  %v4232_v41 = vor.u32 %v3707_v31, %v3247_v32 }
  0x19   :  { %298 = vmatpush.bf16.msra.mxu1 %v3042_v5  ;;  %327 = vmatpush.bf16.msra.mxu2 %v3046_v6  ;;  %v3255_v42 = vld [vmem:[%s6455_s2 + $0xf8] sm:$0xf0]  ;;  %v3229_v43 = vld [vmem:[%s6455_s2 + $0xc0] sm:$0xf]  ;;  %v3705_v44 = vld [vmem:[%s6455_s2 + $0xcc] sm:$0xf0]  ;;  %v4249_v47 = vor.u32 %v3710_v39, %v3253_v38 }
  0x1a   :  { %356 = vmatpush.bf16.msra.mxu3 %v3050_v10  ;;  %6654 = vst [vmem:[#allocation4_spill] sm:$0xff] %v4232_v41  ;;  %v3703_v45 = vld [vmem:[%s6455_s2 + $0xc4] sm:$0xf]  ;;  %v3231_v46 = vld [vmem:[%s6455_s2 + $0xd0] sm:$0xf0]  ;;  %v4252_v48 = vor.u32 %v3708_v40, %v3255_v42  ;;  %v4254_v49 = vor.u32 %v3705_v44, %v3229_v43 }
  0x1b   :  { %v3237_v50 = vld [vmem:[%s6455_s2 + $0xc8] sm:$0xf]  ;;  %v3706_v51 = vld [vmem:[%s6455_s2 + $0xd4] sm:$0xf0]  ;;  %v3704_v52 = vld [vmem:[%s6455_s2 + $0xcc] sm:$0xf]  ;;  %v4266_v53 = vor.u32 %v3703_v45, %v3231_v46 }
  0x1c   :  { %270 = vmatpush.bf16.msra.mxu0 %v3022_v16  ;;  %6655 = vst [vmem:[#allocation5_spill] sm:$0xff] %v4252_v48  ;;  %v3239_v54 = vld [vmem:[%s6455_s2 + $0xd8] sm:$0xf0]  ;;  %v3213_v55 = vld [vmem:[%s6455_s2 + $0xa0] sm:$0xf]  ;;  %v4284_v59 = vor.u32 %v3706_v51, %v3237_v50 }
  0x1d   :  { %299 = vmatpush.bf16.msra.mxu1 %v3026_v18  ;;  %328 = vmatpush.bf16.msra.mxu2 %v3030_v19  ;;  %6656 = vst [vmem:[#allocation6_spill] sm:$0xff] %v4266_v53  ;;  %v3701_v56 = vld [vmem:[%s6455_s2 + $0xac] sm:$0xf0]  ;;  %v3699_v57 = vld [vmem:[%s6455_s2 + $0xa4] sm:$0xf]  ;;  %v4288_v60 = vor.u32 %v3704_v52, %v3239_v54  ;;  %v3644_v19 = vld [vmem:[%s6456_s0 + $0x8] sm:$0xff] }
  0x1e   :  { %357 = vmatpush.bf16.msra.mxu3 %v3034_v23  ;;  %v3215_v58 = vld [vmem:[%s6455_s2 + $0xb0] sm:$0xf0]  ;;  %v4290_v61 = vor.u32 %v3701_v56, %v3213_v55  ;;  %v3221_v62 = vld [vmem:[%s6455_s2 + $0xa8] sm:$0xf]  ;;  %v3702_v63 = vld [vmem:[%s6455_s2 + $0xb4] sm:$0xf0] }
  0x1f   :  { %6657 = vst [vmem:[#allocation7_spill] sm:$0xff] %v4288_v60  ;;  %v3700_v0 = vld [vmem:[%s6455_s2 + $0xac] sm:$0xf]  ;;  %v4302_v1 = vor.u32 %v3699_v57, %v3215_v58  ;;  %v3223_v2 = vld [vmem:[%s6455_s2 + $0xb8] sm:$0xf0]  ;;  %v4320_v7 = vor.u32 %v3702_v63, %v3221_v62 }
  0x20   :  { %271 = vmatpush.bf16.msra.mxu0 %v3006_v30  ;;  %v3197_v3 = vld [vmem:[%s6455_s2 + $0x80] sm:$0xf]  ;;  %v3697_v4 = vld [vmem:[%s6455_s2 + $0x8c] sm:$0xf0]  ;;  %v3695_v5 = vld [vmem:[%s6455_s2 + $0x84] sm:$0xf]  ;;  %v4324_v8 = vor.u32 %v3700_v0, %v3223_v2 }
  0x21   :  { %300 = vmatpush.bf16.msra.mxu1 %v3010_v33  ;;  %329 = vmatpush.bf16.msra.mxu2 %v3014_v34  ;;  %6658 = vst [vmem:[#allocation8_spill] sm:$0xff] %v4302_v1  ;;  %v3199_v6 = vld [vmem:[%s6455_s2 + $0x90] sm:$0xf0]  ;;  %v4326_v9 = vor.u32 %v3697_v4, %v3197_v3  ;;  %v3205_v10 = vld [vmem:[%s6455_s2 + $0x88] sm:$0xf] }
  0x22   :  { %358 = vmatpush.bf16.msra.mxu3 %v3018_v36  ;;  %6659 = vst [vmem:[#allocation9_spill] sm:$0xff] %v4324_v8  ;;  %v3698_v11 = vld [vmem:[%s6455_s2 + $0x94] sm:$0xf0]  ;;  %v3696_v12 = vld [vmem:[%s6455_s2 + $0x8c] sm:$0xf]  ;;  %v4338_v13 = vor.u32 %v3695_v5, %v3199_v6 }
  0x23   :  { %272 = vmatmul.bf16.vlgmr.msra.gmra.mxu0 %v3643_v35  ;;  %6660 = vst [vmem:[#allocation10_spill] sm:$0xff] %v4326_v9  ;;  %v3207_v14 = vld [vmem:[%s6455_s2 + $0x98] sm:$0xf0]  ;;  %v3181_v15 = vld [vmem:[%s6455_s2 + $0x60] sm:$0xf]  ;;  %v4359_v20 = vor.u32 %v3698_v11, %v3205_v10 }
  0x24   :  { %682 = vmatpush.bf16.msrb.mxu0 %v4221_v37  ;;  %301 = vmatmul.bf16.vlgmr.msra.gmra.mxu1 %v3643_v35  ;;  %6661 = vst [vmem:[#allocation11_spill] sm:$0xff] %v4338_v13  ;;  %v3693_v16 = vld [vmem:[%s6455_s2 + $0x6c] sm:$0xf0]  ;;  %v3691_v17 = vld [vmem:[%s6455_s2 + $0x64] sm:$0xf]  ;;  %v4363_v21 = vor.u32 %v3696_v12, %v3207_v14 }
  0x25   :  { %695 = vmatpush.bf16.msrb.mxu1 %v4232_v41  ;;  %330 = vmatmul.bf16.vlgmr.msra.gmra.mxu2 %v3643_v35  ;;  %v3183_v18 = vld [vmem:[%s6455_s2 + $0x70] sm:$0xf0]  ;;  %6662 = vst [vmem:[#allocation12_spill] sm:$0xff] %v4359_v20  ;;  %v4365_v22 = vor.u32 %v3693_v16, %v3181_v15  ;;  %v3189_v23 = vld [vmem:[%s6455_s2 + $0x68] sm:$0xf] }
  0x26   :  { %359 = vmatmul.bf16.vlgmr.msra.gmra.mxu3 %v3643_v35  ;;  %708 = vmatpush.bf16.msrb.mxu2 %v4249_v47  ;;  %6663 = vst [vmem:[#allocation13_spill] sm:$0xff] %v4363_v21  ;;  %v3694_v24 = vld [vmem:[%s6455_s2 + $0x74] sm:$0xf0]  ;;  %v3692_v25 = vld [vmem:[%s6455_s2 + $0x6c] sm:$0xf]  ;;  %v4377_v26 = vor.u32 %v3691_v17, %v3183_v18  ;;  %v3645_v16 = vld [vmem:[%s6456_s0 + $0x10] sm:$0xff] }
  0x27   :  { %721 = vmatpush.bf16.msrb.mxu3 %v4252_v48  ;;  %6664 = vst [vmem:[#allocation14_spill] sm:$0xff] %v4365_v22  ;;  %v3191_v27 = vld [vmem:[%s6455_s2 + $0x78] sm:$0xf0]  ;;  %v3165_v28 = vld [vmem:[%s6455_s2 + $0x40] sm:$0xf]  ;;  %v4395_v32 = vor.u32 %v3694_v24, %v3189_v23  ;;  %v6463_v18 = vmov 0  }
  0x28   :  { %683 = vmatpush.bf16.msrb.mxu0 %v4254_v49  ;;  %6665 = vst [vmem:[#allocation15_spill] sm:$0xff] %v4377_v26  ;;  %v3689_v29 = vld [vmem:[%s6455_s2 + $0x4c] sm:$0xf0]  ;;  %v3687_v30 = vld [vmem:[%s6455_s2 + $0x44] sm:$0xf]  ;;  %v4399_v33 = vor.u32 %v3692_v25, %v3191_v27  ;;  %v3646_v17 = vld [vmem:[%s6456_s0 + $0x18] sm:$0xff] }
  0x29   :  { %696 = vmatpush.bf16.msrb.mxu1 %v4266_v53  ;;  %v3167_v31 = vld [vmem:[%s6455_s2 + $0x50] sm:$0xf0]  ;;  %6666 = vst [vmem:[#allocation16_spill] sm:$0xff] %v4395_v32  ;;  %v4401_v34 = vor.u32 %v3689_v29, %v3165_v28  ;;  %v3173_v35 = vld [vmem:[%s6455_s2 + $0x48] sm:$0xf] }
  0x2a   :  { %709 = vmatpush.bf16.msrb.mxu2 %v4284_v59  ;;  %6667 = vst [vmem:[#allocation17_spill] sm:$0xff] %v4399_v33  ;;  %v3690_v36 = vld [vmem:[%s6455_s2 + $0x54] sm:$0xf0]  ;;  %v4410_v38 = vor.u32 %v3687_v30, %v3167_v31  ;;  %v3688_v39 = vld [vmem:[%s6455_s2 + $0x4c] sm:$0xf] }
  0x2b   :  { %722 = vmatpush.bf16.msrb.mxu3 %v4288_v60  ;;  %6668 = vst [vmem:[#allocation18_spill] sm:$0xff] %v4401_v34  ;;  %v3175_v40 = vld [vmem:[%s6455_s2 + $0x58] sm:$0xf0]  ;;  %v4419_v42 = vor.u32 %v3690_v36, %v3173_v35  ;;  %v3149_v43 = vld [vmem:[%s6455_s2 + $0x20] sm:$0xf] }
  0x2c   :  { %684 = vmatpush.bf16.msrb.mxu0 %v4290_v61  ;;  %6669 = vst [vmem:[#allocation19_spill] sm:$0xff] %v4410_v38  ;;  %v3685_v44 = vld [vmem:[%s6455_s2 + $0x2c] sm:$0xf0]  ;;  %v3683_v45 = vld [vmem:[%s6455_s2 + $0x24] sm:$0xf]  ;;  %v4432_v46 = vor.u32 %v3688_v39, %v3175_v40 }
  0x2d   :  { %697 = vmatpush.bf16.msrb.mxu1 %v4302_v1  ;;  %6670 = vst [vmem:[#allocation20_spill] sm:$0xff] %v4419_v42  ;;  %v4434_v50 = vor.u32 %v3685_v44, %v3149_v43  ;;  %v3151_v51 = vld [vmem:[%s6455_s2 + $0x30] sm:$0xf0]  ;;  %v3157_v52 = vld [vmem:[%s6455_s2 + $0x28] sm:$0xf] }
  0x2e   :  { %710 = vmatpush.bf16.msrb.mxu2 %v4320_v7  ;;  %6671 = vst [vmem:[#allocation21_spill] sm:$0xff] %v4432_v46  ;;  %v3686_v54 = vld [vmem:[%s6455_s2 + $0x34] sm:$0xf0]  ;;  %v4446_v55 = vor.u32 %v3683_v45, %v3151_v51  ;;  %v3684_v56 = vld [vmem:[%s6455_s2 + $0x2c] sm:$0xf] }
  0x2f   :  { %723 = vmatpush.bf16.msrb.mxu3 %v4324_v8  ;;  %6672 = vst [vmem:[#allocation22_spill] sm:$0xff] %v4434_v50  ;;  %v3159_v57 = vld [vmem:[%s6455_s2 + $0x38] sm:$0xf0]  ;;  %v3133_v58 = vld [vmem:[%s6455_s2] sm:$0xf]  ;;  %v4467_v2 = vor.u32 %v3686_v54, %v3157_v52 }
  0x30   :  { %685 = vmatpush.bf16.msrb.mxu0 %v4326_v9  ;;  %6673 = vst [vmem:[#allocation23_spill] sm:$0xff] %v4446_v55  ;;  %v3681_v62 = vld [vmem:[%s6455_s2 + $0xc] sm:$0xf0]  ;;  %v3679_v63 = vld [vmem:[%s6455_s2 + $0x4] sm:$0xf]  ;;  %v4471_v3 = vor.u32 %v3684_v56, %v3159_v57 }
  0x31   :  { %698 = vmatpush.bf16.msrb.mxu1 %v4338_v13  ;;  %v3135_v0 = vld [vmem:[%s6455_s2 + $0x10] sm:$0xf0]  ;;  %6674 = vst [vmem:[#allocation24_spill] sm:$0xff] %v4467_v2  ;;  %v4473_v4 = vor.u32 %v3681_v62, %v3133_v58  ;;  %v3141_v5 = vld [vmem:[%s6455_s2 + $0x8] sm:$0xf] }
  0x32   :  { %711 = vmatpush.bf16.msrb.mxu2 %v4359_v20  ;;  %6675 = vst [vmem:[#allocation25_spill] sm:$0xff] %v4471_v3  ;;  %v3682_v6 = vld [vmem:[%s6455_s2 + $0x14] sm:$0xf0]  ;;  %v4482_v10 = vor.u32 %v3679_v63, %v3135_v0  ;;  %v3680_v11 = vld [vmem:[%s6455_s2 + $0xc] sm:$0xf] }
  0x33   :  { %724 = vmatpush.bf16.msrb.mxu3 %v4363_v21  ;;  %277 = vmatmul.bf16.gmra.mxu0 %v3644_v19  ;;  %6676 = vst [vmem:[#allocation26_spill] sm:$0xff] %v4473_v4  ;;  %v3143_v12 = vld [vmem:[%s6455_s2 + $0x18] sm:$0xf0]  ;;  %v4491_v14 = vor.u32 %v3682_v6, %v3141_v5  ;;  %v70_v29 = vld [vmem:[%s6457_s3] sm:$0xf] }
  0x34   :  { %686 = vmatpush.bf16.msrb.mxu0 %v4365_v22  ;;  %306 = vmatmul.bf16.gmra.mxu1 %v3644_v19  ;;  %6677 = vst [vmem:[#allocation27_spill] sm:$0xff] %v4482_v10  ;;  %v4495_v15 = vor.u32 %v3680_v11, %v3143_v12  ;;  %v4557_v30 = vperm.slane %v70_v29, 0  ;;  %v4561_v35 = vperm.slane %v70_v29, 1  ;;  %v4571_v45 = vperm.slane %v70_v29, 2 }
  0x35   :  { %699 = vmatpush.bf16.msrb.mxu1 %v4377_v26  ;;  %335 = vmatmul.bf16.gmra.mxu2 %v3644_v19  ;;  %6678 = vst [vmem:[#allocation28_spill] sm:$0xff] %v4491_v14  ;;  %v4573_v51 = vperm.slane %v70_v29, 3  ;;  %v3501_v29 = vld [vmem:[%s6458_s4 + $0x1e0] sm:$0xf] }
  0x36   :  { %364 = vmatmul.bf16.gmra.mxu3 %v3644_v19  ;;  %712 = vmatpush.bf16.msrb.mxu2 %v4395_v32  ;;  %6679 = vst [vmem:[#allocation29_spill] sm:$0xff] %v4495_v15 }
  0x37   :  { %725 = vmatpush.bf16.msrb.mxu3 %v4399_v33  ;;  %6682 = vst [vmem:[#allocation32_spill] sm:$0xff] %v4557_v30 }
  0x38   :  { %687 = vmatpush.bf16.msrb.mxu0 %v4401_v34  ;;  %6684 = vst [vmem:[#allocation34_spill] sm:$0xff] %v4561_v35 }
  0x39   :  { %700 = vmatpush.bf16.msrb.mxu1 %v4410_v38  ;;  %6688 = vst [vmem:[#allocation38_spill] sm:$0xff] %v4571_v45 }
  0x3a   :  { %713 = vmatpush.bf16.msrb.mxu2 %v4419_v42  ;;  %6689 = vst [vmem:[#allocation39_spill] sm:$0xff] %v4573_v51 }
  0x3b   :  { %726 = vmatpush.bf16.msrb.mxu3 %v4432_v46 }
  0x3c   :  { %688 = vmatpush.bf16.msrb.mxu0 %v4434_v50 }
  0x3d   :  { %701 = vmatpush.bf16.msrb.mxu1 %v4446_v55 }
  0x3e   :  { %714 = vmatpush.bf16.msrb.mxu2 %v4467_v2 }
  0x3f   :  { %727 = vmatpush.bf16.msrb.mxu3 %v4471_v3 }
  0x40   :  { %689 = vmatpush.bf16.msrb.mxu0 %v4473_v4 }
  0x41   :  { %702 = vmatpush.bf16.msrb.mxu1 %v4482_v10 }
  0x42   :  { %715 = vmatpush.bf16.msrb.mxu2 %v4491_v14 }
  0x43   :  { %728 = vmatpush.bf16.msrb.mxu3 %v4495_v15  ;;  %282 = vmatmul.bf16.gmra.mxu0 %v3645_v16 }
  0x44   :  { %761 = vmatpush.bf16.msra.mxu0 %v4221_v37  ;;  %311 = vmatmul.bf16.gmra.mxu1 %v3645_v16 }
  0x45   :  { %774 = vmatpush.bf16.msra.mxu1 %v4232_v41  ;;  %340 = vmatmul.bf16.gmra.mxu2 %v3645_v16 }
  0x46   :  { %787 = vmatpush.bf16.msra.mxu2 %v4249_v47  ;;  %369 = vmatmul.bf16.gmra.mxu3 %v3645_v16  ;;  %v3373_v16 = vld [vmem:[%s6458_s4 + $0xe0] sm:$0xf] }
  0x47   :  { %800 = vmatpush.bf16.msra.mxu3 %v4252_v48 }
  0x48   :  { %762 = vmatpush.bf16.msra.mxu0 %v4254_v49 }
  0x49   :  { %775 = vmatpush.bf16.msra.mxu1 %v4266_v53 }
  0x4a   :  { %788 = vmatpush.bf16.msra.mxu2 %v4284_v59 }
  0x4b   :  { %801 = vmatpush.bf16.msra.mxu3 %v4288_v60 }
  0x4c   :  { %763 = vmatpush.bf16.msra.mxu0 %v4290_v61 }
  0x4d   :  { %776 = vmatpush.bf16.msra.mxu1 %v4302_v1 }
  0x4e   :  { %789 = vmatpush.bf16.msra.mxu2 %v4320_v7 }
  0x4f   :  { %802 = vmatpush.bf16.msra.mxu3 %v4324_v8 }
  0x50   :  { %764 = vmatpush.bf16.msra.mxu0 %v4326_v9 }
  0x51   :  { %777 = vmatpush.bf16.msra.mxu1 %v4338_v13 }
  0x52   :  { %790 = vmatpush.bf16.msra.mxu2 %v4359_v20 }
  0x53   :  { %803 = vmatpush.bf16.msra.mxu3 %v4363_v21  ;;  %287 = vmatmul.bf16.gmra.mxu0 %v3646_v17 }
  0x54   :  { %765 = vmatpush.bf16.msra.mxu0 %v4365_v22  ;;  %316 = vmatmul.bf16.gmra.mxu1 %v3646_v17 }
  0x55   :  { %778 = vmatpush.bf16.msra.mxu1 %v4377_v26  ;;  %345 = vmatmul.bf16.gmra.mxu2 %v3646_v17 }
  0x56   :  { %791 = vmatpush.bf16.msra.mxu2 %v4395_v32  ;;  %374 = vmatmul.bf16.gmra.mxu3 %v3646_v17  ;;  %v3741_v17 = vld [vmem:[%s6458_s4 + $0xec] sm:$0xf0] }
  0x57   :  { %804 = vmatpush.bf16.msra.mxu3 %v4399_v33 }
  0x58   :  { %766 = vmatpush.bf16.msra.mxu0 %v4401_v34 }
  0x59   :  { %779 = vmatpush.bf16.msra.mxu1 %v4410_v38 }
  0x5a   :  { %792 = vmatpush.bf16.msra.mxu2 %v4419_v42 }
  0x5b   :  { %805 = vmatpush.bf16.msra.mxu3 %v4432_v46 }
  0x5c   :  { %767 = vmatpush.bf16.msra.mxu0 %v4434_v50 }
  0x5d   :  { %780 = vmatpush.bf16.msra.mxu1 %v4446_v55 }
  0x5e   :  { %793 = vmatpush.bf16.msra.mxu2 %v4467_v2 }
  0x5f   :  { %806 = vmatpush.bf16.msra.mxu3 %v4471_v3 }
  0x60   :  { %768 = vmatpush.bf16.msra.mxu0 %v4473_v4 }
  0x61   :  { %781 = vmatpush.bf16.msra.mxu1 %v4482_v10 }
  0x62   :  { %794 = vmatpush.bf16.msra.mxu2 %v4491_v14 }
  0x63   :  { %807 = vmatpush.bf16.msra.mxu3 %v4495_v15  ;;  %690 = vmatmul.bf16.vlgmr.msrb.gmra.mxu0 %v6463_v18 }
  0x64   :  { %703 = vmatmul.bf16.vlgmr.msrb.gmra.mxu1 %v6463_v18 }
  0x65   :  { %716 = vmatmul.bf16.vlgmr.msrb.gmra.mxu2 %v6463_v18 }
  0x66   :  { %729 = vmatmul.bf16.vlgmr.msrb.gmra.mxu3 %v6463_v18 }
  0xa0   :  { %v4542_v19 = vpop.f32.mrf.mxu0 }
  0xa1   :  { %v4544_v23 = vpop.f32.mrf.mxu1 }
  0xa8   :  { %v4546_v24 = vpop.f32.mrf.mxu2  ;;  %v4550_v27 = vpop.f32.mrf.mxu0 }
  0xa9   :  { %v4548_v25 = vpop.f32.mrf.mxu3  ;;  %6680 = vst [vmem:[#allocation30_spill] sm:$0xff] %v4550_v27  ;;  %v4552_v28 = vpop.f32.mrf.mxu1 }
  0xaa   :  { %6681 = vst [vmem:[#allocation31_spill] sm:$0xff] %v4552_v28 }
  0xb0   :  { %v4559_v31 = vpop.f32.mrf.mxu2  ;;  %v278_v39 = vpop.f32.mrf.mxu0 }
  0xb1   :  { %6683 = vst [vmem:[#allocation33_spill] sm:$0xff] %v4559_v31  ;;  %v4563_v36 = vpop.f32.mrf.mxu3  ;;  %v4566_v40 = vadd.f32 %v278_v39, %v4557_v30  ;;  %v307_v43 = vpop.f32.mrf.mxu1  ;;  %v4604_v39 = vor.u32 %v3741_v17, %v3373_v16  ;;  %v3771_v16 = vld [vmem:[%s6458_s4 + $0x1e4] sm:$0xf]  ;;  %v3503_v17 = vld [vmem:[%s6458_s4 + $0x1f0] sm:$0xf0] }
  0xb2   :  { %6685 = vst [vmem:[#allocation35_spill] sm:$0xff] %v4563_v36  ;;  %v4569_v44 = vadd.f32 %v307_v43, %v4561_v35  ;;  %v3773_v43 = vld [vmem:[%s6458_s4 + $0x1ec] sm:$0xf0]  ;;  %v4626_v18 = vor.u32 %v3771_v16, %v3503_v17 }
  0xb3   :  { %6686 = vst [vmem:[#allocation36_spill] sm:$0xff] %v4566_v40  ;;  %1155 = vmatpush.bf16.msrb.mxu0 %v4604_v39  ;;  %v3769_v17 = vld [vmem:[%s6458_s4 + $0x1cc] sm:$0xf0]  ;;  %v3327_v40 = vld [vmem:[%s6458_s4 + $0x90] sm:$0xf0] }
  0xb4   :  { %6687 = vst [vmem:[#allocation37_spill] sm:$0xff] %v4569_v44  ;;  %1194 = vmatpush.bf16.msrb.mxu3 %v4626_v18  ;;  %v3727_v44 = vld [vmem:[%s6458_s4 + $0x84] sm:$0xf] }
  0xb5   :  { %6698 = vst [vmem:[#allocation48_spill] sm:$0xff] %v4604_v39  ;;  %v4739_v28 = vor.u32 %v3727_v44, %v3327_v40  ;;  %v3309_v40 = vld [vmem:[%s6458_s4 + $0x60] sm:$0xf] }
  0xb6   :  { %6701 = vst [vmem:[#allocation51_spill] sm:$0xff] %v4626_v18  ;;  %v3437_v44 = vld [vmem:[%s6458_s4 + $0x160] sm:$0xf] }
  0xb7   :  { %6718 = vst [vmem:[#allocation68_spill] sm:$0xff] %v4739_v28 }
  0xb8   :  { %v336_v52 = vpop.f32.mrf.mxu2  ;;  %v4578_v57 = vpop.f32.mrf.mxu0 }
  0xb9   :  { %v4576_v54 = vadd.f32 %v336_v52, %v4571_v45  ;;  %v365_v56 = vpop.f32.mrf.mxu3  ;;  %6691 = vst [vmem:[#allocation41_spill] sm:$0xff] %v4578_v57  ;;  %v4583_v62 = vpop.f32.mrf.mxu1  ;;  %v3739_v52 = vld [vmem:[%s6458_s4 + $0xe4] sm:$0xf] }
  0xba   :  { %v4581_v58 = vadd.f32 %v365_v56, %v4573_v51  ;;  %6693 = vst [vmem:[#allocation43_spill] sm:$0xff] %v4583_v62  ;;  %v3375_v56 = vld [vmem:[%s6458_s4 + $0xf0] sm:$0xf0]  ;;  %v3767_v57 = vld [vmem:[%s6458_s4 + $0x1c4] sm:$0xf] }
  0xbb   :  { %6690 = vst [vmem:[#allocation40_spill] sm:$0xff] %v4576_v54 }
  0xbc   :  { %6692 = vst [vmem:[#allocation42_spill] sm:$0xff] %v4581_v58  ;;  %v3487_v58 = vld [vmem:[%s6458_s4 + $0x1d0] sm:$0xf0] }
  0xc0   :  { %v4585_v63 = vpop.f32.mrf.mxu2  ;;  %v283_v5 = vpop.f32.mrf.mxu0 }
  0xc1   :  { %6694 = vst [vmem:[#allocation44_spill] sm:$0xff] %v4585_v63  ;;  %v4587_v0 = vpop.f32.mrf.mxu3  ;;  %v4590_v6 = vadd.f32 %v283_v5, %v4557_v30  ;;  %v312_v11 = vpop.f32.mrf.mxu1  ;;  %v4615_v5 = vor.u32 %v3773_v43, %v3501_v29  ;;  %v3357_v29 = vld [vmem:[%s6458_s4 + $0xc0] sm:$0xf]  ;;  %v3737_v43 = vld [vmem:[%s6458_s4 + $0xcc] sm:$0xf0] }
  0xc2   :  { %6695 = vst [vmem:[#allocation45_spill] sm:$0xff] %v4587_v0  ;;  %v4593_v12 = vadd.f32 %v312_v11, %v4561_v35  ;;  %v4617_v11 = vor.u32 %v3739_v52, %v3375_v56  ;;  %v3485_v52 = vld [vmem:[%s6458_s4 + $0x1c0] sm:$0xf]  ;;  %v4640_v16 = vor.u32 %v3737_v43, %v3357_v29 }
  0xc3   :  { %6696 = vst [vmem:[#allocation46_spill] sm:$0xff] %v4590_v6  ;;  %1168 = vmatpush.bf16.msrb.mxu1 %v4615_v5  ;;  %v3359_v6 = vld [vmem:[%s6458_s4 + $0xd0] sm:$0xf0]  ;;  %v4656_v29 = vor.u32 %v3769_v17, %v3485_v52  ;;  %v3731_v52 = vld [vmem:[%s6458_s4 + $0xa4] sm:$0xf] }
  0xc4   :  { %6697 = vst [vmem:[#allocation47_spill] sm:$0xff] %v4593_v12  ;;  %1181 = vmatpush.bf16.msrb.mxu2 %v4617_v11  ;;  %v3735_v12 = vld [vmem:[%s6458_s4 + $0xc4] sm:$0xf]  ;;  %1156 = vmatpush.bf16.msrb.mxu0 %v4640_v16  ;;  %v3343_v17 = vld [vmem:[%s6458_s4 + $0xb0] sm:$0xf0] }
  0xc5   :  { %6699 = vst [vmem:[#allocation49_spill] sm:$0xff] %v4615_v5  ;;  %v4658_v43 = vor.u32 %v3735_v12, %v3359_v6  ;;  %v3341_v6 = vld [vmem:[%s6458_s4 + $0xa0] sm:$0xf]  ;;  %v3733_v12 = vld [vmem:[%s6458_s4 + $0xac] sm:$0xf0] }
  0xc6   :  { %6700 = vst [vmem:[#allocation50_spill] sm:$0xff] %v4617_v11 }
  0xc7   :  { %6702 = vst [vmem:[#allocation52_spill] sm:$0xff] %v4640_v16  ;;  %1169 = vmatpush.bf16.msrb.mxu1 %v4656_v29 }
  0xc8   :  { %v341_v56 = vpop.f32.mrf.mxu2  ;;  %v4654_v62 = vpop.f32.mrf.mxu0  ;;  %6705 = vst [vmem:[#allocation55_spill] sm:$0xff] %v4656_v29  ;;  %1182 = vmatpush.bf16.msrb.mxu2 %v4658_v43 }
  0xc9   :  { %v4652_v0 = vadd.f32 %v341_v56, %v4571_v45  ;;  %v370_v63 = vpop.f32.mrf.mxu3  ;;  %6704 = vst [vmem:[#allocation54_spill] sm:$0xff] %v4654_v62  ;;  %v4669_v56 = vpop.f32.mrf.mxu1  ;;  %v4672_v62 = vor.u32 %v3767_v57, %v3487_v58  ;;  %v4686_v57 = vor.u32 %v3733_v12, %v3341_v6  ;;  %v3765_v58 = vld [vmem:[%s6458_s4 + $0x1ac] sm:$0xf0]  ;;  %v3763_v6 = vld [vmem:[%s6458_s4 + $0x1a4] sm:$0xf] }
  0xca   :  { %6706 = vst [vmem:[#allocation56_spill] sm:$0xff] %v4658_v43  ;;  %v4667_v54 = vadd.f32 %v370_v63, %v4573_v51  ;;  %v3469_v63 = vld [vmem:[%s6458_s4 + $0x1a0] sm:$0xf]  ;;  %v3471_v12 = vld [vmem:[%s6458_s4 + $0x1b0] sm:$0xf0] }
  0xcb   :  { %6703 = vst [vmem:[#allocation53_spill] sm:$0xff] %v4652_v0  ;;  %1195 = vmatpush.bf16.msrb.mxu3 %v4672_v62  ;;  %1157 = vmatpush.bf16.msrb.mxu0 %v4686_v57  ;;  %v4708_v0 = vor.u32 %v3763_v6, %v3471_v12  ;;  %v3761_v12 = vld [vmem:[%s6458_s4 + $0x18c] sm:$0xf0] }
  0xcc   :  { %6707 = vst [vmem:[#allocation57_spill] sm:$0xff] %v4667_v54  ;;  %v4699_v54 = vor.u32 %v3731_v52, %v3343_v17  ;;  %v3453_v52 = vld [vmem:[%s6458_s4 + $0x180] sm:$0xf] }
  0xcd   :  { %6708 = vst [vmem:[#allocation58_spill] sm:$0xff] %v4669_v56  ;;  %v4697_v56 = vor.u32 %v3765_v58, %v3469_v63  ;;  %v3325_v63 = vld [vmem:[%s6458_s4 + $0x80] sm:$0xf]  ;;  %v3729_v58 = vld [vmem:[%s6458_s4 + $0x8c] sm:$0xf0] }
  0xce   :  { %6709 = vst [vmem:[#allocation59_spill] sm:$0xff] %v4672_v62  ;;  %1183 = vmatpush.bf16.msrb.mxu2 %v4699_v54  ;;  %v4724_v6 = vor.u32 %v3729_v58, %v3325_v63  ;;  %v3759_v63 = vld [vmem:[%s6458_s4 + $0x184] sm:$0xf]  ;;  %v3455_v58 = vld [vmem:[%s6458_s4 + $0x190] sm:$0xf0] }
  0xcf   :  { %6710 = vst [vmem:[#allocation60_spill] sm:$0xff] %v4686_v57  ;;  %1170 = vmatpush.bf16.msrb.mxu1 %v4697_v56  ;;  %1196 = vmatpush.bf16.msrb.mxu3 %v4708_v0 }
  0xd0   :  { %6711 = vst [vmem:[#allocation61_spill] sm:$0xff] %v4697_v56  ;;  %v4721_v17 = vpop.f32.mrf.mxu2  ;;  %v288_v31 = vpop.f32.mrf.mxu0  ;;  %1158 = vmatpush.bf16.msrb.mxu0 %v4724_v6 }
  0xd1   :  { %6712 = vst [vmem:[#allocation62_spill] sm:$0xff] %v4699_v54  ;;  %v4735_v36 = vpop.f32.mrf.mxu3  ;;  %v4748_v27 = vadd.f32 %v288_v31, %v4557_v30  ;;  %v3725_v31 = vld [vmem:[%s6458_s4 + $0x6c] sm:$0xf0] }
  0xd2   :  { %6713 = vst [vmem:[#allocation63_spill] sm:$0xff] %v4708_v0  ;;  %v317_v0 = vpop.f32.mrf.mxu1  ;;  %1184 = vmatpush.bf16.msrb.mxu2 %v4739_v28 }
  0xd3   :  { %6714 = vst [vmem:[#allocation64_spill] sm:$0xff] %v4721_v17  ;;  %v4737_v17 = vor.u32 %v3761_v12, %v3453_v52  ;;  %v4754_v52 = vadd.f32 %v317_v0, %v4561_v35  ;;  %v4768_v0 = vor.u32 %v3725_v31, %v3309_v40  ;;  %v3757_v12 = vld [vmem:[%s6458_s4 + $0x16c] sm:$0xf0]  ;;  %v3755_v40 = vld [vmem:[%s6458_s4 + $0x164] sm:$0xf] }
  0xd4   :  { %6715 = vst [vmem:[#allocation65_spill] sm:$0xff] %v4724_v6  ;;  %v3439_v31 = vld [vmem:[%s6458_s4 + $0x170] sm:$0xf0] }
  0xd5   :  { %6716 = vst [vmem:[#allocation66_spill] sm:$0xff] %v4735_v36  ;;  %v4751_v36 = vor.u32 %v3759_v63, %v3455_v58  ;;  %1171 = vmatpush.bf16.msrb.mxu1 %v4737_v17  ;;  %v3723_v63 = vld [vmem:[%s6458_s4 + $0x64] sm:$0xf]  ;;  %v3311_v58 = vld [vmem:[%s6458_s4 + $0x70] sm:$0xf0]  ;;  %1159 = vmatpush.bf16.msrb.mxu0 %v4768_v0 }
  0xd6   :  { %6717 = vst [vmem:[#allocation67_spill] sm:$0xff] %v4737_v17  ;;  %v3423_v6 = vld [vmem:[%s6458_s4 + $0x150] sm:$0xf0] }
  0xd7   :  { %6719 = vst [vmem:[#allocation69_spill] sm:$0xff] %v4748_v27  ;;  %1197 = vmatpush.bf16.msrb.mxu3 %v4751_v36  ;;  %v4781_v27 = vor.u32 %v3723_v63, %v3311_v58  ;;  %v3421_v63 = vld [vmem:[%s6458_s4 + $0x140] sm:$0xf] }
  0xd8   :  { %6720 = vst [vmem:[#allocation70_spill] sm:$0xff] %v4751_v36  ;;  %v4790_v36 = vor.u32 %v3755_v40, %v3439_v31  ;;  %v346_v58 = vpop.f32.mrf.mxu2  ;;  %v3753_v31 = vld [vmem:[%s6458_s4 + $0x14c] sm:$0xf0]  ;;  %v4818_v28 = vpop.f32.mrf.mxu0 }
  0xd9   :  { %6721 = vst [vmem:[#allocation71_spill] sm:$0xff] %v4754_v52  ;;  %v4779_v52 = vor.u32 %v3757_v12, %v3437_v44  ;;  %1185 = vmatpush.bf16.msrb.mxu2 %v4781_v27  ;;  %v3293_v44 = vld [vmem:[%s6458_s4 + $0x40] sm:$0xf]  ;;  %v3721_v12 = vld [vmem:[%s6458_s4 + $0x4c] sm:$0xf0]  ;;  %v375_v17 = vpop.f32.mrf.mxu3 }
  0xda   :  { %6722 = vst [vmem:[#allocation72_spill] sm:$0xff] %v4768_v0  ;;  %v4804_v40 = vor.u32 %v3721_v12, %v3293_v44  ;;  %v4816_v0 = vadd.f32 %v346_v58, %v4571_v45  ;;  %v4820_v44 = vor.u32 %v3753_v31, %v3421_v63  ;;  %v4831_v56 = vadd.f32 %v375_v17, %v4573_v51  ;;  %v4833_v58 = vpop.f32.mrf.mxu1  ;;  %v3405_v17 = vld [vmem:[%s6458_s4 + $0x120] sm:$0xf]  ;;  %v3715_v63 = vld [vmem:[%s6458_s4 + $0x24] sm:$0xf] }
  0xdb   :  { %6723 = vst [vmem:[#allocation73_spill] sm:$0xff] %v4779_v52  ;;  %1172 = vmatpush.bf16.msrb.mxu1 %v4779_v52  ;;  %1198 = vmatpush.bf16.msrb.mxu3 %v4790_v36  ;;  %v3719_v52 = vld [vmem:[%s6458_s4 + $0x44] sm:$0xf]  ;;  %v3279_v31 = vld [vmem:[%s6458_s4 + $0x30] sm:$0xf0] }
  0xdc   :  { %6724 = vst [vmem:[#allocation74_spill] sm:$0xff] %v4781_v27  ;;  %v3295_v27 = vld [vmem:[%s6458_s4 + $0x50] sm:$0xf0]  ;;  %1160 = vmatpush.bf16.msrb.mxu0 %v4804_v40 }
  0xdd   :  { %6725 = vst [vmem:[#allocation75_spill] sm:$0xff] %v4790_v36  ;;  %v4822_v12 = vor.u32 %v3719_v52, %v3295_v27  ;;  %v3751_v36 = vld [vmem:[%s6458_s4 + $0x144] sm:$0xf]  ;;  %v3277_v27 = vld [vmem:[%s6458_s4 + $0x20] sm:$0xf] }
  0xde   :  { %6726 = vst [vmem:[#allocation76_spill] sm:$0xff] %v4804_v40  ;;  %v3717_v52 = vld [vmem:[%s6458_s4 + $0x2c] sm:$0xf0] }
  0xdf   :  { %6727 = vst [vmem:[#allocation77_spill] sm:$0xff] %v4816_v0  ;;  %1173 = vmatpush.bf16.msrb.mxu1 %v4820_v44  ;;  %1186 = vmatpush.bf16.msrb.mxu2 %v4822_v12 }
  0xe0   :  { %6728 = vst [vmem:[#allocation78_spill] sm:$0xff] %v4818_v28  ;;  %v4836_v28 = vor.u32 %v3751_v36, %v3423_v6  ;;  %v4850_v36 = vor.u32 %v3717_v52, %v3277_v27  ;;  %v3749_v6 = vld [vmem:[%s6458_s4 + $0x12c] sm:$0xf0]  ;;  %v3747_v27 = vld [vmem:[%s6458_s4 + $0x124] sm:$0xf] }
  0xe1   :  { %6729 = vst [vmem:[#allocation79_spill] sm:$0xff] %v4820_v44  ;;  %v3407_v52 = vld [vmem:[%s6458_s4 + $0x130] sm:$0xf0] }
  0xe2   :  { %6730 = vst [vmem:[#allocation80_spill] sm:$0xff] %v4822_v12  ;;  %1199 = vmatpush.bf16.msrb.mxu3 %v4836_v28  ;;  %1161 = vmatpush.bf16.msrb.mxu0 %v4850_v36  ;;  %v4872_v0 = vor.u32 %v3747_v27, %v3407_v52  ;;  %v4887_v27 = vpop.f32.mrf.mxu2  ;;  %v704_v12 = vpop.f32.mrf.mxu1 }
  0xe3   :  { %6731 = vst [vmem:[#allocation81_spill] sm:$0xff] %v4831_v56  ;;  %v4863_v56 = vor.u32 %v3715_v63, %v3279_v31  ;;  %v3389_v63 = vld [vmem:[%s6458_s4 + $0x100] sm:$0xf]  ;;  %v274_v31 = vadd.f32 %v4542_v19, %v4557_v30  ;;  %v303_v19 = vadd.f32 %v4544_v23, %v4561_v35  ;;  %v691_v30 = vpop.f32.mrf.mxu0 }
  0xe4   :  { %6732 = vst [vmem:[#allocation82_spill] sm:$0xff] %v4833_v58  ;;  %v4861_v58 = vor.u32 %v3749_v6, %v3405_v17  ;;  %v3261_v17 = vld [vmem:[%s6458_s4] sm:$0xf]  ;;  %v3713_v6 = vld [vmem:[%s6458_s4 + $0xc] sm:$0xf0] }
  0xe5   :  { %6733 = vst [vmem:[#allocation83_spill] sm:$0xff] %v4836_v28  ;;  %1187 = vmatpush.bf16.msrb.mxu2 %v4863_v56  ;;  %v4890_v52 = vor.u32 %v3713_v6, %v3261_v17  ;;  %v3391_v28 = vld [vmem:[%s6458_s4 + $0x110] sm:$0xf0]  ;;  %v734_v44 = vadd.f32 %v691_v30, %v274_v31  ;;  %v361_v30 = vadd.f32 %v4548_v25, %v4573_v51 }
  0xe6   :  { %6734 = vst [vmem:[#allocation84_spill] sm:$0xff] %v4850_v36  ;;  %1174 = vmatpush.bf16.msrb.mxu1 %v4861_v58  ;;  %1200 = vmatpush.bf16.msrb.mxu3 %v4872_v0  ;;  %v3263_v36 = vld [vmem:[%s6458_s4 + $0x10] sm:$0xf0] }
  0xe7   :  { %6735 = vst [vmem:[#allocation85_spill] sm:$0xff] %v4861_v58  ;;  %v3745_v58 = vld [vmem:[%s6458_s4 + $0x10c] sm:$0xf0]  ;;  %1162 = vmatpush.bf16.msrb.mxu0 %v4890_v52 }
  0xe8   :  { %6736 = vst [vmem:[#allocation86_spill] sm:$0xff] %v4863_v56  ;;  %v3711_v56 = vld [vmem:[%s6458_s4 + $0x4] sm:$0xf]  ;;  %v4905_v17 = vor.u32 %v3745_v58, %v3389_v63 }
  0xe9   :  { %6737 = vst [vmem:[#allocation87_spill] sm:$0xff] %v4872_v0  ;;  %v4907_v6 = vor.u32 %v3711_v56, %v3263_v36  ;;  %v3743_v0 = vld [vmem:[%s6458_s4 + $0x104] sm:$0xf]  ;;  %v738_v56 = vmul.f32 0.5, %v734_v44  ;;  %v332_v36 = vadd.f32 %v4546_v24, %v4571_v45 }
  0xea   :  { %6738 = vst [vmem:[#allocation88_spill] sm:$0xff] %v4887_v27  ;;  %v4903_v27 = vpop.f32.mrf.mxu3  ;;  %v4916_v23 = vor.u32 %v3743_v0, %v3391_v28  ;;  %1175 = vmatpush.bf16.msrb.mxu1 %v4905_v17  ;;  %v717_v63 = vpop.f32.mrf.mxu2 }
  0xeb   :  { %6739 = vst [vmem:[#allocation89_spill] sm:$0xff] %v4890_v52  ;;  %1188 = vmatpush.bf16.msrb.mxu2 %v4907_v6  ;;  %3808 = vtanh.f32 %v738_v56  ;;  %v736_v28 = vadd.f32 %v717_v63, %v332_v36 }
  0xec   :  { %6740 = vst [vmem:[#allocation90_spill] sm:$0xff] %v4903_v27  ;;  %v735_v27 = vadd.f32 %v704_v12, %v303_v19  ;;  %1201 = vmatpush.bf16.msrb.mxu3 %v4916_v23  ;;  %v693_v12 = vpop.f32.mrf.mxu0  ;;  %v706_v19 = vpop.f32.mrf.mxu1 }
  0xed   :  { %6741 = vst [vmem:[#allocation91_spill] sm:$0xff] %v4905_v17  ;;  %v3511_v12 = vld [vmem:[%s6458_s4 + $0x1f8] sm:$0xf0] }
  0xee   :  { %6742 = vst [vmem:[#allocation92_spill] sm:$0xff] %v4907_v6  ;;  %v742_v58 = vmul.f32 0.5, %v735_v27 }
  0xef   :  { %6743 = vst [vmem:[#allocation93_spill] sm:$0xff] %v4916_v23 }
  0xf0   :  { %3810 = vtanh.f32 %v742_v58 }
  0xf1   :  { %3812 = vtanh.f32 %v736_v28  ;;  %v3809_v35 = vpop.eup %3808  ;;  %v3383_v28 = vld [vmem:[%s6458_s4 + $0xf8] sm:$0xf0] }
  0xf2   :  { %v730_v0 = vpop.f32.mrf.mxu3  ;;  %v740_v23 = vmul.f32 0.5, %v3809_v35  ;;  %v719_v24 = vpop.f32.mrf.mxu2  ;;  %v3381_v35 = vld [vmem:[%s6458_s4 + $0xe8] sm:$0xf] }
  0xf3   :  { %v737_v31 = vadd.f32 %v730_v0, %v361_v30  ;;  %v3772_v0 = vld [vmem:[%s6458_s4 + $0x1ec] sm:$0xf] }
  0xf4   :  { %v741_v56 = vadd.f32 0.5, %v740_v23 }
  0xf5   :  { %v747_v44 = vmul.f32 0.5, %v737_v31 }
  0xf6   :  { %v3811_v17 = vpop.eup %3810 }
  0xf7   :  { %v744_v27 = vmul.f32 0.5, %v3811_v17  ;;  %3814 = vtanh.f32 %v747_v44  ;;  %v3813_v58 = vpop.eup %3812  ;;  %v3742_v17 = vld [vmem:[%s6458_s4 + $0xf4] sm:$0xf0] }
  0xf8   :  { %v752_v25 = vmul.f32 %v3813_v58, %v741_v56  ;;  %v4954_v19 = vor.u32 %v3742_v17, %v3381_v35  ;;  %v3738_v56 = vld [vmem:[%s6458_s4 + $0xd4] sm:$0xf0]  ;;  %v4966_v58 = vor.u32 %v3772_v0, %v3511_v12  ;;  %v3367_v35 = vld [vmem:[%s6458_s4 + $0xd8] sm:$0xf0]  ;;  %v3768_v17 = vld [vmem:[%s6458_s4 + $0x1cc] sm:$0xf] }
  0xf9   :  { %v745_v6 = vadd.f32 0.5, %v744_v27  ;;  %v3365_v27 = vld [vmem:[%s6458_s4 + $0xc8] sm:$0xf] }
  0xfa   :  { %v732_v45 = vpop.f32.mrf.mxu3  ;;  %6744 = vst [vmem:[#allocation94_spill] sm:$0xff] %v4954_v19  ;;  %v3477_v12 = vld [vmem:[%s6458_s4 + $0x1a8] sm:$0xf] }
  0xfb   :  { %v751_v52 = vmul.f32 0.0, %v745_v6  ;;  %v3509_v45 = vld [vmem:[%s6458_s4 + $0x1e8] sm:$0xf]  ;;  %6747 = vst [vmem:[#allocation97_spill] sm:$0xff] %v4966_v58 }
  0xfd   :  { %v3815_v51 = vpop.eup %3814  ;;  %v4925_v36 = vadd.f32 %v752_v25, %v751_v52  ;;  %v3774_v52 = vld [vmem:[%s6458_s4 + $0x1f4] sm:$0xf0]  ;;  %v3493_v25 = vld [vmem:[%s6458_s4 + $0x1c8] sm:$0xf] }
  0xfe   :  { %v749_v30 = vmul.f32 0.5, %v3815_v51  ;;  %v3740_v51 = vld [vmem:[%s6458_s4 + $0xec] sm:$0xf]  ;;  %v4956_v44 = vor.u32 %v3774_v52, %v3509_v45  ;;  %v4992_v45 = vor.u32 %v3738_v56, %v3365_v27  ;;  %v3766_v27 = vld [vmem:[%s6458_s4 + $0x1b4] sm:$0xf0] }
  0xff   :  { %3816 = vtanh.f32 %v4925_v36  ;;  %v4964_v24 = vor.u32 %v3740_v51, %v3383_v28  ;;  %v3349_v51 = vld [vmem:[%s6458_s4 + $0xa8] sm:$0xf]  ;;  %v3732_v56 = vld [vmem:[%s6458_s4 + $0xac] sm:$0xf] }
 0x100   :  { %v750_v63 = vadd.f32 0.5, %v749_v30  ;;  %6745 = vst [vmem:[#allocation95_spill] sm:$0xff] %v4956_v44  ;;  %v3770_v30 = vld [vmem:[%s6458_s4 + $0x1d4] sm:$0xf0] }
 0x101   :  { %6746 = vst [vmem:[#allocation96_spill] sm:$0xff] %v4964_v24  ;;  %v4994_v52 = vor.u32 %v3770_v30, %v3493_v25  ;;  %v3351_v25 = vld [vmem:[%s6458_s4 + $0xb8] sm:$0xf0]  ;;  %v3764_v30 = vld [vmem:[%s6458_s4 + $0x1ac] sm:$0xf] }
 0x102   :  { %6748 = vst [vmem:[#allocation98_spill] sm:$0xff] %v4992_v45 }
 0x103   :  { %6749 = vst [vmem:[#allocation99_spill] sm:$0xff] %v4994_v52 }
 0x105   :  { %v3817_v23 = vpop.eup %3816 }
 0x106   :  { %v755_v6 = vmul.f32 %v3817_v23, %v750_v63  ;;  %v3736_v63 = vld [vmem:[%s6458_s4 + $0xcc] sm:$0xf]  ;;  %v3495_v23 = vld [vmem:[%s6458_s4 + $0x1d8] sm:$0xf0] }
 0x107   :  { %v5004_v28 = vor.u32 %v3736_v63, %v3367_v35  ;;  %v5006_v0 = vor.u32 %v3768_v17, %v3495_v23  ;;  %v3479_v63 = vld [vmem:[%s6458_s4 + $0x1b8] sm:$0xf0]  ;;  %v5030_v17 = vor.u32 %v3766_v27, %v3477_v12  ;;  %v3333_v23 = vld [vmem:[%s6458_s4 + $0x88] sm:$0xf]  ;;  %v3728_v12 = vld [vmem:[%s6458_s4 + $0x8c] sm:$0xf] }
 0x108   :  { %v4952_v31 = vpack.c.bf16 %v755_v6, %v755_v6  ;;  %v3734_v6 = vld [vmem:[%s6458_s4 + $0xb4] sm:$0xf0]  ;;  %v3335_v27 = vld [vmem:[%s6458_s4 + $0x98] sm:$0xf0] }
 0x109   :  { %6750 = vst [vmem:[#allocation100_spill] sm:$0xff] %v5004_v28  ;;  %v5028_v35 = vor.u32 %v3734_v6, %v3349_v51  ;;  %v3461_v51 = vld [vmem:[%s6458_s4 + $0x188] sm:$0xf]  ;;  %v3762_v6 = vld [vmem:[%s6458_s4 + $0x194] sm:$0xf0] }
 0x10a   :  { %769 = vmatmul.bf16.vlgmr.msra.gmra.mxu0 %v4952_v31  ;;  %782 = vmatmul.bf16.vlgmr.msra.gmra.mxu1 %v4952_v31  ;;  %6751 = vst [vmem:[#allocation101_spill] sm:$0xff] %v5006_v0 }
 0x10b   :  { %795 = vmatmul.bf16.vlgmr.msra.gmra.mxu2 %v4952_v31  ;;  %808 = vmatmul.bf16.vlgmr.msra.gmra.mxu3 %v4952_v31  ;;  %6752 = vst [vmem:[#allocation102_spill] sm:$0xff] %v5028_v35 }
 0x10c   :  { %1207 = vmatpush.bf16.msra.mxu0 %v4954_v19  ;;  %1220 = vmatpush.bf16.msra.mxu1 %v4956_v44  ;;  %6753 = vst [vmem:[#allocation103_spill] sm:$0xff] %v5030_v17  ;;  %v5040_v44 = vor.u32 %v3732_v56, %v3351_v25  ;;  %v3760_v56 = vld [vmem:[%s6458_s4 + $0x18c] sm:$0xf]  ;;  %v3463_v25 = vld [vmem:[%s6458_s4 + $0x198] sm:$0xf0] }
 0x10d   :  { %1233 = vmatpush.bf16.msra.mxu2 %v4964_v24  ;;  %1246 = vmatpush.bf16.msra.mxu3 %v4966_v58  ;;  %v3730_v58 = vld [vmem:[%s6458_s4 + $0x94] sm:$0xf0] }
 0x10e   :  { %6754 = vst [vmem:[#allocation104_spill] sm:$0xff] %v5040_v44 }
 0x110   :  { %1208 = vmatpush.bf16.msra.mxu0 %v4992_v45  ;;  %1221 = vmatpush.bf16.msra.mxu1 %v4994_v52  ;;  %v5042_v45 = vor.u32 %v3764_v30, %v3479_v63  ;;  %v5064_v30 = vor.u32 %v3730_v58, %v3333_v23  ;;  %v5066_v63 = vor.u32 %v3762_v6, %v3461_v51  ;;  %v3726_v52 = vld [vmem:[%s6458_s4 + $0x74] sm:$0xf0]  ;;  %v3445_v58 = vld [vmem:[%s6458_s4 + $0x168] sm:$0xf]  ;;  %v3724_v51 = vld [vmem:[%s6458_s4 + $0x6c] sm:$0xf] }
 0x111   :  { %1234 = vmatpush.bf16.msra.mxu2 %v5004_v28  ;;  %1247 = vmatpush.bf16.msra.mxu3 %v5006_v0  ;;  %v3317_v0 = vld [vmem:[%s6458_s4 + $0x68] sm:$0xf]  ;;  %v5076_v28 = vor.u32 %v3728_v12, %v3335_v27  ;;  %v3758_v23 = vld [vmem:[%s6458_s4 + $0x174] sm:$0xf0]  ;;  %v3319_v6 = vld [vmem:[%s6458_s4 + $0x78] sm:$0xf0] }
 0x112   :  { %6755 = vst [vmem:[#allocation105_spill] sm:$0xff] %v5042_v45  ;;  %v3756_v12 = vld [vmem:[%s6458_s4 + $0x16c] sm:$0xf]  ;;  %v3447_v27 = vld [vmem:[%s6458_s4 + $0x178] sm:$0xf0] }
 0x113   :  { %6756 = vst [vmem:[#allocation106_spill] sm:$0xff] %v5064_v30 }
 0x114   :  { %1209 = vmatpush.bf16.msra.mxu0 %v5028_v35  ;;  %1222 = vmatpush.bf16.msra.mxu1 %v5030_v17  ;;  %6757 = vst [vmem:[#allocation107_spill] sm:$0xff] %v5066_v63  ;;  %v5078_v35 = vor.u32 %v3760_v56, %v3463_v25  ;;  %v5100_v56 = vor.u32 %v3726_v52, %v3317_v0  ;;  %v3722_v17 = vld [vmem:[%s6458_s4 + $0x54] sm:$0xf0]  ;;  %v3429_v52 = vld [vmem:[%s6458_s4 + $0x148] sm:$0xf] }
 0x115   :  { %1235 = vmatpush.bf16.msra.mxu2 %v5040_v44  ;;  %1248 = vmatpush.bf16.msra.mxu3 %v5042_v45  ;;  %6758 = vst [vmem:[#allocation108_spill] sm:$0xff] %v5076_v28  ;;  %v5102_v25 = vor.u32 %v3758_v23, %v3445_v58  ;;  %v3301_v45 = vld [vmem:[%s6458_s4 + $0x48] sm:$0xf]  ;;  %v5112_v44 = vor.u32 %v3724_v51, %v3319_v6  ;;  %v3754_v0 = vld [vmem:[%s6458_s4 + $0x154] sm:$0xf0]  ;;  %v6764_v23 = vmov 0  }
 0x116   :  { %6759 = vst [vmem:[#allocation109_spill] sm:$0xff] %v5078_v35  ;;  %v3720_v58 = vld [vmem:[%s6458_s4 + $0x4c] sm:$0xf]  ;;  %v3303_v51 = vld [vmem:[%s6458_s4 + $0x58] sm:$0xf0] }
 0x117   :  { %6760 = vst [vmem:[#allocation110_spill] sm:$0xff] %v5100_v56  ;;  %v3752_v6 = vld [vmem:[%s6458_s4 + $0x14c] sm:$0xf]  ;;  %v5152_v24 = vor.u32 %v3720_v58, %v3303_v51  ;;  %v3415_v51 = vld [vmem:[%s6458_s4 + $0x138] sm:$0xf0] }
 0x118   :  { %1210 = vmatpush.bf16.msra.mxu0 %v5064_v30  ;;  %1223 = vmatpush.bf16.msra.mxu1 %v5066_v63  ;;  %6761 = vst [vmem:[#allocation111_spill] sm:$0xff] %v5102_v25  ;;  %v5114_v30 = vor.u32 %v3756_v12, %v3447_v27  ;;  %v3431_v12 = vld [vmem:[%s6458_s4 + $0x158] sm:$0xf0]  ;;  %v5140_v27 = vor.u32 %v3722_v17, %v3301_v45  ;;  %v3285_v63 = vld [vmem:[%s6458_s4 + $0x28] sm:$0xf] }
 0x119   :  { %1236 = vmatpush.bf16.msra.mxu2 %v5076_v28  ;;  %1249 = vmatpush.bf16.msra.mxu3 %v5078_v35  ;;  %6762 = vst [vmem:[#allocation112_spill] sm:$0xff] %v5112_v44  ;;  %v5142_v35 = vor.u32 %v3754_v0, %v3429_v52  ;;  %v3718_v28 = vld [vmem:[%s6458_s4 + $0x34] sm:$0xf0]  ;;  %v3413_v45 = vld [vmem:[%s6458_s4 + $0x128] sm:$0xf] }
 0x11a   :  { %6763 = vst [vmem:[#allocation113_spill] sm:$0xff] %v5114_v30  ;;  %1163 = vmatmul.bf16.vlgmr.msrb.gmra.mxu0 %v4952_v31  ;;  %1176 = vmatmul.bf16.vlgmr.msrb.gmra.mxu1 %v6764_v23  ;;  %v3750_v17 = vld [vmem:[%s6458_s4 + $0x134] sm:$0xf0]  ;;  %v3716_v52 = vld [vmem:[%s6458_s4 + $0x2c] sm:$0xf] }
 0x11b   :  { %1189 = vmatmul.bf16.vlgmr.msrb.gmra.mxu2 %v4952_v31  ;;  %1202 = vmatmul.bf16.vlgmr.msrb.gmra.mxu3 %v6764_v23  ;;  %6765 = vst [vmem:[#allocation114_spill] sm:$0xff] %v5140_v27  ;;  %v3287_v0 = vld [vmem:[%s6458_s4 + $0x38] sm:$0xf0]  ;;  %v3748_v58 = vld [vmem:[%s6458_s4 + $0x12c] sm:$0xf] }
 0x11c   :  { %1211 = vmatpush.bf16.msra.mxu0 %v5100_v56  ;;  %1224 = vmatpush.bf16.msra.mxu1 %v5102_v25  ;;  %6766 = vst [vmem:[#allocation115_spill] sm:$0xff] %v5142_v35  ;;  %v5154_v56 = vor.u32 %v3752_v6, %v3431_v12  ;;  %v5176_v6 = vor.u32 %v3718_v28, %v3285_v63  ;;  %v3714_v25 = vld [vmem:[%s6458_s4 + $0x14] sm:$0xf0]  ;;  %v3397_v28 = vld [vmem:[%s6458_s4 + $0x108] sm:$0xf] }
 0x11d   :  { %1237 = vmatpush.bf16.msra.mxu2 %v5112_v44  ;;  %1250 = vmatpush.bf16.msra.mxu3 %v5114_v30  ;;  %v5178_v12 = vor.u32 %v3750_v17, %v3413_v45  ;;  %v3269_v30 = vld [vmem:[%s6458_s4 + $0x8] sm:$0xf]  ;;  %v5188_v44 = vor.u32 %v3716_v52, %v3287_v0  ;;  %v3746_v63 = vld [vmem:[%s6458_s4 + $0x114] sm:$0xf0]  ;;  %v3712_v45 = vld [vmem:[%s6458_s4 + $0xc] sm:$0xf] }
 0x11e   :  { %6767 = vst [vmem:[#allocation116_spill] sm:$0xff] %v5154_v56  ;;  %v3271_v17 = vld [vmem:[%s6458_s4 + $0x18] sm:$0xf0]  ;;  %v3744_v52 = vld [vmem:[%s6458_s4 + $0x10c] sm:$0xf] }
 0x11f   :  { %v3399_v0 = vld [vmem:[%s6458_s4 + $0x118] sm:$0xf0] }
 0x120   :  { %1212 = vmatpush.bf16.msra.mxu0 %v5140_v27  ;;  %1225 = vmatpush.bf16.msra.mxu1 %v5142_v35  ;;  %v5190_v27 = vor.u32 %v3748_v58, %v3415_v51  ;;  %v5212_v58 = vor.u32 %v3714_v25, %v3269_v30  ;;  %v5214_v51 = vor.u32 %v3746_v63, %v3397_v28  ;;  %v6769_v30 = vld [vmem:[#allocation63_spill] sm:$0xff]  ;;  %v6770_v25 = vld [vmem:[#allocation65_spill] sm:$0xff]  ;;  %v6773_v63 = vld [vmem:[#allocation70_spill] sm:$0xff] }
 0x121   :  { %1238 = vmatpush.bf16.msra.mxu2 %v5152_v24  ;;  %1251 = vmatpush.bf16.msra.mxu3 %v5154_v56  ;;  %v5218_v56 = vor.u32 %v3712_v45, %v3271_v17  ;;  %v5220_v35 = vor.u32 %v3744_v52, %v3399_v0  ;;  %v6772_v28 = vld [vmem:[#allocation67_spill] sm:$0xff]  ;;  %v6774_v45 = vld [vmem:[#allocation72_spill] sm:$0xff]  ;;  %v6775_v17 = vld [vmem:[#allocation74_spill] sm:$0xff] }
 0x122   :  { %v6776_v52 = vld [vmem:[#allocation73_spill] sm:$0xff]  ;;  %v6777_v0 = vld [vmem:[#allocation75_spill] sm:$0xff] }
 0x124   :  { %1213 = vmatpush.bf16.msra.mxu0 %v5176_v6  ;;  %1226 = vmatpush.bf16.msra.mxu1 %v5178_v12 }
 0x125   :  { %1239 = vmatpush.bf16.msra.mxu2 %v5188_v44  ;;  %1252 = vmatpush.bf16.msra.mxu3 %v5190_v27 }
 0x128   :  { %1214 = vmatpush.bf16.msra.mxu0 %v5212_v58  ;;  %1227 = vmatpush.bf16.msra.mxu1 %v5214_v51 }
 0x129   :  { %1240 = vmatpush.bf16.msra.mxu2 %v5218_v56  ;;  %1253 = vmatpush.bf16.msra.mxu3 %v5220_v35 }
 0x12b   :  { %1215 = vmatmul.bf16.vlgmr.msra.gmra.mxu0 %v4952_v31  ;;  %1228 = vmatmul.bf16.vlgmr.msra.gmra.mxu1 %v6764_v23 }
 0x12c   :  { %1283 = vmatpush.bf16.msrb.mxu0 %v4221_v37  ;;  %1241 = vmatmul.bf16.vlgmr.msra.gmra.mxu2 %v4952_v31  ;;  %v6768_v31 = vld [vmem:[#allocation61_spill] sm:$0xff] }
 0x12d   :  { %1309 = vmatpush.bf16.msrb.mxu2 %v4249_v47  ;;  %1254 = vmatmul.bf16.vlgmr.msra.gmra.mxu3 %v6764_v23  ;;  %v6771_v23 = vld [vmem:[#allocation68_spill] sm:$0xff] }
 0x12e   :  { %1296 = vmatpush.bf16.msrb.mxu1 %v4232_v41  ;;  %1322 = vmatpush.bf16.msrb.mxu3 %v4252_v48 }
 0x130   :  { %1284 = vmatpush.bf16.msrb.mxu0 %v4254_v49 }
 0x131   :  { %1310 = vmatpush.bf16.msrb.mxu2 %v4284_v59 }
 0x132   :  { %1297 = vmatpush.bf16.msrb.mxu1 %v4266_v53  ;;  %1323 = vmatpush.bf16.msrb.mxu3 %v4288_v60 }
 0x134   :  { %1285 = vmatpush.bf16.msrb.mxu0 %v4290_v61 }
 0x135   :  { %1311 = vmatpush.bf16.msrb.mxu2 %v4320_v7 }
 0x136   :  { %1298 = vmatpush.bf16.msrb.mxu1 %v4302_v1  ;;  %1324 = vmatpush.bf16.msrb.mxu3 %v4324_v8 }
 0x138   :  { %1286 = vmatpush.bf16.msrb.mxu0 %v4326_v9 }
 0x139   :  { %1312 = vmatpush.bf16.msrb.mxu2 %v4359_v20 }
 0x13a   :  { %1299 = vmatpush.bf16.msrb.mxu1 %v4338_v13  ;;  %1325 = vmatpush.bf16.msrb.mxu3 %v4363_v21 }
 0x13c   :  { %1287 = vmatpush.bf16.msrb.mxu0 %v4365_v22 }
 0x13d   :  { %1313 = vmatpush.bf16.msrb.mxu2 %v4395_v32 }
 0x13e   :  { %1300 = vmatpush.bf16.msrb.mxu1 %v4377_v26  ;;  %1326 = vmatpush.bf16.msrb.mxu3 %v4399_v33 }
 0x140   :  { %1288 = vmatpush.bf16.msrb.mxu0 %v4401_v34 }
 0x141   :  { %1314 = vmatpush.bf16.msrb.mxu2 %v4419_v42 }
 0x142   :  { %1301 = vmatpush.bf16.msrb.mxu1 %v4410_v38  ;;  %1327 = vmatpush.bf16.msrb.mxu3 %v4432_v46 }
 0x144   :  { %1289 = vmatpush.bf16.msrb.mxu0 %v4434_v50 }
 0x145   :  { %1315 = vmatpush.bf16.msrb.mxu2 %v4467_v2 }
 0x146   :  { %1302 = vmatpush.bf16.msrb.mxu1 %v4446_v55  ;;  %1328 = vmatpush.bf16.msrb.mxu3 %v4471_v3 }
 0x148   :  { %1290 = vmatpush.bf16.msrb.mxu0 %v4473_v4 }
 0x149   :  { %1316 = vmatpush.bf16.msrb.mxu2 %v4491_v14 }
 0x14a   :  { %1303 = vmatpush.bf16.msrb.mxu1 %v4482_v10  ;;  %1329 = vmatpush.bf16.msrb.mxu3 %v4495_v15 }
 0x14c   :  { %1358 = vmatpush.bf16.msra.mxu0 %v4604_v39 }
 0x14d   :  { %1384 = vmatpush.bf16.msra.mxu2 %v4617_v11 }
 0x14e   :  { %1371 = vmatpush.bf16.msra.mxu1 %v4615_v5  ;;  %1397 = vmatpush.bf16.msra.mxu3 %v4626_v18  ;;  %v6795_v18 = vld [vmem:[#allocation39_spill] sm:$0xff] }
 0x150   :  { %1359 = vmatpush.bf16.msra.mxu0 %v4640_v16  ;;  %v6794_v16 = vld [vmem:[#allocation33_spill] sm:$0xff] }
 0x151   :  { %1385 = vmatpush.bf16.msra.mxu2 %v4658_v43 }
 0x152   :  { %1372 = vmatpush.bf16.msra.mxu1 %v4656_v29  ;;  %1398 = vmatpush.bf16.msra.mxu3 %v4672_v62 }
 0x154   :  { %1360 = vmatpush.bf16.msra.mxu0 %v4686_v57  ;;  %v6792_v57 = vld [vmem:[#allocation31_spill] sm:$0xff] }
 0x155   :  { %1386 = vmatpush.bf16.msra.mxu2 %v4699_v54 }
 0x156   :  { %1373 = vmatpush.bf16.msra.mxu1 %v6768_v31  ;;  %1399 = vmatpush.bf16.msra.mxu3 %v6769_v30  ;;  %v6778_v31 = vld [vmem:[#allocation80_spill] sm:$0xff]  ;;  %v6779_v30 = vld [vmem:[#allocation79_spill] sm:$0xff] }
 0x158   :  { %1361 = vmatpush.bf16.msra.mxu0 %v6770_v25  ;;  %v6780_v25 = vld [vmem:[#allocation83_spill] sm:$0xff] }
 0x159   :  { %1387 = vmatpush.bf16.msra.mxu2 %v6771_v23  ;;  %v6781_v23 = vld [vmem:[#allocation84_spill] sm:$0xff] }
 0x15a   :  { %1374 = vmatpush.bf16.msra.mxu1 %v6772_v28  ;;  %1400 = vmatpush.bf16.msra.mxu3 %v6773_v63  ;;  %v6782_v28 = vld [vmem:[#allocation86_spill] sm:$0xff]  ;;  %v6783_v63 = vld [vmem:[#allocation85_spill] sm:$0xff] }
 0x15c   :  { %1362 = vmatpush.bf16.msra.mxu0 %v6774_v45  ;;  %v6784_v45 = vld [vmem:[#allocation87_spill] sm:$0xff] }
 0x15d   :  { %1388 = vmatpush.bf16.msra.mxu2 %v6775_v17  ;;  %v6785_v17 = vld [vmem:[#allocation89_spill] sm:$0xff] }
 0x15e   :  { %1375 = vmatpush.bf16.msra.mxu1 %v6776_v52  ;;  %1401 = vmatpush.bf16.msra.mxu3 %v6777_v0  ;;  %v6786_v52 = vld [vmem:[#allocation92_spill] sm:$0xff]  ;;  %v6787_v0 = vld [vmem:[#allocation91_spill] sm:$0xff] }
 0x160   :  { %1363 = vmatpush.bf16.msra.mxu0 %v4804_v40  ;;  %v6788_v40 = vld [vmem:[#allocation93_spill] sm:$0xff] }
 0x161   :  { %1389 = vmatpush.bf16.msra.mxu2 %v6778_v31  ;;  %v6789_v31 = vld [vmem:[#allocation32_spill] sm:$0xff] }
 0x162   :  { %1376 = vmatpush.bf16.msra.mxu1 %v6779_v30  ;;  %1402 = vmatpush.bf16.msra.mxu3 %v6780_v25  ;;  %v6790_v30 = vld [vmem:[#allocation30_spill] sm:$0xff] }
 0x163   :  { %v276_v54 = vadd.f32 %v6790_v30, %v6789_v31  ;;  %v6791_v25 = vld [vmem:[#allocation34_spill] sm:$0xff] }
 0x164   :  { %1364 = vmatpush.bf16.msra.mxu0 %v6781_v23  ;;  %v305_v23 = vadd.f32 %v6792_v57, %v6791_v25 }
 0x165   :  { %1390 = vmatpush.bf16.msra.mxu2 %v6782_v28 }
 0x166   :  { %1377 = vmatpush.bf16.msra.mxu1 %v6783_v63  ;;  %1403 = vmatpush.bf16.msra.mxu3 %v6784_v45 }
 0x168   :  { %1365 = vmatpush.bf16.msra.mxu0 %v6785_v17  ;;  %v6793_v17 = vld [vmem:[#allocation38_spill] sm:$0xff] }
 0x169   :  { %1391 = vmatpush.bf16.msra.mxu2 %v6786_v52  ;;  %v334_v52 = vadd.f32 %v6794_v16, %v6793_v17 }
 0x16a   :  { %1378 = vmatpush.bf16.msra.mxu1 %v6787_v0  ;;  %1404 = vmatpush.bf16.msra.mxu3 %v6788_v40  ;;  %v6796_v0 = vld [vmem:[#allocation35_spill] sm:$0xff] }
 0x16b   :  { %v363_v5 = vadd.f32 %v6796_v0, %v6795_v18 }
 0x187   :  { %v770_v62 = vpop.f32.mrf.mxu0  ;;  %v783_v28 = vpop.f32.mrf.mxu1 }
 0x188   :  { %v813_v29 = vadd.f32 %v770_v62, %v276_v54  ;;  %v814_v63 = vadd.f32 %v783_v28, %v305_v23  ;;  %v508_v54 = vld [vmem:[%s6459_s5] sm:$0xf] }
 0x189   :  { %v5305_v23 = vperm.slane %v508_v54, 0 }
 0x18a   :  { %v817_v43 = vmul.f32 0.5, %v813_v29  ;;  %v821_v45 = vmul.f32 0.5, %v814_v63 }
 0x18c   :  { %3818 = vtanh.f32 %v817_v43 }
 0x18d   :  { %3820 = vtanh.f32 %v821_v45 }
 0x18e   :  { %v796_v40 = vpop.f32.mrf.mxu2  ;;  %v809_v15 = vpop.f32.mrf.mxu3 }
 0x18f   :  { %v815_v30 = vadd.f32 %v796_v40, %v334_v52  ;;  %v816_v31 = vadd.f32 %v809_v15, %v363_v5  ;;  %v772_v10 = vpop.f32.mrf.mxu0  ;;  %v785_v57 = vpop.f32.mrf.mxu1 }
 0x191   :  { %3822 = vtanh.f32 %v815_v30  ;;  %v826_v25 = vmul.f32 0.5, %v816_v31 }
 0x192   :  { %v3819_v62 = vpop.eup %3818 }
 0x193   :  { %v3821_v29 = vpop.eup %3820  ;;  %v819_v43 = vmul.f32 0.5, %v3819_v62  ;;  %3824 = vtanh.f32 %v826_v25  ;;  %v5311_v62 = vperm.slane %v508_v54, 1 }
 0x194   :  { %v823_v16 = vmul.f32 0.5, %v3821_v29 }
 0x195   :  { %v820_v28 = vadd.f32 0.5, %v819_v43  ;;  %6797 = vst [vmem:[#allocation30_spill] sm:$0xff] %v5311_v62 }
 0x196   :  { %v824_v63 = vadd.f32 0.5, %v823_v16  ;;  %v798_v45 = vpop.f32.mrf.mxu2  ;;  %v811_v40 = vpop.f32.mrf.mxu3 }
 0x197   :  { %v3823_v15 = vpop.eup %3822  ;;  %v1164_v10 = vpop.f32.mrf.mxu0 }
 0x198   :  { %v1177_v5 = vpop.f32.mrf.mxu1  ;;  %v830_v31 = vmul.f32 %v824_v63, %v4925_v36  ;;  %v831_v52 = vmul.f32 %v3823_v15, %v820_v28  ;;  %v1165_v0 = vadd.f32 %v1164_v10, %v5305_v23 }
 0x199   :  { %v3825_v30 = vpop.eup %3824 }
 0x19a   :  { %v5309_v57 = vadd.f32 %v831_v52, %v830_v31  ;;  %v1178_v25 = vadd.f32 %v1177_v5, %v1165_v0  ;;  %v828_v29 = vmul.f32 0.5, %v3825_v30  ;;  %v5317_v52 = vperm.slane %v508_v54, 2 }
 0x19c   :  { %3826 = vtanh.f32 %v5309_v57  ;;  %v1259_v17 = vmul.f32 0.5, %v1178_v25  ;;  %v829_v36 = vadd.f32 0.5, %v828_v29  ;;  %6798 = vst [vmem:[#allocation31_spill] sm:$0xff] %v5317_v52 }
 0x19e   :  { %v1190_v43 = vpop.f32.mrf.mxu2  ;;  %v1203_v16 = vpop.f32.mrf.mxu3  ;;  %3828 = vtanh.f32 %v1259_v17  ;;  %v6799_v17 = vld [vmem:[#allocation96_spill] sm:$0xff] }
 0x19f   :  { %v1191_v45 = vadd.f32 %v1190_v43, %v5311_v62  ;;  %v1166_v40 = vpop.f32.mrf.mxu0  ;;  %v6800_v43 = vld [vmem:[#allocation95_spill] sm:$0xff] }
 0x1a0   :  { %v1179_v18 = vpop.f32.mrf.mxu1 }
 0x1a1   :  { %v1204_v28 = vadd.f32 %v1203_v16, %v1191_v45  ;;  %v6801_v16 = vld [vmem:[#allocation97_spill] sm:$0xff] }
 0x1a2   :  { %v3827_v63 = vpop.eup %3826 }
 0x1a3   :  { %v834_v15 = vmul.f32 %v3827_v63, %v829_v36  ;;  %v1263_v10 = vmul.f32 0.5, %v1204_v28  ;;  %v5328_v28 = vperm.slane %v508_v54, 3  ;;  %v6803_v63 = vld [vmem:[#allocation98_spill] sm:$0xff]  ;;  %v6808_v54 = vld [vmem:[#allocation104_spill] sm:$0xff] }
 0x1a4   :  { %v3829_v29 = vpop.eup %3828 }
 0x1a5   :  { %v5315_v31 = vpack.c.bf16 %v834_v15, %v834_v15  ;;  %3830 = vtanh.f32 %v1263_v10  ;;  %6802 = vst [vmem:[#allocation33_spill] sm:$0xff] %v5328_v28  ;;  %v6804_v15 = vld [vmem:[#allocation100_spill] sm:$0xff]  ;;  %v1261_v10 = vmul.f32 0.5, %v3829_v29  ;;  %v6810_v29 = vld [vmem:[#allocation105_spill] sm:$0xff] }
 0x1a6   :  { %v1192_v5 = vpop.f32.mrf.mxu2  ;;  %v1205_v0 = vpop.f32.mrf.mxu3 }
 0x1a7   :  { %1291 = vmatmul.bf16.vlgmr.msrb.gmra.mxu0 %v5315_v31  ;;  %1304 = vmatmul.bf16.vlgmr.msrb.gmra.mxu1 %v5315_v31  ;;  %v6805_v5 = vld [vmem:[#allocation99_spill] sm:$0xff]  ;;  %v6806_v0 = vld [vmem:[#allocation101_spill] sm:$0xff] }
 0x1a8   :  { %1317 = vmatmul.bf16.vlgmr.msrb.gmra.mxu2 %v5315_v31  ;;  %1330 = vmatmul.bf16.vlgmr.msrb.gmra.mxu3 %v5315_v31  ;;  %v1216_v18 = vpop.f32.mrf.mxu0  ;;  %v1229_v30 = vpop.f32.mrf.mxu1 }
 0x1a9   :  { %v1217_v25 = vadd.f32 %v1216_v18, %v5317_v52  ;;  %1410 = vmatpush.bf16.msrb.mxu0 %v4954_v19  ;;  %1436 = vmatpush.bf16.msrb.mxu2 %v6799_v17  ;;  %v6811_v19 = vld [vmem:[#allocation106_spill] sm:$0xff] }
 0x1aa   :  { %1423 = vmatpush.bf16.msrb.mxu1 %v6800_v43  ;;  %1449 = vmatpush.bf16.msrb.mxu3 %v6801_v16 }
 0x1ab   :  { %v3831_v45 = vpop.eup %3830  ;;  %v1230_v40 = vadd.f32 %v1229_v30, %v1217_v25  ;;  %v6807_v25 = vld [vmem:[#allocation102_spill] sm:$0xff] }
 0x1ac   :  { %v1265_v36 = vmul.f32 0.5, %v3831_v45  ;;  %v1262_v45 = vadd.f32 0.5, %v1261_v10  ;;  %v6817_v10 = vld [vmem:[#allocation112_spill] sm:$0xff] }
 0x1ad   :  { %3832 = vtanh.f32 %v1230_v40  ;;  %1411 = vmatpush.bf16.msrb.mxu0 %v6803_v63  ;;  %1437 = vmatpush.bf16.msrb.mxu2 %v6804_v15  ;;  %v6809_v63 = vld [vmem:[#allocation103_spill] sm:$0xff] }
 0x1ae   :  { %1424 = vmatpush.bf16.msrb.mxu1 %v6805_v5  ;;  %1450 = vmatpush.bf16.msrb.mxu3 %v6806_v0  ;;  %v1266_v43 = vadd.f32 0.5, %v1265_v36  ;;  %v6812_v36 = vld [vmem:[#allocation108_spill] sm:$0xff] }
 0x1af   :  { %v1242_v18 = vpop.f32.mrf.mxu2 }
 0x1b0   :  { %v1255_v52 = vpop.f32.mrf.mxu3  ;;  %v1243_v16 = vadd.f32 %v1242_v18, %v5328_v28  ;;  %v1218_v62 = vpop.f32.mrf.mxu0  ;;  %v1272_v15 = vmul.f32 0.0, %v1266_v43  ;;  %v6814_v18 = vld [vmem:[#allocation107_spill] sm:$0xff]  ;;  %v6816_v43 = vld [vmem:[#allocation110_spill] sm:$0xff] }
 0x1b1   :  { %v1231_v30 = vpop.f32.mrf.mxu1  ;;  %1412 = vmatpush.bf16.msrb.mxu0 %v6807_v25  ;;  %1438 = vmatpush.bf16.msrb.mxu2 %v6808_v54 }
 0x1b2   :  { %v1256_v40 = vadd.f32 %v1255_v52, %v1243_v16  ;;  %1425 = vmatpush.bf16.msrb.mxu1 %v6809_v63  ;;  %1451 = vmatpush.bf16.msrb.mxu3 %v6810_v29  ;;  %v6815_v30 = vld [vmem:[#allocation109_spill] sm:$0xff] }
 0x1b3   :  { %v3833_v5 = vpop.eup %3832 }
 0x1b4   :  { %v1273_v0 = vmul.f32 %v3833_v5, %v1262_v45  ;;  %v1268_v17 = vmul.f32 0.5, %v1256_v40  ;;  %v6818_v5 = vld [vmem:[#allocation111_spill] sm:$0xff]  ;;  %v6820_v45 = vld [vmem:[#allocation114_spill] sm:$0xff] }
 0x1b5   :  { %1413 = vmatpush.bf16.msrb.mxu0 %v6811_v19  ;;  %1439 = vmatpush.bf16.msrb.mxu2 %v6812_v36 }
 0x1b6   :  { %v5341_v62 = vadd.f32 %v1273_v0, %v1272_v15  ;;  %3834 = vtanh.f32 %v1268_v17  ;;  %1426 = vmatpush.bf16.msrb.mxu1 %v6814_v18  ;;  %1452 = vmatpush.bf16.msrb.mxu3 %v6815_v30  ;;  %v6819_v15 = vld [vmem:[#allocation113_spill] sm:$0xff] }
 0x1b7   :  { %v1244_v52 = vpop.f32.mrf.mxu2  ;;  %1366 = vmatmul.bf16.vlgmr.msra.gmra.mxu0 %v5315_v31 }
 0x1b8   :  { %6813 = vst [vmem:[#allocation35_spill] sm:$0xff] %v5341_v62  ;;  %v1257_v16 = vpop.f32.mrf.mxu3  ;;  %3836 = vtanh.f32 %v5341_v62  ;;  %1392 = vmatmul.bf16.vlgmr.msra.gmra.mxu2 %v5315_v31  ;;  %v6821_v52 = vld [vmem:[#allocation115_spill] sm:$0xff] }
 0x1b9   :  { %1414 = vmatpush.bf16.msrb.mxu0 %v6816_v43  ;;  %1440 = vmatpush.bf16.msrb.mxu2 %v6817_v10  ;;  %v6822_v16 = vld [vmem:[#allocation116_spill] sm:$0xff] }
 0x1ba   :  { %1427 = vmatpush.bf16.msrb.mxu1 %v6818_v5  ;;  %1453 = vmatpush.bf16.msrb.mxu3 %v6819_v15 }
 0x1bc   :  { %v3835_v17 = vpop.eup %3834 }
 0x1bd   :  { %v1270_v0 = vmul.f32 0.5, %v3835_v17  ;;  %1415 = vmatpush.bf16.msrb.mxu0 %v6820_v45  ;;  %1441 = vmatpush.bf16.msrb.mxu2 %v5152_v24 }
 0x1be   :  { %v3837_v40 = vpop.eup %3836  ;;  %1428 = vmatpush.bf16.msrb.mxu1 %v6821_v52  ;;  %1454 = vmatpush.bf16.msrb.mxu3 %v6822_v16 }
 0x1bf   :  { %v1271_v62 = vadd.f32 0.5, %v1270_v0  ;;  %v6826_v0 = vld [vmem:[#allocation49_spill] sm:$0xff] }
 0x1c1   :  { %v5356_v28 = vmul.f32 %v3837_v40, %v1271_v62  ;;  %1416 = vmatpush.bf16.msrb.mxu0 %v5176_v6  ;;  %1442 = vmatpush.bf16.msrb.mxu2 %v5188_v44  ;;  %v6825_v62 = vld [vmem:[#allocation29_spill] sm:$0xff]  ;;  %v6827_v40 = vld [vmem:[#allocation51_spill] sm:$0xff] }
 0x1c2   :  { %1429 = vmatpush.bf16.msrb.mxu1 %v5178_v12  ;;  %1455 = vmatpush.bf16.msrb.mxu3 %v5190_v27 }
 0x1c3   :  { %6823 = vst [vmem:[#allocation102_spill] sm:$0xff] %v5356_v28  ;;  %v1357_v17 = vpack.c.bf16 %v5356_v28, %v5356_v28  ;;  %v6829_v28 = vld [vmem:[#allocation56_spill] sm:$0xff] }
 0x1c5   :  { %1379 = vmatmul.bf16.vlgmr.msra.gmra.mxu1 %v1357_v17  ;;  %1405 = vmatmul.bf16.vlgmr.msra.gmra.mxu3 %v1357_v17 }
 0x1c6   :  { %1417 = vmatpush.bf16.msrb.mxu0 %v5212_v58  ;;  %1443 = vmatpush.bf16.msrb.mxu2 %v5218_v56 }
 0x1c7   :  { %1430 = vmatpush.bf16.msrb.mxu1 %v5214_v51  ;;  %1456 = vmatpush.bf16.msrb.mxu3 %v5220_v35 }
 0x1c9   :  { %1418 = vmatmul.bf16.vlgmr.msrb.gmra.mxu0 %v5315_v31  ;;  %1444 = vmatmul.bf16.vlgmr.msrb.gmra.mxu2 %v5315_v31  ;;  %v6824_v31 = vld [vmem:[#allocation27_spill] sm:$0xff] }
 0x1ca   :  { %1486 = vmatpush.bf16.msra.mxu0 %v4221_v37  ;;  %1512 = vmatpush.bf16.msra.mxu2 %v4249_v47 }
 0x1cb   :  { %1499 = vmatpush.bf16.msra.mxu1 %v4232_v41  ;;  %1525 = vmatpush.bf16.msra.mxu3 %v4252_v48 }
 0x1ce   :  { %1487 = vmatpush.bf16.msra.mxu0 %v4254_v49  ;;  %1513 = vmatpush.bf16.msra.mxu2 %v4284_v59 }
 0x1cf   :  { %1500 = vmatpush.bf16.msra.mxu1 %v4266_v53  ;;  %1526 = vmatpush.bf16.msra.mxu3 %v4288_v60 }
 0x1d2   :  { %1488 = vmatpush.bf16.msra.mxu0 %v4290_v61  ;;  %1514 = vmatpush.bf16.msra.mxu2 %v4320_v7 }
 0x1d3   :  { %1501 = vmatpush.bf16.msra.mxu1 %v4302_v1  ;;  %1527 = vmatpush.bf16.msra.mxu3 %v4324_v8 }
 0x1d5   :  { %1431 = vmatmul.bf16.vlgmr.msrb.gmra.mxu1 %v1357_v17  ;;  %1457 = vmatmul.bf16.vlgmr.msrb.gmra.mxu3 %v1357_v17  ;;  %v6828_v17 = vld [vmem:[#allocation52_spill] sm:$0xff] }
 0x1d6   :  { %1489 = vmatpush.bf16.msra.mxu0 %v4326_v9  ;;  %1515 = vmatpush.bf16.msra.mxu2 %v4359_v20 }
 0x1d7   :  { %1502 = vmatpush.bf16.msra.mxu1 %v4338_v13  ;;  %1528 = vmatpush.bf16.msra.mxu3 %v4363_v21 }
 0x1da   :  { %1490 = vmatpush.bf16.msra.mxu0 %v4365_v22  ;;  %1516 = vmatpush.bf16.msra.mxu2 %v4395_v32 }
 0x1db   :  { %1503 = vmatpush.bf16.msra.mxu1 %v4377_v26  ;;  %1529 = vmatpush.bf16.msra.mxu3 %v4399_v33  ;;  %v6858_v33 = vld [vmem:[#allocation40_spill] sm:$0xff]  ;;  %v6859_v26 = vld [vmem:[#allocation42_spill] sm:$0xff] }
 0x1de   :  { %1491 = vmatpush.bf16.msra.mxu0 %v4401_v34  ;;  %1517 = vmatpush.bf16.msra.mxu2 %v4419_v42 }
 0x1df   :  { %1504 = vmatpush.bf16.msra.mxu1 %v4410_v38  ;;  %1530 = vmatpush.bf16.msra.mxu3 %v4432_v46  ;;  %v6832_v46 = vld [vmem:[#allocation60_spill] sm:$0xff]  ;;  %v6833_v38 = vld [vmem:[#allocation62_spill] sm:$0xff] }
 0x1e2   :  { %1492 = vmatpush.bf16.msra.mxu0 %v4434_v50  ;;  %1518 = vmatpush.bf16.msra.mxu2 %v4467_v2 }
 0x1e3   :  { %1505 = vmatpush.bf16.msra.mxu1 %v4446_v55  ;;  %1531 = vmatpush.bf16.msra.mxu3 %v4471_v3  ;;  %v6830_v3 = vld [vmem:[#allocation55_spill] sm:$0xff] }
 0x1e4   :  { %v6831_v55 = vld [vmem:[#allocation59_spill] sm:$0xff] }
 0x1e6   :  { %1493 = vmatpush.bf16.msra.mxu0 %v4473_v4  ;;  %1519 = vmatpush.bf16.msra.mxu2 %v4491_v14  ;;  %v6857_v14 = vld [vmem:[#allocation37_spill] sm:$0xff] }
 0x1e7   :  { %1506 = vmatpush.bf16.msra.mxu1 %v6824_v31  ;;  %1532 = vmatpush.bf16.msra.mxu3 %v6825_v62  ;;  %v6835_v31 = vld [vmem:[#allocation63_spill] sm:$0xff]  ;;  %v6836_v62 = vld [vmem:[#allocation65_spill] sm:$0xff] }
 0x1ea   :  { %1561 = vmatpush.bf16.msrb.mxu0 %v4604_v39  ;;  %1587 = vmatpush.bf16.msrb.mxu2 %v4617_v11  ;;  %v6834_v11 = vld [vmem:[#allocation61_spill] sm:$0xff]  ;;  %v6856_v39 = vld [vmem:[#allocation36_spill] sm:$0xff] }
 0x1eb   :  { %1574 = vmatpush.bf16.msrb.mxu1 %v6826_v0  ;;  %1600 = vmatpush.bf16.msrb.mxu3 %v6827_v40  ;;  %v6837_v0 = vld [vmem:[#allocation68_spill] sm:$0xff]  ;;  %v6838_v40 = vld [vmem:[#allocation67_spill] sm:$0xff] }
 0x1ee   :  { %1562 = vmatpush.bf16.msrb.mxu0 %v6828_v17  ;;  %1588 = vmatpush.bf16.msrb.mxu2 %v6829_v28  ;;  %v6839_v17 = vld [vmem:[#allocation70_spill] sm:$0xff]  ;;  %v6840_v28 = vld [vmem:[#allocation72_spill] sm:$0xff] }
 0x1ef   :  { %1575 = vmatpush.bf16.msrb.mxu1 %v6830_v3  ;;  %1601 = vmatpush.bf16.msrb.mxu3 %v6831_v55  ;;  %v6841_v3 = vld [vmem:[#allocation74_spill] sm:$0xff]  ;;  %v6842_v55 = vld [vmem:[#allocation73_spill] sm:$0xff] }
 0x1f2   :  { %1563 = vmatpush.bf16.msrb.mxu0 %v6832_v46  ;;  %1589 = vmatpush.bf16.msrb.mxu2 %v6833_v38  ;;  %v6843_v46 = vld [vmem:[#allocation75_spill] sm:$0xff]  ;;  %v6844_v38 = vld [vmem:[#allocation76_spill] sm:$0xff] }
 0x1f3   :  { %1576 = vmatpush.bf16.msrb.mxu1 %v6834_v11  ;;  %1602 = vmatpush.bf16.msrb.mxu3 %v6835_v31  ;;  %v6845_v11 = vld [vmem:[#allocation80_spill] sm:$0xff]  ;;  %v6846_v31 = vld [vmem:[#allocation79_spill] sm:$0xff] }
 0x1f6   :  { %1564 = vmatpush.bf16.msrb.mxu0 %v6836_v62  ;;  %1590 = vmatpush.bf16.msrb.mxu2 %v6837_v0  ;;  %v6847_v62 = vld [vmem:[#allocation83_spill] sm:$0xff]  ;;  %v6848_v0 = vld [vmem:[#allocation84_spill] sm:$0xff] }
 0x1f7   :  { %1577 = vmatpush.bf16.msrb.mxu1 %v6838_v40  ;;  %1603 = vmatpush.bf16.msrb.mxu3 %v6839_v17  ;;  %v6849_v40 = vld [vmem:[#allocation86_spill] sm:$0xff]  ;;  %v6850_v17 = vld [vmem:[#allocation85_spill] sm:$0xff] }
 0x1fa   :  { %1565 = vmatpush.bf16.msrb.mxu0 %v6840_v28  ;;  %1591 = vmatpush.bf16.msrb.mxu2 %v6841_v3  ;;  %v6851_v28 = vld [vmem:[#allocation87_spill] sm:$0xff]  ;;  %v6852_v3 = vld [vmem:[#allocation89_spill] sm:$0xff] }
 0x1fb   :  { %1578 = vmatpush.bf16.msrb.mxu1 %v6842_v55  ;;  %1604 = vmatpush.bf16.msrb.mxu3 %v6843_v46  ;;  %v6853_v55 = vld [vmem:[#allocation92_spill] sm:$0xff]  ;;  %v6854_v46 = vld [vmem:[#allocation91_spill] sm:$0xff] }
 0x1fe   :  { %1566 = vmatpush.bf16.msrb.mxu0 %v6844_v38  ;;  %1592 = vmatpush.bf16.msrb.mxu2 %v6845_v11  ;;  %v6855_v38 = vld [vmem:[#allocation93_spill] sm:$0xff] }
 0x1ff   :  { %1579 = vmatpush.bf16.msrb.mxu1 %v6846_v31  ;;  %1605 = vmatpush.bf16.msrb.mxu3 %v6847_v62 }
 0x202   :  { %1567 = vmatpush.bf16.msrb.mxu0 %v6848_v0  ;;  %1593 = vmatpush.bf16.msrb.mxu2 %v6849_v40 }
 0x203   :  { %1580 = vmatpush.bf16.msrb.mxu1 %v6850_v17  ;;  %1606 = vmatpush.bf16.msrb.mxu3 %v6851_v28 }
 0x206   :  { %1568 = vmatpush.bf16.msrb.mxu0 %v6852_v3  ;;  %1594 = vmatpush.bf16.msrb.mxu2 %v6853_v55 }
 0x207   :  { %1581 = vmatpush.bf16.msrb.mxu1 %v6854_v46  ;;  %1607 = vmatpush.bf16.msrb.mxu3 %v6855_v38 }
 0x224   :  { %v1292_v11 = vpop.f32.mrf.mxu0  ;;  %v1305_v31 = vpop.f32.mrf.mxu1 }
 0x225   :  { %v1335_v62 = vadd.f32 %v1292_v11, %v6856_v39  ;;  %v1336_v0 = vadd.f32 %v1305_v31, %v6857_v14 }
 0x227   :  { %v1339_v4 = vmul.f32 0.5, %v1335_v62  ;;  %v1343_v40 = vmul.f32 0.5, %v1336_v0 }
 0x229   :  { %3838 = vtanh.f32 %v1339_v4 }
 0x22a   :  { %3840 = vtanh.f32 %v1343_v40 }
 0x22b   :  { %v1318_v17 = vpop.f32.mrf.mxu2  ;;  %v1331_v28 = vpop.f32.mrf.mxu3 }
 0x22c   :  { %v1337_v3 = vadd.f32 %v1318_v17, %v6858_v33  ;;  %v1338_v55 = vadd.f32 %v1331_v28, %v6859_v26  ;;  %v1294_v2 = vpop.f32.mrf.mxu0  ;;  %v1307_v46 = vpop.f32.mrf.mxu1 }
 0x22e   :  { %3842 = vtanh.f32 %v1337_v3  ;;  %v1348_v38 = vmul.f32 0.5, %v1338_v55 }
 0x22f   :  { %v3839_v50 = vpop.eup %3838 }
 0x230   :  { %v3841_v21 = vpop.eup %3840  ;;  %v1341_v13 = vmul.f32 0.5, %v3839_v50  ;;  %3844 = vtanh.f32 %v1348_v38 }
 0x231   :  { %v1345_v39 = vmul.f32 0.5, %v3841_v21 }
 0x232   :  { %v1342_v14 = vadd.f32 0.5, %v1341_v13 }
 0x233   :  { %v1346_v11 = vadd.f32 0.5, %v1345_v39  ;;  %v1320_v31 = vpop.f32.mrf.mxu2  ;;  %v1333_v4 = vpop.f32.mrf.mxu3 }
 0x234   :  { %v3843_v62 = vpop.eup %3842  ;;  %v1367_v0 = vpop.f32.mrf.mxu0  ;;  %v6862_v4 = vld [vmem:[#allocation30_spill] sm:$0xff] }
 0x235   :  { %v1352_v40 = vmul.f32 %v1346_v11, %v5309_v57  ;;  %v1353_v33 = vmul.f32 %v3843_v62, %v1342_v14  ;;  %v1368_v3 = vadd.f32 %v1367_v0, %v5305_v23  ;;  %v6860_v14 = vld [vmem:[#allocation94_spill] sm:$0xff]  ;;  %v6861_v11 = vld [vmem:[#allocation96_spill] sm:$0xff]  ;;  %v6864_v0 = vld [vmem:[#allocation97_spill] sm:$0xff] }
 0x236   :  { %v3845_v17 = vpop.eup %3844 }
 0x237   :  { %v5439_v26 = vadd.f32 %v1353_v33, %v1352_v40  ;;  %v1350_v46 = vmul.f32 0.5, %v3845_v17  ;;  %v6863_v40 = vld [vmem:[#allocation95_spill] sm:$0xff] }
 0x239   :  { %3846 = vtanh.f32 %v5439_v26  ;;  %v1351_v50 = vadd.f32 0.5, %v1350_v46 }
 0x23b   :  { %v1393_v55 = vpop.f32.mrf.mxu2 }
 0x23c   :  { %v1369_v2 = vpop.f32.mrf.mxu0  ;;  %v1394_v62 = vadd.f32 %v1393_v55, %v6862_v4 }
 0x23d   :  { %v6865_v2 = vld [vmem:[#allocation98_spill] sm:$0xff] }
 0x23f   :  { %v3847_v21 = vpop.eup %3846 }
 0x240   :  { %v1356_v38 = vmul.f32 %v3847_v21, %v1351_v50  ;;  %v6866_v50 = vld [vmem:[#allocation100_spill] sm:$0xff] }
 0x242   :  { %v5442_v13 = vpack.c.bf16 %v1356_v38, %v1356_v38  ;;  %v1380_v28 = vpop.f32.mrf.mxu1 }
 0x243   :  { %v1395_v39 = vpop.f32.mrf.mxu2  ;;  %v1381_v31 = vadd.f32 %v1380_v28, %v1368_v3  ;;  %v6867_v3 = vld [vmem:[#allocation99_spill] sm:$0xff]  ;;  %v6868_v28 = vld [vmem:[#allocation101_spill] sm:$0xff] }
 0x244   :  { %1494 = vmatmul.bf16.vlgmr.msra.gmra.mxu0 %v5442_v13  ;;  %1507 = vmatmul.bf16.vlgmr.msra.gmra.mxu1 %v5442_v13 }
 0x245   :  { %1520 = vmatmul.bf16.vlgmr.msra.gmra.mxu2 %v5442_v13  ;;  %1533 = vmatmul.bf16.vlgmr.msra.gmra.mxu3 %v5442_v13  ;;  %v1462_v33 = vmul.f32 0.5, %v1381_v31 }
 0x246   :  { %v1419_v57 = vpop.f32.mrf.mxu0  ;;  %1613 = vmatpush.bf16.msra.mxu0 %v6860_v14  ;;  %1639 = vmatpush.bf16.msra.mxu2 %v6861_v11 }
 0x247   :  { %1626 = vmatpush.bf16.msra.mxu1 %v6863_v40  ;;  %1652 = vmatpush.bf16.msra.mxu3 %v6864_v0  ;;  %3848 = vtanh.f32 %v1462_v33 }
 0x248   :  { %v1406_v17 = vpop.f32.mrf.mxu3 }
 0x249   :  { %v1407_v46 = vadd.f32 %v1406_v17, %v1394_v62  ;;  %v6869_v62 = vld [vmem:[#allocation31_spill] sm:$0xff] }
 0x24a   :  { %1614 = vmatpush.bf16.msra.mxu0 %v6865_v2  ;;  %1640 = vmatpush.bf16.msra.mxu2 %v6866_v50  ;;  %v1382_v21 = vpop.f32.mrf.mxu1  ;;  %v1420_v17 = vadd.f32 %v1419_v57, %v6869_v62 }
 0x24b   :  { %v1466_v38 = vmul.f32 0.5, %v1407_v46  ;;  %1627 = vmatpush.bf16.msra.mxu1 %v6867_v3  ;;  %1653 = vmatpush.bf16.msra.mxu3 %v6868_v28 }
 0x24c   :  { %v1445_v39 = vpop.f32.mrf.mxu2 }
 0x24d   :  { %3850 = vtanh.f32 %v1466_v38  ;;  %v3849_v46 = vpop.eup %3848 }
 0x24e   :  { %v1421_v55 = vpop.f32.mrf.mxu0  ;;  %1615 = vmatpush.bf16.msra.mxu0 %v6807_v25  ;;  %1641 = vmatpush.bf16.msra.mxu2 %v6808_v54  ;;  %v1464_v57 = vmul.f32 0.5, %v3849_v46 }
 0x24f   :  { %1628 = vmatpush.bf16.msra.mxu1 %v6809_v63  ;;  %1654 = vmatpush.bf16.msra.mxu3 %v6810_v29 }
 0x250   :  { %v1408_v31 = vpop.f32.mrf.mxu3 }
 0x251   :  { %v6870_v31 = vld [vmem:[#allocation33_spill] sm:$0xff] }
 0x252   :  { %1616 = vmatpush.bf16.msra.mxu0 %v6811_v19  ;;  %1642 = vmatpush.bf16.msra.mxu2 %v6812_v36  ;;  %v1432_v33 = vpop.f32.mrf.mxu1  ;;  %v1446_v62 = vadd.f32 %v1445_v39, %v6870_v31  ;;  %v6871_v39 = vld [vmem:[#allocation35_spill] sm:$0xff] }
 0x253   :  { %v3851_v21 = vpop.eup %3850  ;;  %v1433_v38 = vadd.f32 %v1432_v33, %v1420_v17  ;;  %1629 = vmatpush.bf16.msra.mxu1 %v6814_v18  ;;  %1655 = vmatpush.bf16.msra.mxu3 %v6815_v30 }
 0x254   :  { %v1468_v55 = vmul.f32 0.5, %v3851_v21  ;;  %v1447_v4 = vpop.f32.mrf.mxu2  ;;  %1569 = vmatmul.bf16.vlgmr.msrb.gmra.mxu0 %v5442_v13 }
 0x255   :  { %3852 = vtanh.f32 %v1433_v38  ;;  %1595 = vmatmul.bf16.vlgmr.msrb.gmra.mxu2 %v5442_v13  ;;  %v1465_v4 = vadd.f32 0.5, %v1464_v57 }
 0x256   :  { %1617 = vmatpush.bf16.msra.mxu0 %v6816_v43  ;;  %1643 = vmatpush.bf16.msra.mxu2 %v6817_v10  ;;  %v1469_v17 = vadd.f32 0.5, %v1468_v55 }
 0x257   :  { %1630 = vmatpush.bf16.msra.mxu1 %v6818_v5  ;;  %1656 = vmatpush.bf16.msra.mxu3 %v6819_v15 }
 0x258   :  { %v1458_v33 = vpop.f32.mrf.mxu3  ;;  %v1475_v31 = vmul.f32 %v1469_v17, %v6871_v39  ;;  %v6879_v39 = vld [vmem:[#allocation26_spill] sm:$0xff] }
 0x259   :  { %v1459_v21 = vadd.f32 %v1458_v33, %v1446_v62  ;;  %v6874_v33 = vld [vmem:[#allocation13_spill] sm:$0xff] }
 0x25a   :  { %1618 = vmatpush.bf16.msra.mxu0 %v6820_v45  ;;  %1644 = vmatpush.bf16.msra.mxu2 %v5152_v24  ;;  %v1434_v38 = vpop.f32.mrf.mxu1 }
 0x25b   :  { %v3853_v46 = vpop.eup %3852  ;;  %v1471_v30 = vmul.f32 0.5, %v1459_v21  ;;  %1631 = vmatpush.bf16.msra.mxu1 %v6821_v52  ;;  %1657 = vmatpush.bf16.msra.mxu3 %v6822_v16  ;;  %v6875_v21 = vld [vmem:[#allocation22_spill] sm:$0xff]  ;;  %v6877_v38 = vld [vmem:[#allocation15_spill] sm:$0xff] }
 0x25c   :  { %v1476_v5 = vmul.f32 %v3853_v46, %v1465_v4  ;;  %v6876_v4 = vld [vmem:[#allocation24_spill] sm:$0xff]  ;;  %v6878_v46 = vld [vmem:[#allocation17_spill] sm:$0xff] }
 0x25d   :  { %3854 = vtanh.f32 %v1471_v30 }
 0x25e   :  { %v5479_v15 = vadd.f32 %v1476_v5, %v1475_v31  ;;  %1619 = vmatpush.bf16.msra.mxu0 %v5176_v6  ;;  %1645 = vmatpush.bf16.msra.mxu2 %v5188_v44 }
 0x25f   :  { %1632 = vmatpush.bf16.msra.mxu1 %v5178_v12  ;;  %1658 = vmatpush.bf16.msra.mxu3 %v5190_v27 }
 0x260   :  { %3856 = vtanh.f32 %v5479_v15  ;;  %v1460_v62 = vpop.f32.mrf.mxu3 }
 0x261   :  { %v6880_v62 = vld [vmem:[#allocation28_spill] sm:$0xff] }
 0x262   :  { %1620 = vmatpush.bf16.msra.mxu0 %v5212_v58  ;;  %1646 = vmatpush.bf16.msra.mxu2 %v5218_v56 }
 0x263   :  { %v3855_v55 = vpop.eup %3854  ;;  %1633 = vmatpush.bf16.msra.mxu1 %v5214_v51  ;;  %1659 = vmatpush.bf16.msra.mxu3 %v5220_v35 }
 0x264   :  { %v1473_v30 = vmul.f32 0.5, %v3855_v55  ;;  %v6881_v55 = vld [vmem:[#allocation48_spill] sm:$0xff] }
 0x265   :  { %1621 = vmatmul.bf16.vlgmr.msra.gmra.mxu0 %v5442_v13  ;;  %1647 = vmatmul.bf16.vlgmr.msra.gmra.mxu2 %v5442_v13  ;;  %v6873_v13 = vld [vmem:[#allocation11_spill] sm:$0xff] }
 0x266   :  { %1689 = vmatpush.bf16.msrb.mxu0 %v4221_v37  ;;  %1715 = vmatpush.bf16.msrb.mxu2 %v4249_v47  ;;  %v3857_v5 = vpop.eup %3856  ;;  %v1474_v57 = vadd.f32 0.5, %v1473_v30  ;;  %v6882_v30 = vld [vmem:[#allocation50_spill] sm:$0xff] }
 0x268   :  { %v5494_v31 = vmul.f32 %v3857_v5, %v1474_v57  ;;  %v6883_v5 = vld [vmem:[#allocation19_spill] sm:$0xff]  ;;  %v6884_v57 = vld [vmem:[#allocation21_spill] sm:$0xff] }
 0x26a   :  { %6872 = vst [vmem:[#allocation104_spill] sm:$0xff] %v5494_v31  ;;  %1690 = vmatpush.bf16.msrb.mxu0 %v4254_v49  ;;  %1716 = vmatpush.bf16.msrb.mxu2 %v4284_v59  ;;  %v1560_v17 = vpack.c.bf16 %v5494_v31, %v5494_v31  ;;  %v6886_v31 = vld [vmem:[#allocation56_spill] sm:$0xff] }
 0x26c   :  { %1582 = vmatmul.bf16.vlgmr.msrb.gmra.mxu1 %v1560_v17  ;;  %1608 = vmatmul.bf16.vlgmr.msrb.gmra.mxu3 %v1560_v17 }
 0x26d   :  { %1702 = vmatpush.bf16.msrb.mxu1 %v4232_v41  ;;  %1728 = vmatpush.bf16.msrb.mxu3 %v4252_v48 }
 0x26e   :  { %1691 = vmatpush.bf16.msrb.mxu0 %v4290_v61  ;;  %1717 = vmatpush.bf16.msrb.mxu2 %v4320_v7 }
 0x271   :  { %1703 = vmatpush.bf16.msrb.mxu1 %v4266_v53  ;;  %1729 = vmatpush.bf16.msrb.mxu3 %v4288_v60  ;;  %v6924_v60 = vld [vmem:[#allocation44_spill] sm:$0xff]  ;;  %v6925_v53 = vld [vmem:[#allocation39_spill] sm:$0xff] }
 0x272   :  { %1692 = vmatpush.bf16.msrb.mxu0 %v4326_v9  ;;  %1718 = vmatpush.bf16.msrb.mxu2 %v4359_v20 }
 0x275   :  { %1704 = vmatpush.bf16.msrb.mxu1 %v4302_v1  ;;  %1730 = vmatpush.bf16.msrb.mxu3 %v4324_v8  ;;  %v6922_v8 = vld [vmem:[#allocation43_spill] sm:$0xff] }
 0x276   :  { %1693 = vmatpush.bf16.msrb.mxu0 %v4365_v22  ;;  %1719 = vmatpush.bf16.msrb.mxu2 %v4395_v32 }
 0x279   :  { %1705 = vmatpush.bf16.msrb.mxu1 %v6873_v13  ;;  %1731 = vmatpush.bf16.msrb.mxu3 %v6874_v33  ;;  %v6887_v33 = vld [vmem:[#allocation23_spill] sm:$0xff]  ;;  %v6890_v13 = vld [vmem:[#allocation62_spill] sm:$0xff] }
 0x27a   :  { %1694 = vmatpush.bf16.msrb.mxu0 %v4401_v34  ;;  %1720 = vmatpush.bf16.msrb.mxu2 %v4419_v42 }
 0x27c   :  { %1634 = vmatmul.bf16.vlgmr.msra.gmra.mxu1 %v1560_v17  ;;  %1660 = vmatmul.bf16.vlgmr.msra.gmra.mxu3 %v1560_v17  ;;  %v6885_v17 = vld [vmem:[#allocation52_spill] sm:$0xff] }
 0x27d   :  { %1706 = vmatpush.bf16.msrb.mxu1 %v6877_v38  ;;  %1732 = vmatpush.bf16.msrb.mxu3 %v6878_v46  ;;  %v6888_v38 = vld [vmem:[#allocation25_spill] sm:$0xff]  ;;  %v6889_v46 = vld [vmem:[#allocation60_spill] sm:$0xff] }
 0x27e   :  { %1695 = vmatpush.bf16.msrb.mxu0 %v6875_v21  ;;  %1721 = vmatpush.bf16.msrb.mxu2 %v6876_v4 }
 0x281   :  { %1707 = vmatpush.bf16.msrb.mxu1 %v6883_v5  ;;  %1733 = vmatpush.bf16.msrb.mxu3 %v6884_v57  ;;  %v6894_v5 = vld [vmem:[#allocation51_spill] sm:$0xff]  ;;  %v6895_v57 = vld [vmem:[#allocation65_spill] sm:$0xff] }
 0x282   :  { %1696 = vmatpush.bf16.msrb.mxu0 %v6879_v39  ;;  %1722 = vmatpush.bf16.msrb.mxu2 %v6880_v62  ;;  %v6891_v62 = vld [vmem:[#allocation27_spill] sm:$0xff] }
 0x285   :  { %1708 = vmatpush.bf16.msrb.mxu1 %v6887_v33  ;;  %1734 = vmatpush.bf16.msrb.mxu3 %v6888_v38  ;;  %v6898_v33 = vld [vmem:[#allocation59_spill] sm:$0xff]  ;;  %v6899_v38 = vld [vmem:[#allocation72_spill] sm:$0xff] }
 0x286   :  { %1764 = vmatpush.bf16.msra.mxu0 %v6881_v55  ;;  %1790 = vmatpush.bf16.msra.mxu2 %v6882_v30  ;;  %v6892_v55 = vld [vmem:[#allocation29_spill] sm:$0xff] }
 0x287   :  { %v6893_v30 = vld [vmem:[#allocation49_spill] sm:$0xff] }
 0x289   :  { %1709 = vmatpush.bf16.msrb.mxu1 %v6891_v62  ;;  %1735 = vmatpush.bf16.msrb.mxu3 %v6892_v55  ;;  %v6902_v62 = vld [vmem:[#allocation63_spill] sm:$0xff]  ;;  %v6903_v55 = vld [vmem:[#allocation76_spill] sm:$0xff] }
 0x28a   :  { %1765 = vmatpush.bf16.msra.mxu0 %v6885_v17  ;;  %1791 = vmatpush.bf16.msra.mxu2 %v6886_v31  ;;  %v6896_v17 = vld [vmem:[#allocation68_spill] sm:$0xff]  ;;  %v6897_v31 = vld [vmem:[#allocation55_spill] sm:$0xff] }
 0x28d   :  { %1777 = vmatpush.bf16.msra.mxu1 %v6893_v30  ;;  %1803 = vmatpush.bf16.msra.mxu3 %v6894_v5  ;;  %v6904_v30 = vld [vmem:[#allocation80_spill] sm:$0xff]  ;;  %v6905_v5 = vld [vmem:[#allocation67_spill] sm:$0xff] }
 0x28e   :  { %1766 = vmatpush.bf16.msra.mxu0 %v6889_v46  ;;  %1792 = vmatpush.bf16.msra.mxu2 %v6890_v13  ;;  %v6900_v46 = vld [vmem:[#allocation74_spill] sm:$0xff]  ;;  %v6901_v13 = vld [vmem:[#allocation61_spill] sm:$0xff] }
 0x291   :  { %1778 = vmatpush.bf16.msra.mxu1 %v6897_v31  ;;  %1804 = vmatpush.bf16.msra.mxu3 %v6898_v33  ;;  %v6908_v31 = vld [vmem:[#allocation86_spill] sm:$0xff]  ;;  %v6909_v33 = vld [vmem:[#allocation73_spill] sm:$0xff] }
 0x292   :  { %1767 = vmatpush.bf16.msra.mxu0 %v6895_v57  ;;  %1793 = vmatpush.bf16.msra.mxu2 %v6896_v17  ;;  %v6906_v57 = vld [vmem:[#allocation70_spill] sm:$0xff]  ;;  %v6907_v17 = vld [vmem:[#allocation84_spill] sm:$0xff] }
 0x295   :  { %1779 = vmatpush.bf16.msra.mxu1 %v6901_v13  ;;  %1805 = vmatpush.bf16.msra.mxu3 %v6902_v62  ;;  %v6912_v13 = vld [vmem:[#allocation92_spill] sm:$0xff]  ;;  %v6913_v62 = vld [vmem:[#allocation79_spill] sm:$0xff] }
 0x296   :  { %1768 = vmatpush.bf16.msra.mxu0 %v6899_v38  ;;  %1794 = vmatpush.bf16.msra.mxu2 %v6900_v46  ;;  %v6910_v38 = vld [vmem:[#allocation75_spill] sm:$0xff]  ;;  %v6911_v46 = vld [vmem:[#allocation89_spill] sm:$0xff] }
 0x299   :  { %1780 = vmatpush.bf16.msra.mxu1 %v6905_v5  ;;  %1806 = vmatpush.bf16.msra.mxu3 %v6906_v57  ;;  %v6916_v5 = vld [vmem:[#allocation87_spill] sm:$0xff] }
 0x29a   :  { %1769 = vmatpush.bf16.msra.mxu0 %v6903_v55  ;;  %1795 = vmatpush.bf16.msra.mxu2 %v6904_v30  ;;  %v6914_v55 = vld [vmem:[#allocation83_spill] sm:$0xff]  ;;  %v6915_v30 = vld [vmem:[#allocation85_spill] sm:$0xff] }
 0x29b   :  { %v6917_v57 = vld [vmem:[#allocation91_spill] sm:$0xff] }
 0x29d   :  { %1781 = vmatpush.bf16.msra.mxu1 %v6909_v33  ;;  %1807 = vmatpush.bf16.msra.mxu3 %v6910_v38  ;;  %v6920_v33 = vld [vmem:[#allocation41_spill] sm:$0xff]  ;;  %v6921_v38 = vld [vmem:[#allocation34_spill] sm:$0xff] }
 0x29e   :  { %1770 = vmatpush.bf16.msra.mxu0 %v6907_v17  ;;  %1796 = vmatpush.bf16.msra.mxu2 %v6908_v31  ;;  %v6918_v17 = vld [vmem:[#allocation93_spill] sm:$0xff]  ;;  %v6919_v31 = vld [vmem:[#allocation32_spill] sm:$0xff] }
 0x29f   :  { %v281_v39 = vadd.f32 %v6920_v33, %v6919_v31 }
 0x2a1   :  { %1782 = vmatpush.bf16.msra.mxu1 %v6913_v62  ;;  %1808 = vmatpush.bf16.msra.mxu3 %v6914_v55 }
 0x2a2   :  { %1771 = vmatpush.bf16.msra.mxu0 %v6911_v46  ;;  %1797 = vmatpush.bf16.msra.mxu2 %v6912_v13  ;;  %v310_v46 = vadd.f32 %v6922_v8, %v6921_v38 }
 0x2a5   :  { %1783 = vmatpush.bf16.msra.mxu1 %v6915_v30  ;;  %1809 = vmatpush.bf16.msra.mxu3 %v6916_v5  ;;  %v6923_v30 = vld [vmem:[#allocation38_spill] sm:$0xff] }
 0x2a6   :  { %v339_v5 = vadd.f32 %v6924_v60, %v6923_v30 }
 0x2a9   :  { %1784 = vmatpush.bf16.msra.mxu1 %v6917_v57  ;;  %1810 = vmatpush.bf16.msra.mxu3 %v6918_v17  ;;  %v6926_v57 = vld [vmem:[#allocation45_spill] sm:$0xff] }
 0x2aa   :  { %v368_v42 = vadd.f32 %v6926_v57, %v6925_v53 }
 0x2c1   :  { %v1495_v1 = vpop.f32.mrf.mxu0  ;;  %v1508_v13 = vpop.f32.mrf.mxu1 }
 0x2c2   :  { %v1538_v4 = vadd.f32 %v1495_v1, %v281_v39  ;;  %v1539_v62 = vadd.f32 %v1508_v13, %v310_v46 }
 0x2c4   :  { %v1542_v21 = vmul.f32 0.5, %v1538_v4  ;;  %v1546_v55 = vmul.f32 0.5, %v1539_v62 }
 0x2c6   :  { %3858 = vtanh.f32 %v1542_v21 }
 0x2c7   :  { %3860 = vtanh.f32 %v1546_v55 }
 0x2c8   :  { %v1521_v17 = vpop.f32.mrf.mxu2  ;;  %v1534_v34 = vpop.f32.mrf.mxu3 }
 0x2c9   :  { %v1540_v33 = vadd.f32 %v1521_v17, %v339_v5  ;;  %v1541_v31 = vadd.f32 %v1534_v34, %v368_v42  ;;  %v1497_v48 = vpop.f32.mrf.mxu0  ;;  %v1510_v8 = vpop.f32.mrf.mxu1 }
 0x2cb   :  { %3862 = vtanh.f32 %v1540_v33  ;;  %v1551_v38 = vmul.f32 0.5, %v1541_v31 }
 0x2cc   :  { %v3859_v1 = vpop.eup %3858 }
 0x2cd   :  { %v3861_v13 = vpop.eup %3860  ;;  %v1544_v4 = vmul.f32 0.5, %v3859_v1  ;;  %3864 = vtanh.f32 %v1551_v38 }
 0x2ce   :  { %v1548_v46 = vmul.f32 0.5, %v3861_v13 }
 0x2cf   :  { %v1545_v21 = vadd.f32 0.5, %v1544_v4 }
 0x2d0   :  { %v1549_v39 = vadd.f32 0.5, %v1548_v46  ;;  %v1523_v60 = vpop.f32.mrf.mxu2  ;;  %v1536_v62 = vpop.f32.mrf.mxu3 }
 0x2d1   :  { %v3863_v30 = vpop.eup %3862  ;;  %v1570_v57 = vpop.f32.mrf.mxu0 }
 0x2d2   :  { %v1555_v55 = vmul.f32 %v1549_v39, %v5439_v26  ;;  %v1556_v53 = vmul.f32 %v3863_v30, %v1545_v21  ;;  %v1571_v30 = vadd.f32 %v1570_v57, %v5305_v23  ;;  %v6927_v21 = vld [vmem:[#allocation30_spill] sm:$0xff] }
 0x2d3   :  { %v3865_v5 = vpop.eup %3864 }
 0x2d4   :  { %v5569_v34 = vadd.f32 %v1556_v53, %v1555_v55  ;;  %v1553_v48 = vmul.f32 0.5, %v3865_v5  ;;  %v6928_v5 = vld [vmem:[#allocation109_spill] sm:$0xff] }
 0x2d6   :  { %3866 = vtanh.f32 %v5569_v34  ;;  %v1554_v17 = vadd.f32 0.5, %v1553_v48 }
 0x2d8   :  { %v1596_v42 = vpop.f32.mrf.mxu2 }
 0x2d9   :  { %v1572_v31 = vpop.f32.mrf.mxu0  ;;  %v1597_v39 = vadd.f32 %v1596_v42, %v6927_v21  ;;  %v6929_v42 = vld [vmem:[#allocation111_spill] sm:$0xff] }
 0x2dc   :  { %v3867_v33 = vpop.eup %3866 }
 0x2dd   :  { %v1559_v38 = vmul.f32 %v3867_v33, %v1554_v17  ;;  %v6930_v17 = vld [vmem:[#allocation113_spill] sm:$0xff] }
 0x2df   :  { %v5572_v8 = vpack.c.bf16 %v1559_v38, %v1559_v38  ;;  %v6931_v38 = vld [vmem:[#allocation31_spill] sm:$0xff] }
 0x2e0   :  { %v1598_v1 = vpop.f32.mrf.mxu2 }
 0x2e1   :  { %1697 = vmatmul.bf16.vlgmr.msrb.gmra.mxu0 %v5572_v8  ;;  %1710 = vmatmul.bf16.vlgmr.msrb.gmra.mxu1 %v5572_v8 }
 0x2e2   :  { %1723 = vmatmul.bf16.vlgmr.msrb.gmra.mxu2 %v5572_v8  ;;  %1736 = vmatmul.bf16.vlgmr.msrb.gmra.mxu3 %v5572_v8  ;;  %v1622_v53 = vpop.f32.mrf.mxu0 }
 0x2e3   :  { %1816 = vmatpush.bf16.msrb.mxu0 %v6860_v14  ;;  %1842 = vmatpush.bf16.msrb.mxu2 %v6861_v11  ;;  %v1623_v1 = vadd.f32 %v1622_v53, %v6931_v38  ;;  %v6932_v53 = vld [vmem:[#allocation33_spill] sm:$0xff] }
 0x2e4   :  { %1829 = vmatpush.bf16.msrb.mxu1 %v6863_v40  ;;  %1855 = vmatpush.bf16.msrb.mxu3 %v6864_v0 }
 0x2e7   :  { %1817 = vmatpush.bf16.msrb.mxu0 %v6865_v2  ;;  %1843 = vmatpush.bf16.msrb.mxu2 %v6866_v50 }
 0x2e8   :  { %v1648_v26 = vpop.f32.mrf.mxu2  ;;  %1830 = vmatpush.bf16.msrb.mxu1 %v6867_v3  ;;  %1856 = vmatpush.bf16.msrb.mxu3 %v6868_v28 }
 0x2e9   :  { %v1583_v13 = vpop.f32.mrf.mxu1 }
 0x2ea   :  { %v1624_v4 = vpop.f32.mrf.mxu0  ;;  %v1584_v46 = vadd.f32 %v1583_v13, %v1571_v30 }
 0x2eb   :  { %1818 = vmatpush.bf16.msrb.mxu0 %v6807_v25  ;;  %1844 = vmatpush.bf16.msrb.mxu2 %v6808_v54 }
 0x2ec   :  { %1831 = vmatpush.bf16.msrb.mxu1 %v6809_v63  ;;  %1857 = vmatpush.bf16.msrb.mxu3 %v6810_v29  ;;  %v1665_v60 = vmul.f32 0.5, %v1584_v46 }
 0x2ee   :  { %3868 = vtanh.f32 %v1665_v60 }
 0x2ef   :  { %1819 = vmatpush.bf16.msrb.mxu0 %v6811_v19  ;;  %1845 = vmatpush.bf16.msrb.mxu2 %v6812_v36  ;;  %v1609_v62 = vpop.f32.mrf.mxu3 }
 0x2f0   :  { %v1610_v57 = vadd.f32 %v1609_v62, %v1597_v39  ;;  %v1650_v55 = vpop.f32.mrf.mxu2  ;;  %1832 = vmatpush.bf16.msrb.mxu1 %v6814_v18  ;;  %1858 = vmatpush.bf16.msrb.mxu3 %v6928_v5  ;;  %v1649_v62 = vadd.f32 %v1648_v26, %v6932_v53 }
 0x2f1   :  { %1772 = vmatmul.bf16.vlgmr.msra.gmra.mxu0 %v5572_v8  ;;  %v1585_v48 = vpop.f32.mrf.mxu1 }
 0x2f2   :  { %v1669_v31 = vmul.f32 0.5, %v1610_v57  ;;  %1798 = vmatmul.bf16.vlgmr.msra.gmra.mxu2 %v5572_v8 }
 0x2f3   :  { %1820 = vmatpush.bf16.msrb.mxu0 %v6816_v43  ;;  %1846 = vmatpush.bf16.msrb.mxu2 %v6817_v10 }
 0x2f4   :  { %3870 = vtanh.f32 %v1669_v31  ;;  %1833 = vmatpush.bf16.msrb.mxu1 %v6929_v42  ;;  %1859 = vmatpush.bf16.msrb.mxu3 %v6930_v17  ;;  %v3869_v30 = vpop.eup %3868 }
 0x2f5   :  { %v1667_v60 = vmul.f32 0.5, %v3869_v30 }
 0x2f7   :  { %1821 = vmatpush.bf16.msrb.mxu0 %v6820_v45  ;;  %1847 = vmatpush.bf16.msrb.mxu2 %v5152_v24  ;;  %v1611_v33 = vpop.f32.mrf.mxu3  ;;  %v1668_v31 = vadd.f32 0.5, %v1667_v60 }
 0x2f8   :  { %1834 = vmatpush.bf16.msrb.mxu1 %v6821_v52  ;;  %1860 = vmatpush.bf16.msrb.mxu3 %v6822_v16 }
 0x2f9   :  { %v1635_v13 = vpop.f32.mrf.mxu1 }
 0x2fa   :  { %v3871_v4 = vpop.eup %3870  ;;  %v1636_v46 = vadd.f32 %v1635_v13, %v1623_v1 }
 0x2fb   :  { %v1671_v39 = vmul.f32 0.5, %v3871_v4  ;;  %1822 = vmatpush.bf16.msrb.mxu0 %v5176_v6  ;;  %1848 = vmatpush.bf16.msrb.mxu2 %v5188_v44 }
 0x2fc   :  { %3872 = vtanh.f32 %v1636_v46  ;;  %1835 = vmatpush.bf16.msrb.mxu1 %v5178_v12  ;;  %1861 = vmatpush.bf16.msrb.mxu3 %v5190_v27 }
 0x2fd   :  { %v1672_v57 = vadd.f32 0.5, %v1671_v39 }
 0x2ff   :  { %1823 = vmatpush.bf16.msrb.mxu0 %v5212_v58  ;;  %1849 = vmatpush.bf16.msrb.mxu2 %v5218_v56  ;;  %v1661_v55 = vpop.f32.mrf.mxu3  ;;  %v1678_v26 = vmul.f32 %v1672_v57, %v5479_v15 }
 0x300   :  { %v1662_v48 = vadd.f32 %v1661_v55, %v1649_v62  ;;  %1836 = vmatpush.bf16.msrb.mxu1 %v5214_v51  ;;  %1862 = vmatpush.bf16.msrb.mxu3 %v5220_v35  ;;  %v6934_v55 = vld [vmem:[#allocation5_spill] sm:$0xff] }
 0x301   :  { %v1637_v33 = vpop.f32.mrf.mxu1 }
 0x302   :  { %v3873_v1 = vpop.eup %3872  ;;  %v1674_v30 = vmul.f32 0.5, %v1662_v48  ;;  %1824 = vmatmul.bf16.vlgmr.msrb.gmra.mxu0 %v5572_v8  ;;  %1850 = vmatmul.bf16.vlgmr.msrb.gmra.mxu2 %v5572_v8  ;;  %v6935_v48 = vld [vmem:[#allocation18_spill] sm:$0xff] }
 0x303   :  { %1892 = vmatpush.bf16.msra.mxu0 %v4221_v37  ;;  %1918 = vmatpush.bf16.msra.mxu2 %v4249_v47  ;;  %v1679_v13 = vmul.f32 %v3873_v1, %v1668_v31  ;;  %v6936_v31 = vld [vmem:[#allocation20_spill] sm:$0xff]  ;;  %v6937_v33 = vld [vmem:[#allocation6_spill] sm:$0xff]  ;;  %v6938_v1 = vld [vmem:[#allocation7_spill] sm:$0xff] }
 0x304   :  { %3874 = vtanh.f32 %v1674_v30  ;;  %v6939_v30 = vld [vmem:[#allocation22_spill] sm:$0xff] }
 0x305   :  { %v5621_v4 = vadd.f32 %v1679_v13, %v1678_v26  ;;  %v6940_v26 = vld [vmem:[#allocation24_spill] sm:$0xff] }
 0x306   :  { %v6941_v13 = vld [vmem:[#allocation8_spill] sm:$0xff] }
 0x307   :  { %1893 = vmatpush.bf16.msra.mxu0 %v4254_v49  ;;  %1919 = vmatpush.bf16.msra.mxu2 %v4284_v59  ;;  %3876 = vtanh.f32 %v5621_v4  ;;  %v1663_v46 = vpop.f32.mrf.mxu3 }
 0x308   :  { %v6942_v46 = vld [vmem:[#allocation9_spill] sm:$0xff] }
 0x30a   :  { %v3875_v39 = vpop.eup %3874 }
 0x30b   :  { %1894 = vmatpush.bf16.msra.mxu0 %v4290_v61  ;;  %1920 = vmatpush.bf16.msra.mxu2 %v4320_v7  ;;  %v1676_v60 = vmul.f32 0.5, %v3875_v39  ;;  %v6943_v39 = vld [vmem:[#allocation26_spill] sm:$0xff] }
 0x30d   :  { %v3877_v8 = vpop.eup %3876  ;;  %v1677_v62 = vadd.f32 0.5, %v1676_v60  ;;  %v6944_v60 = vld [vmem:[#allocation28_spill] sm:$0xff] }
 0x30f   :  { %1895 = vmatpush.bf16.msra.mxu0 %v4326_v9  ;;  %1921 = vmatpush.bf16.msra.mxu2 %v4359_v20  ;;  %v5630_v15 = vmul.f32 %v3877_v8, %v1677_v62  ;;  %v6945_v8 = vld [vmem:[#allocation48_spill] sm:$0xff]  ;;  %v6946_v62 = vld [vmem:[#allocation50_spill] sm:$0xff] }
 0x311   :  { %6933 = vst [vmem:[#allocation103_spill] sm:$0xff] %v5630_v15  ;;  %v1763_v57 = vpack.c.bf16 %v5630_v15, %v5630_v15  ;;  %v6947_v15 = vld [vmem:[#allocation11_spill] sm:$0xff] }
 0x313   :  { %1896 = vmatpush.bf16.msra.mxu0 %v4365_v22  ;;  %1922 = vmatpush.bf16.msra.mxu2 %v4395_v32 }
 0x314   :  { %1785 = vmatmul.bf16.vlgmr.msra.gmra.mxu1 %v1763_v57  ;;  %1811 = vmatmul.bf16.vlgmr.msra.gmra.mxu3 %v1763_v57 }
 0x315   :  { %1905 = vmatpush.bf16.msra.mxu1 %v4232_v41  ;;  %1931 = vmatpush.bf16.msra.mxu3 %v6934_v55  ;;  %v6950_v55 = vld [vmem:[#allocation56_spill] sm:$0xff]  ;;  %v6987_v41 = vld [vmem:[#allocation46_spill] sm:$0xff] }
 0x317   :  { %1897 = vmatpush.bf16.msra.mxu0 %v6935_v48  ;;  %1923 = vmatpush.bf16.msra.mxu2 %v6936_v31  ;;  %v6989_v31 = vld [vmem:[#allocation53_spill] sm:$0xff] }
 0x318   :  { %v6990_v48 = vld [vmem:[#allocation57_spill] sm:$0xff] }
 0x319   :  { %1906 = vmatpush.bf16.msra.mxu1 %v6937_v33  ;;  %1932 = vmatpush.bf16.msra.mxu3 %v6938_v1  ;;  %v6948_v33 = vld [vmem:[#allocation13_spill] sm:$0xff]  ;;  %v6949_v1 = vld [vmem:[#allocation52_spill] sm:$0xff] }
 0x31b   :  { %1898 = vmatpush.bf16.msra.mxu0 %v6939_v30  ;;  %1924 = vmatpush.bf16.msra.mxu2 %v6940_v26  ;;  %v6988_v26 = vld [vmem:[#allocation47_spill] sm:$0xff] }
 0x31d   :  { %1907 = vmatpush.bf16.msra.mxu1 %v6941_v13  ;;  %1933 = vmatpush.bf16.msra.mxu3 %v6942_v46  ;;  %v6951_v13 = vld [vmem:[#allocation15_spill] sm:$0xff]  ;;  %v6952_v46 = vld [vmem:[#allocation17_spill] sm:$0xff] }
 0x31f   :  { %1899 = vmatpush.bf16.msra.mxu0 %v6943_v39  ;;  %1925 = vmatpush.bf16.msra.mxu2 %v6944_v60  ;;  %v6953_v39 = vld [vmem:[#allocation60_spill] sm:$0xff]  ;;  %v6954_v60 = vld [vmem:[#allocation62_spill] sm:$0xff] }
 0x321   :  { %1908 = vmatpush.bf16.msra.mxu1 %v6947_v15  ;;  %1934 = vmatpush.bf16.msra.mxu3 %v6948_v33  ;;  %v6957_v15 = vld [vmem:[#allocation65_spill] sm:$0xff]  ;;  %v6958_v33 = vld [vmem:[#allocation68_spill] sm:$0xff] }
 0x323   :  { %1967 = vmatpush.bf16.msrb.mxu0 %v6945_v8  ;;  %1993 = vmatpush.bf16.msrb.mxu2 %v6946_v62  ;;  %v6955_v8 = vld [vmem:[#allocation19_spill] sm:$0xff]  ;;  %v6956_v62 = vld [vmem:[#allocation21_spill] sm:$0xff] }
 0x324   :  { %1837 = vmatmul.bf16.vlgmr.msrb.gmra.mxu1 %v1763_v57  ;;  %1863 = vmatmul.bf16.vlgmr.msrb.gmra.mxu3 %v1763_v57  ;;  %v6961_v57 = vld [vmem:[#allocation72_spill] sm:$0xff] }
 0x325   :  { %1909 = vmatpush.bf16.msra.mxu1 %v6951_v13  ;;  %1935 = vmatpush.bf16.msra.mxu3 %v6952_v46  ;;  %v6962_v13 = vld [vmem:[#allocation74_spill] sm:$0xff]  ;;  %v6963_v46 = vld [vmem:[#allocation27_spill] sm:$0xff] }
 0x327   :  { %1968 = vmatpush.bf16.msrb.mxu0 %v6949_v1  ;;  %1994 = vmatpush.bf16.msrb.mxu2 %v6950_v55  ;;  %v6959_v1 = vld [vmem:[#allocation23_spill] sm:$0xff]  ;;  %v6960_v55 = vld [vmem:[#allocation25_spill] sm:$0xff] }
 0x329   :  { %1910 = vmatpush.bf16.msra.mxu1 %v6955_v8  ;;  %1936 = vmatpush.bf16.msra.mxu3 %v6956_v62  ;;  %v6966_v8 = vld [vmem:[#allocation51_spill] sm:$0xff]  ;;  %v6967_v62 = vld [vmem:[#allocation76_spill] sm:$0xff] }
 0x32b   :  { %1969 = vmatpush.bf16.msrb.mxu0 %v6953_v39  ;;  %1995 = vmatpush.bf16.msrb.mxu2 %v6954_v60  ;;  %v6964_v39 = vld [vmem:[#allocation29_spill] sm:$0xff] }
 0x32c   :  { %v6965_v60 = vld [vmem:[#allocation49_spill] sm:$0xff] }
 0x32d   :  { %1911 = vmatpush.bf16.msra.mxu1 %v6959_v1  ;;  %1937 = vmatpush.bf16.msra.mxu3 %v6960_v55  ;;  %v6970_v1 = vld [vmem:[#allocation59_spill] sm:$0xff]  ;;  %v6971_v55 = vld [vmem:[#allocation84_spill] sm:$0xff] }
 0x32f   :  { %1970 = vmatpush.bf16.msrb.mxu0 %v6957_v15  ;;  %1996 = vmatpush.bf16.msrb.mxu2 %v6958_v33  ;;  %v6968_v15 = vld [vmem:[#allocation80_spill] sm:$0xff]  ;;  %v6969_v33 = vld [vmem:[#allocation55_spill] sm:$0xff] }
 0x331   :  { %1912 = vmatpush.bf16.msra.mxu1 %v6963_v46  ;;  %1938 = vmatpush.bf16.msra.mxu3 %v6964_v39  ;;  %v6974_v46 = vld [vmem:[#allocation63_spill] sm:$0xff]  ;;  %v6975_v39 = vld [vmem:[#allocation89_spill] sm:$0xff] }
 0x333   :  { %1971 = vmatpush.bf16.msrb.mxu0 %v6961_v57  ;;  %1997 = vmatpush.bf16.msrb.mxu2 %v6962_v13  ;;  %v6972_v57 = vld [vmem:[#allocation86_spill] sm:$0xff]  ;;  %v6973_v13 = vld [vmem:[#allocation61_spill] sm:$0xff] }
 0x335   :  { %1980 = vmatpush.bf16.msrb.mxu1 %v6965_v60  ;;  %2006 = vmatpush.bf16.msrb.mxu3 %v6966_v8  ;;  %v6976_v60 = vld [vmem:[#allocation92_spill] sm:$0xff]  ;;  %v6977_v8 = vld [vmem:[#allocation67_spill] sm:$0xff] }
 0x337   :  { %1972 = vmatpush.bf16.msrb.mxu0 %v6967_v62  ;;  %1998 = vmatpush.bf16.msrb.mxu2 %v6968_v15  ;;  %v6978_v62 = vld [vmem:[#allocation70_spill] sm:$0xff]  ;;  %v6979_v15 = vld [vmem:[#allocation73_spill] sm:$0xff] }
 0x339   :  { %1981 = vmatpush.bf16.msrb.mxu1 %v6969_v33  ;;  %2007 = vmatpush.bf16.msrb.mxu3 %v6970_v1  ;;  %v6980_v33 = vld [vmem:[#allocation75_spill] sm:$0xff] }
 0x33a   :  { %v6981_v1 = vld [vmem:[#allocation79_spill] sm:$0xff] }
 0x33b   :  { %1973 = vmatpush.bf16.msrb.mxu0 %v6971_v55  ;;  %1999 = vmatpush.bf16.msrb.mxu2 %v6972_v57  ;;  %v6982_v55 = vld [vmem:[#allocation83_spill] sm:$0xff]  ;;  %v6983_v57 = vld [vmem:[#allocation85_spill] sm:$0xff] }
 0x33d   :  { %1982 = vmatpush.bf16.msrb.mxu1 %v6973_v13  ;;  %2008 = vmatpush.bf16.msrb.mxu3 %v6974_v46  ;;  %v6984_v13 = vld [vmem:[#allocation87_spill] sm:$0xff] }
 0x33e   :  { %v6985_v46 = vld [vmem:[#allocation91_spill] sm:$0xff] }
 0x33f   :  { %1974 = vmatpush.bf16.msrb.mxu0 %v6975_v39  ;;  %2000 = vmatpush.bf16.msrb.mxu2 %v6976_v60  ;;  %v6986_v39 = vld [vmem:[#allocation93_spill] sm:$0xff] }
 0x341   :  { %1983 = vmatpush.bf16.msrb.mxu1 %v6977_v8  ;;  %2009 = vmatpush.bf16.msrb.mxu3 %v6978_v62 }
 0x345   :  { %1984 = vmatpush.bf16.msrb.mxu1 %v6979_v15  ;;  %2010 = vmatpush.bf16.msrb.mxu3 %v6980_v33 }
 0x349   :  { %1985 = vmatpush.bf16.msrb.mxu1 %v6981_v1  ;;  %2011 = vmatpush.bf16.msrb.mxu3 %v6982_v55 }
 0x34d   :  { %1986 = vmatpush.bf16.msrb.mxu1 %v6983_v57  ;;  %2012 = vmatpush.bf16.msrb.mxu3 %v6984_v13 }
 0x351   :  { %1987 = vmatpush.bf16.msrb.mxu1 %v6985_v46  ;;  %2013 = vmatpush.bf16.msrb.mxu3 %v6986_v39 }
 0x35e   :  { %v1698_v60 = vpop.f32.mrf.mxu0  ;;  %v1711_v8 = vpop.f32.mrf.mxu1 }
 0x35f   :  { %v1741_v62 = vadd.f32 %v1698_v60, %v6987_v41  ;;  %v1742_v15 = vadd.f32 %v1711_v8, %v6988_v26 }
 0x361   :  { %v1745_v30 = vmul.f32 0.5, %v1741_v62  ;;  %v1749_v33 = vmul.f32 0.5, %v1742_v15 }
 0x363   :  { %3878 = vtanh.f32 %v1745_v30 }
 0x364   :  { %3880 = vtanh.f32 %v1749_v33 }
 0x365   :  { %v1724_v1 = vpop.f32.mrf.mxu2  ;;  %v1737_v55 = vpop.f32.mrf.mxu3 }
 0x366   :  { %v1743_v57 = vadd.f32 %v1724_v1, %v6989_v31  ;;  %v1744_v13 = vadd.f32 %v1737_v55, %v6990_v48  ;;  %v1700_v32 = vpop.f32.mrf.mxu0  ;;  %v1713_v46 = vpop.f32.mrf.mxu1 }
 0x368   :  { %3882 = vtanh.f32 %v1743_v57  ;;  %v1754_v39 = vmul.f32 0.5, %v1744_v13 }
 0x369   :  { %v3879_v22 = vpop.eup %3878 }
 0x36a   :  { %v3881_v20 = vpop.eup %3880  ;;  %v1747_v9 = vmul.f32 0.5, %v3879_v22  ;;  %3884 = vtanh.f32 %v1754_v39 }
 0x36b   :  { %v1751_v41 = vmul.f32 0.5, %v3881_v20 }
 0x36c   :  { %v1748_v26 = vadd.f32 0.5, %v1747_v9 }
 0x36d   :  { %v1752_v60 = vadd.f32 0.5, %v1751_v41  ;;  %v1726_v15 = vpop.f32.mrf.mxu2  ;;  %v1739_v30 = vpop.f32.mrf.mxu3 }
 0x36e   :  { %v3883_v33 = vpop.eup %3882  ;;  %v1773_v8 = vpop.f32.mrf.mxu0 }
 0x36f   :  { %v1758_v62 = vmul.f32 %v1752_v60, %v5569_v34  ;;  %v1759_v31 = vmul.f32 %v3883_v33, %v1748_v26  ;;  %v1774_v60 = vadd.f32 %v1773_v8, %v5305_v23 }
 0x370   :  { %v3885_v1 = vpop.eup %3884 }
 0x371   :  { %v5695_v55 = vadd.f32 %v1759_v31, %v1758_v62  ;;  %v1756_v32 = vmul.f32 0.5, %v3885_v1 }
 0x373   :  { %3886 = vtanh.f32 %v5695_v55  ;;  %v1757_v22 = vadd.f32 0.5, %v1756_v32 }
 0x375   :  { %v1799_v48 = vpop.f32.mrf.mxu2 }
 0x376   :  { %v1775_v13 = vpop.f32.mrf.mxu0  ;;  %v1800_v33 = vadd.f32 %v1799_v48, %v6927_v21 }
 0x379   :  { %v3887_v20 = vpop.eup %3886 }
 0x37a   :  { %v1762_v46 = vmul.f32 %v3887_v20, %v1757_v22 }
 0x37c   :  { %v1891_v9 = vpack.c.bf16 %v1762_v46, %v1762_v46 }
 0x37d   :  { %v1801_v39 = vpop.f32.mrf.mxu2 }
 0x37e   :  { %1900 = vmatmul.bf16.vlgmr.msra.gmra.mxu0 %v1891_v9  ;;  %1913 = vmatmul.bf16.vlgmr.msra.gmra.mxu1 %v1891_v9 }
 0x37f   :  { %1926 = vmatmul.bf16.vlgmr.msra.gmra.mxu2 %v1891_v9  ;;  %1939 = vmatmul.bf16.vlgmr.msra.gmra.mxu3 %v1891_v9  ;;  %v1825_v57 = vpop.f32.mrf.mxu0 }
 0x380   :  { %2019 = vmatpush.bf16.msra.mxu0 %v6860_v14  ;;  %2045 = vmatpush.bf16.msra.mxu2 %v6861_v11  ;;  %v1826_v13 = vadd.f32 %v1825_v57, %v6931_v38 }
 0x381   :  { %2032 = vmatpush.bf16.msra.mxu1 %v6863_v40  ;;  %2058 = vmatpush.bf16.msra.mxu3 %v6864_v0 }
 0x384   :  { %2020 = vmatpush.bf16.msra.mxu0 %v6865_v2  ;;  %2046 = vmatpush.bf16.msra.mxu2 %v6866_v50 }
 0x385   :  { %v1851_v34 = vpop.f32.mrf.mxu2  ;;  %2033 = vmatpush.bf16.msra.mxu1 %v6867_v3  ;;  %2059 = vmatpush.bf16.msra.mxu3 %v6868_v28 }
 0x387   :  { %v1827_v41 = vpop.f32.mrf.mxu0 }
 0x388   :  { %2021 = vmatpush.bf16.msra.mxu0 %v6807_v25  ;;  %2047 = vmatpush.bf16.msra.mxu2 %v6808_v54 }
 0x389   :  { %2034 = vmatpush.bf16.msra.mxu1 %v6809_v63  ;;  %2060 = vmatpush.bf16.msra.mxu3 %v6810_v29 }
 0x38c   :  { %2022 = vmatpush.bf16.msra.mxu0 %v6811_v19  ;;  %2048 = vmatpush.bf16.msra.mxu2 %v6812_v36 }
 0x38d   :  { %v1853_v26 = vpop.f32.mrf.mxu2  ;;  %2035 = vmatpush.bf16.msra.mxu1 %v6814_v18  ;;  %2061 = vmatpush.bf16.msra.mxu3 %v6928_v5 }
 0x38e   :  { %1975 = vmatmul.bf16.vlgmr.msrb.gmra.mxu0 %v1891_v9 }
 0x38f   :  { %2001 = vmatmul.bf16.vlgmr.msrb.gmra.mxu2 %v1891_v9 }
 0x390   :  { %2023 = vmatpush.bf16.msra.mxu0 %v6816_v43  ;;  %2049 = vmatpush.bf16.msra.mxu2 %v6817_v10 }
 0x391   :  { %v1786_v15 = vpop.f32.mrf.mxu1  ;;  %2036 = vmatpush.bf16.msra.mxu1 %v6929_v42  ;;  %2062 = vmatpush.bf16.msra.mxu3 %v6930_v17 }
 0x392   :  { %v1787_v30 = vadd.f32 %v1786_v15, %v1774_v60  ;;  %v1852_v60 = vadd.f32 %v1851_v34, %v6932_v53  ;;  %v7057_v53 = vld [vmem:[#allocation39_spill] sm:$0xff] }
 0x394   :  { %2024 = vmatpush.bf16.msra.mxu0 %v6820_v45  ;;  %2050 = vmatpush.bf16.msra.mxu2 %v5152_v24  ;;  %v1868_v8 = vmul.f32 0.5, %v1787_v30 }
 0x395   :  { %2037 = vmatpush.bf16.msra.mxu1 %v6821_v52  ;;  %2063 = vmatpush.bf16.msra.mxu3 %v6822_v16 }
 0x396   :  { %3888 = vtanh.f32 %v1868_v8 }
 0x397   :  { %v1812_v62 = vpop.f32.mrf.mxu3 }
 0x398   :  { %v1813_v31 = vadd.f32 %v1812_v62, %v1800_v33  ;;  %2025 = vmatpush.bf16.msra.mxu0 %v5176_v6  ;;  %2051 = vmatpush.bf16.msra.mxu2 %v5188_v44 }
 0x399   :  { %v1788_v1 = vpop.f32.mrf.mxu1  ;;  %2038 = vmatpush.bf16.msra.mxu1 %v5178_v12  ;;  %2064 = vmatpush.bf16.msra.mxu3 %v5190_v27 }
 0x39a   :  { %v1872_v32 = vmul.f32 0.5, %v1813_v31 }
 0x39c   :  { %3890 = vtanh.f32 %v1872_v32  ;;  %2026 = vmatpush.bf16.msra.mxu0 %v5212_v58  ;;  %2052 = vmatpush.bf16.msra.mxu2 %v5218_v56  ;;  %v3889_v22 = vpop.eup %3888  ;;  %v6991_v32 = vld [vmem:[#allocation10_spill] sm:$0xff] }
 0x39d   :  { %2039 = vmatpush.bf16.msra.mxu1 %v5214_v51  ;;  %2065 = vmatpush.bf16.msra.mxu3 %v5220_v35  ;;  %v1870_v26 = vmul.f32 0.5, %v3889_v22  ;;  %v6994_v22 = vld [vmem:[#allocation14_spill] sm:$0xff] }
 0x39f   :  { %v1814_v48 = vpop.f32.mrf.mxu3  ;;  %2027 = vmatmul.bf16.vlgmr.msra.gmra.mxu0 %v1891_v9  ;;  %2053 = vmatmul.bf16.vlgmr.msra.gmra.mxu2 %v1891_v9  ;;  %v1871_v57 = vadd.f32 0.5, %v1870_v26 }
 0x3a0   :  { %2095 = vmatpush.bf16.msrb.mxu0 %v4221_v37  ;;  %2121 = vmatpush.bf16.msrb.mxu2 %v4249_v47  ;;  %v6992_v48 = vld [vmem:[#allocation12_spill] sm:$0xff] }
 0x3a1   :  { %v1838_v20 = vpop.f32.mrf.mxu1 }
 0x3a2   :  { %v3891_v46 = vpop.eup %3890  ;;  %v1839_v39 = vadd.f32 %v1838_v20, %v1826_v13  ;;  %v6995_v20 = vld [vmem:[#allocation16_spill] sm:$0xff] }
 0x3a3   :  { %v1874_v41 = vmul.f32 0.5, %v3891_v46 }
 0x3a4   :  { %2096 = vmatpush.bf16.msrb.mxu0 %v4254_v49  ;;  %2122 = vmatpush.bf16.msrb.mxu2 %v4284_v59  ;;  %3892 = vtanh.f32 %v1839_v39 }
 0x3a5   :  { %v1875_v15 = vadd.f32 0.5, %v1874_v41  ;;  %v6996_v41 = vld [vmem:[#allocation18_spill] sm:$0xff] }
 0x3a7   :  { %v1864_v30 = vpop.f32.mrf.mxu3  ;;  %v1881_v31 = vmul.f32 %v1875_v15, %v5621_v4  ;;  %v6997_v4 = vld [vmem:[#allocation20_spill] sm:$0xff] }
 0x3a8   :  { %2097 = vmatpush.bf16.msrb.mxu0 %v4290_v61  ;;  %2123 = vmatpush.bf16.msrb.mxu2 %v4320_v7  ;;  %v1865_v9 = vadd.f32 %v1864_v30, %v1852_v60  ;;  %v6999_v30 = vld [vmem:[#allocation22_spill] sm:$0xff] }
 0x3a9   :  { %v1840_v33 = vpop.f32.mrf.mxu1 }
 0x3aa   :  { %v3893_v8 = vpop.eup %3892  ;;  %v1877_v62 = vmul.f32 0.5, %v1865_v9  ;;  %v7000_v9 = vld [vmem:[#allocation24_spill] sm:$0xff] }
 0x3ab   :  { %v1882_v1 = vmul.f32 %v3893_v8, %v1871_v57  ;;  %v7001_v33 = vld [vmem:[#allocation4_spill] sm:$0xff]  ;;  %v7002_v8 = vld [vmem:[#allocation5_spill] sm:$0xff] }
 0x3ac   :  { %2098 = vmatpush.bf16.msrb.mxu0 %v6991_v32  ;;  %2124 = vmatpush.bf16.msrb.mxu2 %v6992_v48  ;;  %3894 = vtanh.f32 %v1877_v62  ;;  %v7003_v62 = vld [vmem:[#allocation26_spill] sm:$0xff] }
 0x3ad   :  { %v5743_v34 = vadd.f32 %v1882_v1, %v1881_v31  ;;  %v7004_v31 = vld [vmem:[#allocation28_spill] sm:$0xff] }
 0x3ae   :  { %v7005_v1 = vld [vmem:[#allocation48_spill] sm:$0xff] }
 0x3af   :  { %6993 = vst [vmem:[#allocation105_spill] sm:$0xff] %v5743_v34  ;;  %3896 = vtanh.f32 %v5743_v34  ;;  %v1866_v13 = vpop.f32.mrf.mxu3 }
 0x3b0   :  { %2099 = vmatpush.bf16.msrb.mxu0 %v6994_v22  ;;  %2125 = vmatpush.bf16.msrb.mxu2 %v6995_v20  ;;  %v7006_v13 = vld [vmem:[#allocation50_spill] sm:$0xff] }
 0x3b2   :  { %v3895_v46 = vpop.eup %3894 }
 0x3b3   :  { %v1879_v39 = vmul.f32 0.5, %v3895_v46  ;;  %v7007_v46 = vld [vmem:[#allocation6_spill] sm:$0xff] }
 0x3b4   :  { %2100 = vmatpush.bf16.msrb.mxu0 %v6996_v41  ;;  %2126 = vmatpush.bf16.msrb.mxu2 %v6997_v4  ;;  %v7056_v41 = vld [vmem:[#allocation64_spill] sm:$0xff] }
 0x3b5   :  { %v3897_v26 = vpop.eup %3896  ;;  %v1880_v60 = vadd.f32 0.5, %v1879_v39  ;;  %v7008_v39 = vld [vmem:[#allocation7_spill] sm:$0xff] }
 0x3b7   :  { %v5750_v15 = vmul.f32 %v3897_v26, %v1880_v60  ;;  %v7009_v26 = vld [vmem:[#allocation52_spill] sm:$0xff] }
 0x3b8   :  { %2101 = vmatpush.bf16.msrb.mxu0 %v6999_v30  ;;  %2127 = vmatpush.bf16.msrb.mxu2 %v7000_v9  ;;  %v7010_v60 = vld [vmem:[#allocation56_spill] sm:$0xff]  ;;  %v7054_v9 = vld [vmem:[#allocation58_spill] sm:$0xff] }
 0x3b9   :  { %6998 = vst [vmem:[#allocation106_spill] sm:$0xff] %v5750_v15  ;;  %v1966_v57 = vpack.c.bf16 %v5750_v15, %v5750_v15  ;;  %v7011_v15 = vld [vmem:[#allocation8_spill] sm:$0xff] }
 0x3bb   :  { %1988 = vmatmul.bf16.vlgmr.msrb.gmra.mxu1 %v1966_v57  ;;  %2014 = vmatmul.bf16.vlgmr.msrb.gmra.mxu3 %v1966_v57 }
 0x3bc   :  { %2108 = vmatpush.bf16.msrb.mxu1 %v7001_v33  ;;  %2134 = vmatpush.bf16.msrb.mxu3 %v7002_v8  ;;  %v7012_v33 = vld [vmem:[#allocation9_spill] sm:$0xff]  ;;  %v7013_v8 = vld [vmem:[#allocation60_spill] sm:$0xff] }
 0x3bd   :  { %2102 = vmatpush.bf16.msrb.mxu0 %v7003_v62  ;;  %2128 = vmatpush.bf16.msrb.mxu2 %v7004_v31  ;;  %v7014_v62 = vld [vmem:[#allocation62_spill] sm:$0xff]  ;;  %v7015_v31 = vld [vmem:[#allocation11_spill] sm:$0xff] }
 0x3c0   :  { %2109 = vmatpush.bf16.msrb.mxu1 %v7007_v46  ;;  %2135 = vmatpush.bf16.msrb.mxu3 %v7008_v39  ;;  %v7018_v46 = vld [vmem:[#allocation68_spill] sm:$0xff]  ;;  %v7019_v39 = vld [vmem:[#allocation15_spill] sm:$0xff] }
 0x3c1   :  { %2170 = vmatpush.bf16.msra.mxu0 %v7005_v1  ;;  %2196 = vmatpush.bf16.msra.mxu2 %v7006_v13  ;;  %v7016_v1 = vld [vmem:[#allocation13_spill] sm:$0xff] }
 0x3c2   :  { %v7017_v13 = vld [vmem:[#allocation65_spill] sm:$0xff] }
 0x3c4   :  { %2110 = vmatpush.bf16.msrb.mxu1 %v7011_v15  ;;  %2136 = vmatpush.bf16.msrb.mxu3 %v7012_v33  ;;  %v7021_v15 = vld [vmem:[#allocation72_spill] sm:$0xff]  ;;  %v7022_v33 = vld [vmem:[#allocation74_spill] sm:$0xff] }
 0x3c5   :  { %2171 = vmatpush.bf16.msra.mxu0 %v7009_v26  ;;  %2197 = vmatpush.bf16.msra.mxu2 %v7010_v60  ;;  %v7020_v60 = vld [vmem:[#allocation17_spill] sm:$0xff] }
 0x3c8   :  { %2111 = vmatpush.bf16.msrb.mxu1 %v7015_v31  ;;  %2137 = vmatpush.bf16.msrb.mxu3 %v7016_v1  ;;  %v7025_v31 = vld [vmem:[#allocation76_spill] sm:$0xff] }
 0x3c9   :  { %2172 = vmatpush.bf16.msra.mxu0 %v7013_v8  ;;  %2198 = vmatpush.bf16.msra.mxu2 %v7014_v62  ;;  %v7023_v8 = vld [vmem:[#allocation19_spill] sm:$0xff]  ;;  %v7024_v62 = vld [vmem:[#allocation21_spill] sm:$0xff]  ;;  %v7026_v1 = vld [vmem:[#allocation80_spill] sm:$0xff] }
 0x3cb   :  { %2040 = vmatmul.bf16.vlgmr.msra.gmra.mxu1 %v1966_v57  ;;  %2066 = vmatmul.bf16.vlgmr.msra.gmra.mxu3 %v1966_v57  ;;  %v7029_v57 = vld [vmem:[#allocation84_spill] sm:$0xff] }
 0x3cc   :  { %2112 = vmatpush.bf16.msrb.mxu1 %v7019_v39  ;;  %2138 = vmatpush.bf16.msrb.mxu3 %v7020_v60  ;;  %v7030_v39 = vld [vmem:[#allocation86_spill] sm:$0xff]  ;;  %v7031_v60 = vld [vmem:[#allocation27_spill] sm:$0xff] }
 0x3cd   :  { %2173 = vmatpush.bf16.msra.mxu0 %v7017_v13  ;;  %2199 = vmatpush.bf16.msra.mxu2 %v7018_v46  ;;  %v7027_v13 = vld [vmem:[#allocation23_spill] sm:$0xff]  ;;  %v7028_v46 = vld [vmem:[#allocation25_spill] sm:$0xff] }
 0x3d0   :  { %2113 = vmatpush.bf16.msrb.mxu1 %v7023_v8  ;;  %2139 = vmatpush.bf16.msrb.mxu3 %v7024_v62  ;;  %v7034_v8 = vld [vmem:[#allocation51_spill] sm:$0xff]  ;;  %v7035_v62 = vld [vmem:[#allocation89_spill] sm:$0xff] }
 0x3d1   :  { %2174 = vmatpush.bf16.msra.mxu0 %v7021_v15  ;;  %2200 = vmatpush.bf16.msra.mxu2 %v7022_v33  ;;  %v7032_v15 = vld [vmem:[#allocation29_spill] sm:$0xff] }
 0x3d2   :  { %v7033_v33 = vld [vmem:[#allocation49_spill] sm:$0xff] }
 0x3d4   :  { %2114 = vmatpush.bf16.msrb.mxu1 %v7027_v13  ;;  %2140 = vmatpush.bf16.msrb.mxu3 %v7028_v46  ;;  %v7038_v13 = vld [vmem:[#allocation59_spill] sm:$0xff]  ;;  %v7039_v46 = vld [vmem:[#allocation61_spill] sm:$0xff] }
 0x3d5   :  { %2175 = vmatpush.bf16.msra.mxu0 %v7025_v31  ;;  %2201 = vmatpush.bf16.msra.mxu2 %v7026_v1  ;;  %v7036_v31 = vld [vmem:[#allocation92_spill] sm:$0xff]  ;;  %v7037_v1 = vld [vmem:[#allocation55_spill] sm:$0xff] }
 0x3d8   :  { %2115 = vmatpush.bf16.msrb.mxu1 %v7031_v60  ;;  %2141 = vmatpush.bf16.msrb.mxu3 %v7032_v15  ;;  %v7042_v60 = vld [vmem:[#allocation70_spill] sm:$0xff]  ;;  %v7043_v15 = vld [vmem:[#allocation73_spill] sm:$0xff] }
 0x3d9   :  { %2176 = vmatpush.bf16.msra.mxu0 %v7029_v57  ;;  %2202 = vmatpush.bf16.msra.mxu2 %v7030_v39  ;;  %v7040_v57 = vld [vmem:[#allocation63_spill] sm:$0xff] }
 0x3da   :  { %v7041_v39 = vld [vmem:[#allocation67_spill] sm:$0xff] }
 0x3dc   :  { %2183 = vmatpush.bf16.msra.mxu1 %v7033_v33  ;;  %2209 = vmatpush.bf16.msra.mxu3 %v7034_v8  ;;  %v7044_v33 = vld [vmem:[#allocation75_spill] sm:$0xff] }
 0x3dd   :  { %2177 = vmatpush.bf16.msra.mxu0 %v7035_v62  ;;  %2203 = vmatpush.bf16.msra.mxu2 %v7036_v31  ;;  %v7045_v8 = vld [vmem:[#allocation79_spill] sm:$0xff]  ;;  %v7047_v31 = vld [vmem:[#allocation85_spill] sm:$0xff] }
 0x3de   :  { %v7046_v62 = vld [vmem:[#allocation83_spill] sm:$0xff] }
 0x3e0   :  { %2184 = vmatpush.bf16.msra.mxu1 %v7037_v1  ;;  %2210 = vmatpush.bf16.msra.mxu3 %v7038_v13  ;;  %v7048_v1 = vld [vmem:[#allocation87_spill] sm:$0xff] }
 0x3e1   :  { %v7049_v13 = vld [vmem:[#allocation91_spill] sm:$0xff] }
 0x3e4   :  { %2185 = vmatpush.bf16.msra.mxu1 %v7039_v46  ;;  %2211 = vmatpush.bf16.msra.mxu3 %v7040_v57  ;;  %v7050_v46 = vld [vmem:[#allocation93_spill] sm:$0xff]  ;;  %v7051_v57 = vld [vmem:[#allocation32_spill] sm:$0xff] }
 0x3e8   :  { %2186 = vmatpush.bf16.msra.mxu1 %v7041_v39  ;;  %2212 = vmatpush.bf16.msra.mxu3 %v7042_v60  ;;  %v7052_v39 = vld [vmem:[#allocation54_spill] sm:$0xff] }
 0x3e9   :  { %v286_v26 = vadd.f32 %v7052_v39, %v7051_v57  ;;  %v7053_v60 = vld [vmem:[#allocation34_spill] sm:$0xff] }
 0x3ec   :  { %2187 = vmatpush.bf16.msra.mxu1 %v7043_v15  ;;  %2213 = vmatpush.bf16.msra.mxu3 %v7044_v33  ;;  %v315_v15 = vadd.f32 %v7054_v9, %v7053_v60 }
 0x3f0   :  { %2188 = vmatpush.bf16.msra.mxu1 %v7045_v8  ;;  %2214 = vmatpush.bf16.msra.mxu3 %v7046_v62 }
 0x3f4   :  { %2189 = vmatpush.bf16.msra.mxu1 %v7047_v31  ;;  %2215 = vmatpush.bf16.msra.mxu3 %v7048_v1  ;;  %v7055_v31 = vld [vmem:[#allocation38_spill] sm:$0xff] }
 0x3f5   :  { %v344_v1 = vadd.f32 %v7056_v41, %v7055_v31 }
 0x3f8   :  { %2190 = vmatpush.bf16.msra.mxu1 %v7049_v13  ;;  %2216 = vmatpush.bf16.msra.mxu3 %v7050_v46  ;;  %v7058_v13 = vld [vmem:[#allocation66_spill] sm:$0xff] }
 0x3f9   :  { %v373_v20 = vadd.f32 %v7058_v13, %v7057_v53 }
 0x3fb   :  { %v1901_v30 = vpop.f32.mrf.mxu0  ;;  %v1914_v33 = vpop.f32.mrf.mxu1 }
 0x3fc   :  { %v1944_v34 = vadd.f32 %v1901_v30, %v286_v26  ;;  %v1945_v8 = vadd.f32 %v1914_v33, %v315_v15 }
 0x3fe   :  { %v1948_v4 = vmul.f32 0.5, %v1944_v34  ;;  %v1952_v62 = vmul.f32 0.5, %v1945_v8 }
 0x400   :  { %3898 = vtanh.f32 %v1948_v4 }
 0x401   :  { %3900 = vtanh.f32 %v1952_v62 }
 0x402   :  { %v1927_v46 = vpop.f32.mrf.mxu2  ;;  %v1940_v22 = vpop.f32.mrf.mxu3 }
 0x403   :  { %v1946_v39 = vadd.f32 %v1927_v46, %v344_v1  ;;  %v1947_v57 = vadd.f32 %v1940_v22, %v373_v20  ;;  %v1903_v48 = vpop.f32.mrf.mxu0  ;;  %v1916_v9 = vpop.f32.mrf.mxu1 }
 0x405   :  { %3902 = vtanh.f32 %v1946_v39  ;;  %v1957_v60 = vmul.f32 0.5, %v1947_v57 }
 0x406   :  { %v3899_v30 = vpop.eup %3898 }
 0x407   :  { %v3901_v15 = vpop.eup %3900  ;;  %v1950_v34 = vmul.f32 0.5, %v3899_v30  ;;  %3904 = vtanh.f32 %v1957_v60 }
 0x408   :  { %v1954_v33 = vmul.f32 0.5, %v3901_v15 }
 0x409   :  { %v1951_v4 = vadd.f32 0.5, %v1950_v34 }
 0x40a   :  { %v1955_v8 = vadd.f32 0.5, %v1954_v33  ;;  %v1929_v41 = vpop.f32.mrf.mxu2  ;;  %v1942_v26 = vpop.f32.mrf.mxu3 }
 0x40b   :  { %v3903_v31 = vpop.eup %3902  ;;  %v1976_v13 = vpop.f32.mrf.mxu0 }
 0x40c   :  { %v1961_v62 = vmul.f32 %v1955_v8, %v5695_v55  ;;  %v1962_v53 = vmul.f32 %v3903_v31, %v1951_v4  ;;  %v1977_v34 = vadd.f32 %v1976_v13, %v5305_v23 }
 0x40d   :  { %v3905_v1 = vpop.eup %3904 }
 0x40e   :  { %v5815_v22 = vadd.f32 %v1962_v53, %v1961_v62  ;;  %v1959_v48 = vmul.f32 0.5, %v3905_v1 }
 0x410   :  { %3906 = vtanh.f32 %v5815_v22  ;;  %v1960_v57 = vadd.f32 0.5, %v1959_v48 }
 0x412   :  { %v2002_v20 = vpop.f32.mrf.mxu2 }
 0x413   :  { %v1978_v46 = vpop.f32.mrf.mxu0  ;;  %v2003_v8 = vadd.f32 %v2002_v20, %v6927_v21 }
 0x414   :  { %v7059_v46 = vld [vmem:[#allocation12_spill] sm:$0xff] }
 0x416   :  { %v3907_v39 = vpop.eup %3906 }
 0x417   :  { %v1965_v60 = vmul.f32 %v3907_v39, %v1960_v57 }
 0x419   :  { %v2094_v9 = vpack.c.bf16 %v1965_v60, %v1965_v60  ;;  %v7060_v60 = vld [vmem:[#allocation14_spill] sm:$0xff] }
 0x41a   :  { %v2004_v30 = vpop.f32.mrf.mxu2 }
 0x41b   :  { %2103 = vmatmul.bf16.vlgmr.msrb.gmra.mxu0 %v2094_v9  ;;  %2116 = vmatmul.bf16.vlgmr.msrb.gmra.mxu1 %v2094_v9 }
 0x41c   :  { %2129 = vmatmul.bf16.vlgmr.msrb.gmra.mxu2 %v2094_v9  ;;  %2142 = vmatmul.bf16.vlgmr.msrb.gmra.mxu3 %v2094_v9  ;;  %v2028_v15 = vpop.f32.mrf.mxu0 }
 0x41d   :  { %2222 = vmatpush.bf16.msrb.mxu0 %v6860_v14  ;;  %2248 = vmatpush.bf16.msrb.mxu2 %v6861_v11 }
 0x41e   :  { %2235 = vmatpush.bf16.msrb.mxu1 %v6863_v40  ;;  %2261 = vmatpush.bf16.msrb.mxu3 %v6864_v0 }
 0x421   :  { %2223 = vmatpush.bf16.msrb.mxu0 %v6865_v2  ;;  %2249 = vmatpush.bf16.msrb.mxu2 %v6866_v50 }
 0x422   :  { %v5824_v53 = vpop.f32.mrf.mxu2  ;;  %2236 = vmatpush.bf16.msrb.mxu1 %v6867_v3  ;;  %2262 = vmatpush.bf16.msrb.mxu3 %v6868_v28 }
 0x424   :  { %v2030_v55 = vpop.f32.mrf.mxu0 }
 0x425   :  { %2224 = vmatpush.bf16.msrb.mxu0 %v6807_v25  ;;  %2250 = vmatpush.bf16.msrb.mxu2 %v6808_v54 }
 0x426   :  { %2237 = vmatpush.bf16.msrb.mxu1 %v6809_v63  ;;  %2263 = vmatpush.bf16.msrb.mxu3 %v6810_v29 }
 0x429   :  { %2225 = vmatpush.bf16.msrb.mxu0 %v6811_v19  ;;  %2251 = vmatpush.bf16.msrb.mxu2 %v6812_v36 }
 0x42a   :  { %v2056_v31 = vpop.f32.mrf.mxu2  ;;  %2238 = vmatpush.bf16.msrb.mxu1 %v6814_v18  ;;  %2264 = vmatpush.bf16.msrb.mxu3 %v6928_v5 }
 0x42b   :  { %2178 = vmatmul.bf16.vlgmr.msra.gmra.mxu0 %v2094_v9 }
 0x42c   :  { %2204 = vmatmul.bf16.vlgmr.msra.gmra.mxu2 %v2094_v9 }
 0x42d   :  { %2226 = vmatpush.bf16.msrb.mxu0 %v6816_v43  ;;  %2252 = vmatpush.bf16.msrb.mxu2 %v6817_v10 }
 0x42e   :  { %2239 = vmatpush.bf16.msrb.mxu1 %v6929_v42  ;;  %2265 = vmatpush.bf16.msrb.mxu3 %v6930_v17 }
 0x431   :  { %2227 = vmatpush.bf16.msrb.mxu0 %v6820_v45  ;;  %2253 = vmatpush.bf16.msrb.mxu2 %v5152_v24 }
 0x432   :  { %2240 = vmatpush.bf16.msrb.mxu1 %v6821_v52  ;;  %2266 = vmatpush.bf16.msrb.mxu3 %v6822_v16 }
 0x435   :  { %2228 = vmatpush.bf16.msrb.mxu0 %v5176_v6  ;;  %2254 = vmatpush.bf16.msrb.mxu2 %v5188_v44 }
 0x436   :  { %2241 = vmatpush.bf16.msrb.mxu1 %v5178_v12  ;;  %2267 = vmatpush.bf16.msrb.mxu3 %v5190_v27 }
 0x438   :  { %v1989_v33 = vpop.f32.mrf.mxu1 }
 0x439   :  { %2229 = vmatpush.bf16.msrb.mxu0 %v5212_v58  ;;  %2255 = vmatpush.bf16.msrb.mxu2 %v5218_v56  ;;  %v1990_v4 = vadd.f32 %v1989_v33, %v1977_v34  ;;  %v7064_v33 = vld [vmem:[#allocation20_spill] sm:$0xff] }
 0x43a   :  { %2242 = vmatpush.bf16.msrb.mxu1 %v5214_v51  ;;  %2268 = vmatpush.bf16.msrb.mxu3 %v5220_v35 }
 0x43b   :  { %v2071_v41 = vmul.f32 0.5, %v1990_v4 }
 0x43c   :  { %2230 = vmatmul.bf16.vlgmr.msrb.gmra.mxu0 %v2094_v9  ;;  %2256 = vmatmul.bf16.vlgmr.msrb.gmra.mxu2 %v2094_v9  ;;  %v7061_v9 = vld [vmem:[#allocation16_spill] sm:$0xff] }
 0x43d   :  { %2298 = vmatpush.bf16.msra.mxu0 %v4221_v37  ;;  %2324 = vmatpush.bf16.msra.mxu2 %v4249_v47  ;;  %3908 = vtanh.f32 %v2071_v41  ;;  %v2029_v47 = vadd.f32 %v2028_v15, %v6931_v38  ;;  %v7065_v41 = vld [vmem:[#allocation105_spill] sm:$0xff] }
 0x43e   :  { %v2015_v26 = vpop.f32.mrf.mxu3 }
 0x43f   :  { %v2016_v13 = vadd.f32 %v2015_v26, %v2003_v8 }
 0x440   :  { %v1991_v62 = vpop.f32.mrf.mxu1 }
 0x441   :  { %2299 = vmatpush.bf16.msra.mxu0 %v4254_v49  ;;  %2325 = vmatpush.bf16.msra.mxu2 %v4284_v59  ;;  %v2075_v1 = vmul.f32 0.5, %v2016_v13 }
 0x443   :  { %3910 = vtanh.f32 %v2075_v1  ;;  %v3909_v48 = vpop.eup %3908  ;;  %v7067_v1 = vld [vmem:[#allocation22_spill] sm:$0xff] }
 0x444   :  { %v2073_v59 = vmul.f32 0.5, %v3909_v48  ;;  %v7070_v48 = vld [vmem:[#allocation28_spill] sm:$0xff] }
 0x445   :  { %2300 = vmatpush.bf16.msra.mxu0 %v4290_v61  ;;  %2326 = vmatpush.bf16.msra.mxu2 %v4320_v7  ;;  %v7062_v61 = vld [vmem:[#allocation33_spill] sm:$0xff] }
 0x446   :  { %v2017_v37 = vpop.f32.mrf.mxu3  ;;  %v2055_v7 = vadd.f32 %v5824_v53, %v7062_v61  ;;  %v2074_v31 = vadd.f32 0.5, %v2073_v59  ;;  %v7068_v53 = vld [vmem:[#allocation24_spill] sm:$0xff] }
 0x448   :  { %v2041_v20 = vpop.f32.mrf.mxu1 }
 0x449   :  { %2301 = vmatpush.bf16.msra.mxu0 %v6991_v32  ;;  %2327 = vmatpush.bf16.msra.mxu2 %v7059_v46  ;;  %v3911_v57 = vpop.eup %3910  ;;  %v2042_v49 = vadd.f32 %v2041_v20, %v2029_v47  ;;  %v7063_v32 = vld [vmem:[#allocation18_spill] sm:$0xff]  ;;  %v7071_v46 = vld [vmem:[#allocation48_spill] sm:$0xff] }
 0x44a   :  { %v2077_v39 = vmul.f32 0.5, %v3911_v57  ;;  %v7069_v47 = vld [vmem:[#allocation26_spill] sm:$0xff] }
 0x44b   :  { %3912 = vtanh.f32 %v2042_v49  ;;  %v7072_v57 = vld [vmem:[#allocation50_spill] sm:$0xff] }
 0x44c   :  { %v2078_v30 = vadd.f32 0.5, %v2077_v39 }
 0x44d   :  { %2302 = vmatpush.bf16.msra.mxu0 %v7060_v60  ;;  %2328 = vmatpush.bf16.msra.mxu2 %v7061_v9  ;;  %v7073_v60 = vld [vmem:[#allocation52_spill] sm:$0xff] }
 0x44e   :  { %v2067_v15 = vpop.f32.mrf.mxu3  ;;  %v2084_v26 = vmul.f32 %v2078_v30, %v7065_v41  ;;  %v7074_v9 = vld [vmem:[#allocation56_spill] sm:$0xff] }
 0x44f   :  { %v2068_v55 = vadd.f32 %v2067_v15, %v2055_v7  ;;  %v7076_v15 = vld [vmem:[#allocation60_spill] sm:$0xff] }
 0x450   :  { %v2043_v34 = vpop.f32.mrf.mxu1  ;;  %v7084_v41 = vld [vmem:[#allocation72_spill] sm:$0xff] }
 0x451   :  { %2303 = vmatpush.bf16.msra.mxu0 %v7063_v32  ;;  %2329 = vmatpush.bf16.msra.mxu2 %v7064_v33  ;;  %v3913_v4 = vpop.eup %3912  ;;  %v2080_v8 = vmul.f32 0.5, %v2068_v55  ;;  %v7077_v55 = vld [vmem:[#allocation62_spill] sm:$0xff]  ;;  %v7079_v34 = vld [vmem:[#allocation5_spill] sm:$0xff]  ;;  %v7081_v33 = vld [vmem:[#allocation68_spill] sm:$0xff] }
 0x452   :  { %v2085_v13 = vmul.f32 %v3913_v4, %v2074_v31  ;;  %v7078_v31 = vld [vmem:[#allocation4_spill] sm:$0xff]  ;;  %v7080_v32 = vld [vmem:[#allocation65_spill] sm:$0xff]  ;;  %v7082_v4 = vld [vmem:[#allocation6_spill] sm:$0xff] }
 0x453   :  { %3914 = vtanh.f32 %v2080_v8  ;;  %v7083_v8 = vld [vmem:[#allocation7_spill] sm:$0xff] }
 0x454   :  { %v5870_v62 = vadd.f32 %v2085_v13, %v2084_v26  ;;  %v7085_v26 = vld [vmem:[#allocation74_spill] sm:$0xff]  ;;  %v7086_v13 = vld [vmem:[#allocation8_spill] sm:$0xff] }
 0x455   :  { %2304 = vmatpush.bf16.msra.mxu0 %v7067_v1  ;;  %2330 = vmatpush.bf16.msra.mxu2 %v7068_v53  ;;  %v7087_v1 = vld [vmem:[#allocation9_spill] sm:$0xff]  ;;  %v7088_v53 = vld [vmem:[#allocation76_spill] sm:$0xff] }
 0x456   :  { %7066 = vst [vmem:[#allocation108_spill] sm:$0xff] %v5870_v62  ;;  %3916 = vtanh.f32 %v5870_v62  ;;  %v2069_v37 = vpop.f32.mrf.mxu3  ;;  %v7108_v62 = vld [vmem:[#allocation61_spill] sm:$0xff] }
 0x457   :  { %v7089_v37 = vld [vmem:[#allocation80_spill] sm:$0xff] }
 0x459   :  { %2305 = vmatpush.bf16.msra.mxu0 %v7069_v47  ;;  %2331 = vmatpush.bf16.msra.mxu2 %v7070_v48  ;;  %v3915_v20 = vpop.eup %3914  ;;  %v7090_v47 = vld [vmem:[#allocation11_spill] sm:$0xff]  ;;  %v7091_v48 = vld [vmem:[#allocation13_spill] sm:$0xff] }
 0x45a   :  { %v2082_v49 = vmul.f32 0.5, %v3915_v20  ;;  %v7092_v20 = vld [vmem:[#allocation84_spill] sm:$0xff] }
 0x45c   :  { %v3917_v39 = vpop.eup %3916  ;;  %v2083_v59 = vadd.f32 0.5, %v2082_v49  ;;  %v7093_v49 = vld [vmem:[#allocation86_spill] sm:$0xff] }
 0x45d   :  { %2373 = vmatpush.bf16.msrb.mxu0 %v7071_v46  ;;  %2399 = vmatpush.bf16.msrb.mxu2 %v7072_v57 }
 0x45e   :  { %v5881_v7 = vmul.f32 %v3917_v39, %v2083_v59  ;;  %v7094_v39 = vld [vmem:[#allocation15_spill] sm:$0xff]  ;;  %v7095_v59 = vld [vmem:[#allocation17_spill] sm:$0xff] }
 0x460   :  { %7075 = vst [vmem:[#allocation107_spill] sm:$0xff] %v5881_v7  ;;  %v2169_v30 = vpack.c.bf16 %v5881_v7, %v5881_v7  ;;  %v7107_v7 = vld [vmem:[#allocation59_spill] sm:$0xff] }
 0x461   :  { %2374 = vmatpush.bf16.msrb.mxu0 %v7073_v60  ;;  %2400 = vmatpush.bf16.msrb.mxu2 %v7074_v9 }
 0x462   :  { %2191 = vmatmul.bf16.vlgmr.msra.gmra.mxu1 %v2169_v30  ;;  %2217 = vmatmul.bf16.vlgmr.msra.gmra.mxu3 %v2169_v30 }
 0x463   :  { %2311 = vmatpush.bf16.msra.mxu1 %v7078_v31  ;;  %2337 = vmatpush.bf16.msra.mxu3 %v7079_v34  ;;  %v7096_v31 = vld [vmem:[#allocation89_spill] sm:$0xff]  ;;  %v7097_v34 = vld [vmem:[#allocation92_spill] sm:$0xff] }
 0x465   :  { %2375 = vmatpush.bf16.msrb.mxu0 %v7076_v15  ;;  %2401 = vmatpush.bf16.msrb.mxu2 %v7077_v55 }
 0x467   :  { %2312 = vmatpush.bf16.msra.mxu1 %v7082_v4  ;;  %2338 = vmatpush.bf16.msra.mxu3 %v7083_v8  ;;  %v7098_v4 = vld [vmem:[#allocation19_spill] sm:$0xff]  ;;  %v7099_v8 = vld [vmem:[#allocation21_spill] sm:$0xff] }
 0x469   :  { %2376 = vmatpush.bf16.msrb.mxu0 %v7080_v32  ;;  %2402 = vmatpush.bf16.msrb.mxu2 %v7081_v33 }
 0x46b   :  { %2313 = vmatpush.bf16.msra.mxu1 %v7086_v13  ;;  %2339 = vmatpush.bf16.msra.mxu3 %v7087_v1  ;;  %v7100_v13 = vld [vmem:[#allocation23_spill] sm:$0xff]  ;;  %v7101_v1 = vld [vmem:[#allocation25_spill] sm:$0xff] }
 0x46d   :  { %2377 = vmatpush.bf16.msrb.mxu0 %v7084_v41  ;;  %2403 = vmatpush.bf16.msrb.mxu2 %v7085_v26 }
 0x46f   :  { %2314 = vmatpush.bf16.msra.mxu1 %v7090_v47  ;;  %2340 = vmatpush.bf16.msra.mxu3 %v7091_v48  ;;  %v7102_v47 = vld [vmem:[#allocation27_spill] sm:$0xff]  ;;  %v7103_v48 = vld [vmem:[#allocation29_spill] sm:$0xff] }
 0x471   :  { %2378 = vmatpush.bf16.msrb.mxu0 %v7088_v53  ;;  %2404 = vmatpush.bf16.msrb.mxu2 %v7089_v37 }
 0x472   :  { %2243 = vmatmul.bf16.vlgmr.msrb.gmra.mxu1 %v2169_v30  ;;  %2269 = vmatmul.bf16.vlgmr.msrb.gmra.mxu3 %v2169_v30  ;;  %v7104_v30 = vld [vmem:[#allocation49_spill] sm:$0xff] }
 0x473   :  { %2315 = vmatpush.bf16.msra.mxu1 %v7094_v39  ;;  %2341 = vmatpush.bf16.msra.mxu3 %v7095_v59  ;;  %v7105_v39 = vld [vmem:[#allocation51_spill] sm:$0xff] }
 0x474   :  { %v7106_v59 = vld [vmem:[#allocation55_spill] sm:$0xff] }
 0x475   :  { %2379 = vmatpush.bf16.msrb.mxu0 %v7092_v20  ;;  %2405 = vmatpush.bf16.msrb.mxu2 %v7093_v49  ;;  %v7120_v49 = vld [vmem:[#allocation91_spill] sm:$0xff]  ;;  %v7123_v20 = vld [vmem:[#allocation81_spill] sm:$0xff] }
 0x477   :  { %2316 = vmatpush.bf16.msra.mxu1 %v7098_v4  ;;  %2342 = vmatpush.bf16.msra.mxu3 %v7099_v8  ;;  %v7109_v4 = vld [vmem:[#allocation63_spill] sm:$0xff] }
 0x478   :  { %v7110_v8 = vld [vmem:[#allocation67_spill] sm:$0xff] }
 0x479   :  { %2380 = vmatpush.bf16.msrb.mxu0 %v7096_v31  ;;  %2406 = vmatpush.bf16.msrb.mxu2 %v7097_v34  ;;  %v7118_v34 = vld [vmem:[#allocation69_spill] sm:$0xff]  ;;  %v7119_v31 = vld [vmem:[#allocation71_spill] sm:$0xff] }
 0x47b   :  { %2317 = vmatpush.bf16.msra.mxu1 %v7100_v13  ;;  %2343 = vmatpush.bf16.msra.mxu3 %v7101_v1  ;;  %v7111_v13 = vld [vmem:[#allocation70_spill] sm:$0xff]  ;;  %v7112_v1 = vld [vmem:[#allocation73_spill] sm:$0xff] }
 0x47f   :  { %2318 = vmatpush.bf16.msra.mxu1 %v7102_v47  ;;  %2344 = vmatpush.bf16.msra.mxu3 %v7103_v48  ;;  %v7113_v47 = vld [vmem:[#allocation75_spill] sm:$0xff] }
 0x480   :  { %v7114_v48 = vld [vmem:[#allocation79_spill] sm:$0xff] }
 0x483   :  { %2386 = vmatpush.bf16.msrb.mxu1 %v7104_v30  ;;  %2412 = vmatpush.bf16.msrb.mxu3 %v7105_v39  ;;  %v7115_v30 = vld [vmem:[#allocation83_spill] sm:$0xff]  ;;  %v7116_v39 = vld [vmem:[#allocation85_spill] sm:$0xff] }
 0x487   :  { %2387 = vmatpush.bf16.msrb.mxu1 %v7106_v59  ;;  %2413 = vmatpush.bf16.msrb.mxu3 %v7107_v7  ;;  %v7117_v59 = vld [vmem:[#allocation87_spill] sm:$0xff] }
 0x48b   :  { %2388 = vmatpush.bf16.msrb.mxu1 %v7108_v62  ;;  %2414 = vmatpush.bf16.msrb.mxu3 %v7109_v4 }
 0x48f   :  { %2389 = vmatpush.bf16.msrb.mxu1 %v7110_v8  ;;  %2415 = vmatpush.bf16.msrb.mxu3 %v7111_v13 }
 0x493   :  { %2390 = vmatpush.bf16.msrb.mxu1 %v7112_v1  ;;  %2416 = vmatpush.bf16.msrb.mxu3 %v7113_v47  ;;  %v7121_v1 = vld [vmem:[#allocation93_spill] sm:$0xff] }
 0x494   :  { %v7122_v47 = vld [vmem:[#allocation77_spill] sm:$0xff] }
 0x497   :  { %2391 = vmatpush.bf16.msrb.mxu1 %v7114_v48  ;;  %2417 = vmatpush.bf16.msrb.mxu3 %v7115_v30 }
 0x498   :  { %v2104_v7 = vpop.f32.mrf.mxu0  ;;  %v2117_v62 = vpop.f32.mrf.mxu1 }
 0x499   :  { %v2147_v4 = vadd.f32 %v2104_v7, %v7118_v34  ;;  %v2148_v8 = vadd.f32 %v2117_v62, %v7119_v31 }
 0x49b   :  { %2392 = vmatpush.bf16.msrb.mxu1 %v7116_v39  ;;  %2418 = vmatpush.bf16.msrb.mxu3 %v7117_v59  ;;  %v2151_v61 = vmul.f32 0.5, %v2147_v4  ;;  %v2155_v13 = vmul.f32 0.5, %v2148_v8 }
 0x49d   :  { %3918 = vtanh.f32 %v2151_v61 }
 0x49e   :  { %3920 = vtanh.f32 %v2155_v13 }
 0x49f   :  { %2393 = vmatpush.bf16.msrb.mxu1 %v7120_v49  ;;  %2419 = vmatpush.bf16.msrb.mxu3 %v7121_v1  ;;  %v2130_v48 = vpop.f32.mrf.mxu2  ;;  %v2143_v30 = vpop.f32.mrf.mxu3 }
 0x4a0   :  { %v2149_v39 = vadd.f32 %v2130_v48, %v7122_v47  ;;  %v2150_v59 = vadd.f32 %v2143_v30, %v7123_v20  ;;  %v2106_v38 = vpop.f32.mrf.mxu0  ;;  %v2119_v37 = vpop.f32.mrf.mxu1 }
 0x4a2   :  { %3922 = vtanh.f32 %v2149_v39  ;;  %v2160_v7 = vmul.f32 0.5, %v2150_v59 }
 0x4a3   :  { %v3919_v34 = vpop.eup %3918 }
 0x4a4   :  { %v3921_v62 = vpop.eup %3920  ;;  %v2153_v31 = vmul.f32 0.5, %v3919_v34  ;;  %3924 = vtanh.f32 %v2160_v7 }
 0x4a5   :  { %v2157_v4 = vmul.f32 0.5, %v3921_v62 }
 0x4a6   :  { %v2154_v8 = vadd.f32 0.5, %v2153_v31 }
 0x4a7   :  { %v2158_v49 = vadd.f32 0.5, %v2157_v4  ;;  %v2132_v1 = vpop.f32.mrf.mxu2  ;;  %v2145_v61 = vpop.f32.mrf.mxu3 }
 0x4a8   :  { %v3923_v13 = vpop.eup %3922  ;;  %v2179_v53 = vpop.f32.mrf.mxu0 }
 0x4a9   :  { %v2164_v26 = vmul.f32 %v2158_v49, %v5815_v22  ;;  %v2165_v47 = vmul.f32 %v3923_v13, %v2154_v8  ;;  %v2180_v31 = vadd.f32 %v2179_v53, %v5305_v23  ;;  %v7125_v53 = vld [vmem:[#allocation76_spill] sm:$0xff] }
 0x4aa   :  { %v3925_v48 = vpop.eup %3924 }
 0x4ab   :  { %v5934_v20 = vadd.f32 %v2165_v47, %v2164_v26  ;;  %v2162_v38 = vmul.f32 0.5, %v3925_v48  ;;  %v7127_v48 = vld [vmem:[#allocation31_spill] sm:$0xff] }
 0x4ad   :  { %3926 = vtanh.f32 %v5934_v20  ;;  %v2163_v39 = vadd.f32 0.5, %v2162_v38 }
 0x4af   :  { %v2205_v37 = vpop.f32.mrf.mxu2 }
 0x4b0   :  { %v2181_v30 = vpop.f32.mrf.mxu0  ;;  %v2206_v61 = vadd.f32 %v2205_v37, %v6927_v21 }
 0x4b3   :  { %v3927_v59 = vpop.eup %3926 }
 0x4b4   :  { %v2168_v7 = vmul.f32 %v3927_v59, %v2163_v39  ;;  %v7128_v59 = vld [vmem:[#allocation84_spill] sm:$0xff] }
 0x4b6   :  { %v2297_v34 = vpack.c.bf16 %v2168_v7, %v2168_v7  ;;  %v7129_v7 = vld [vmem:[#allocation86_spill] sm:$0xff] }
 0x4b7   :  { %v2207_v62 = vpop.f32.mrf.mxu2 }
 0x4b8   :  { %2306 = vmatmul.bf16.vlgmr.msra.gmra.mxu0 %v2297_v34  ;;  %2319 = vmatmul.bf16.vlgmr.msra.gmra.mxu1 %v2297_v34 }
 0x4b9   :  { %2332 = vmatmul.bf16.vlgmr.msra.gmra.mxu2 %v2297_v34  ;;  %2345 = vmatmul.bf16.vlgmr.msra.gmra.mxu3 %v2297_v34  ;;  %v5937_v1 = vpop.f32.mrf.mxu0 }
 0x4ba   :  { %2425 = vmatpush.bf16.msra.mxu0 %v6860_v14  ;;  %2451 = vmatpush.bf16.msra.mxu2 %v6861_v11  ;;  %v2232_v38 = vadd.f32 %v5937_v1, %v7127_v48 }
 0x4bb   :  { %2438 = vmatpush.bf16.msra.mxu1 %v6863_v40  ;;  %2464 = vmatpush.bf16.msra.mxu3 %v6864_v0 }
 0x4be   :  { %2426 = vmatpush.bf16.msra.mxu0 %v6865_v2  ;;  %2452 = vmatpush.bf16.msra.mxu2 %v6866_v50 }
 0x4bf   :  { %v5945_v22 = vpop.f32.mrf.mxu2  ;;  %2439 = vmatpush.bf16.msra.mxu1 %v6867_v3  ;;  %2465 = vmatpush.bf16.msra.mxu3 %v6868_v28 }
 0x4c1   :  { %v2233_v26 = vpop.f32.mrf.mxu0 }
 0x4c2   :  { %2427 = vmatpush.bf16.msra.mxu0 %v6807_v25  ;;  %2453 = vmatpush.bf16.msra.mxu2 %v6808_v54 }
 0x4c3   :  { %2440 = vmatpush.bf16.msra.mxu1 %v6809_v63  ;;  %2466 = vmatpush.bf16.msra.mxu3 %v6810_v29 }
 0x4c6   :  { %2428 = vmatpush.bf16.msra.mxu0 %v6811_v19  ;;  %2454 = vmatpush.bf16.msra.mxu2 %v6812_v36 }
 0x4c7   :  { %v2259_v49 = vpop.f32.mrf.mxu2  ;;  %2441 = vmatpush.bf16.msra.mxu1 %v6814_v18  ;;  %2467 = vmatpush.bf16.msra.mxu3 %v6928_v5 }
 0x4c8   :  { %2381 = vmatmul.bf16.vlgmr.msrb.gmra.mxu0 %v2297_v34 }
 0x4c9   :  { %2407 = vmatmul.bf16.vlgmr.msrb.gmra.mxu2 %v2297_v34 }
 0x4ca   :  { %2429 = vmatpush.bf16.msra.mxu0 %v6816_v43  ;;  %2455 = vmatpush.bf16.msra.mxu2 %v6817_v10 }
 0x4cb   :  { %2442 = vmatpush.bf16.msra.mxu1 %v6929_v42  ;;  %2468 = vmatpush.bf16.msra.mxu3 %v6930_v17 }
 0x4ce   :  { %2430 = vmatpush.bf16.msra.mxu0 %v6820_v45  ;;  %2456 = vmatpush.bf16.msra.mxu2 %v5152_v24 }
 0x4cf   :  { %2443 = vmatpush.bf16.msra.mxu1 %v6821_v52  ;;  %2469 = vmatpush.bf16.msra.mxu3 %v6822_v16 }
 0x4d2   :  { %2431 = vmatpush.bf16.msra.mxu0 %v5176_v6  ;;  %2457 = vmatpush.bf16.msra.mxu2 %v5188_v44 }
 0x4d3   :  { %2444 = vmatpush.bf16.msra.mxu1 %v5178_v12  ;;  %2470 = vmatpush.bf16.msra.mxu3 %v5190_v27 }
 0x4d6   :  { %2432 = vmatpush.bf16.msra.mxu0 %v5212_v58  ;;  %2458 = vmatpush.bf16.msra.mxu2 %v5218_v56 }
 0x4d7   :  { %2445 = vmatpush.bf16.msra.mxu1 %v5214_v51  ;;  %2471 = vmatpush.bf16.msra.mxu3 %v5220_v35 }
 0x4d9   :  { %2433 = vmatmul.bf16.vlgmr.msra.gmra.mxu0 %v2297_v34  ;;  %2459 = vmatmul.bf16.vlgmr.msra.gmra.mxu2 %v2297_v34  ;;  %v7130_v34 = vld [vmem:[#allocation33_spill] sm:$0xff] }
 0x4da   :  { %2498 = vmatpush.bf16.msrb.mxu0 %v7071_v46  ;;  %2524 = vmatpush.bf16.msrb.mxu2 %v7072_v57  ;;  %v2258_v62 = vadd.f32 %v5945_v22, %v7130_v34 }
 0x4de   :  { %2499 = vmatpush.bf16.msrb.mxu0 %v7073_v60  ;;  %2525 = vmatpush.bf16.msrb.mxu2 %v7074_v9  ;;  %v7124_v9 = vld [vmem:[#allocation74_spill] sm:$0xff] }
 0x4df   :  { %v2192_v4 = vpop.f32.mrf.mxu1 }
 0x4e0   :  { %v2193_v8 = vadd.f32 %v2192_v4, %v2180_v31  ;;  %v7131_v31 = vld [vmem:[#allocation89_spill] sm:$0xff]  ;;  %v7132_v4 = vld [vmem:[#allocation92_spill] sm:$0xff] }
 0x4e2   :  { %2500 = vmatpush.bf16.msrb.mxu0 %v7076_v15  ;;  %2526 = vmatpush.bf16.msrb.mxu2 %v7077_v55  ;;  %v2274_v13 = vmul.f32 0.5, %v2193_v8  ;;  %v7126_v55 = vld [vmem:[#allocation80_spill] sm:$0xff] }
 0x4e4   :  { %3928 = vtanh.f32 %v2274_v13 }
 0x4e5   :  { %v2218_v46 = vpop.f32.mrf.mxu3 }
 0x4e6   :  { %2501 = vmatpush.bf16.msrb.mxu0 %v7080_v32  ;;  %2527 = vmatpush.bf16.msrb.mxu2 %v7081_v33  ;;  %v2219_v57 = vadd.f32 %v2218_v46, %v2206_v61 }
 0x4e7   :  { %v2194_v60 = vpop.f32.mrf.mxu1 }
 0x4e8   :  { %v2278_v47 = vmul.f32 0.5, %v2219_v57  ;;  %v7133_v57 = vld [vmem:[#allocation108_spill] sm:$0xff] }
 0x4ea   :  { %2502 = vmatpush.bf16.msrb.mxu0 %v7084_v41  ;;  %2528 = vmatpush.bf16.msrb.mxu2 %v7124_v9  ;;  %3930 = vtanh.f32 %v2278_v47  ;;  %v3929_v32 = vpop.eup %3928 }
 0x4eb   :  { %v2276_v41 = vmul.f32 0.5, %v3929_v32  ;;  %v7148_v32 = vld [vmem:[#allocation91_spill] sm:$0xff] }
 0x4ed   :  { %v2220_v15 = vpop.f32.mrf.mxu3  ;;  %v2277_v8 = vadd.f32 0.5, %v2276_v41 }
 0x4ee   :  { %2503 = vmatpush.bf16.msrb.mxu0 %v7125_v53  ;;  %2529 = vmatpush.bf16.msrb.mxu2 %v7126_v55  ;;  %v7144_v55 = vld [vmem:[#allocation79_spill] sm:$0xff] }
 0x4ef   :  { %v2244_v37 = vpop.f32.mrf.mxu1 }
 0x4f0   :  { %v3931_v33 = vpop.eup %3930  ;;  %v2245_v30 = vadd.f32 %v2244_v37, %v2232_v38  ;;  %v7145_v38 = vld [vmem:[#allocation83_spill] sm:$0xff]  ;;  %v7149_v37 = vld [vmem:[#allocation93_spill] sm:$0xff] }
 0x4f1   :  { %v2280_v39 = vmul.f32 0.5, %v3931_v33  ;;  %v7150_v33 = vld [vmem:[#allocation32_spill] sm:$0xff] }
 0x4f2   :  { %2504 = vmatpush.bf16.msrb.mxu0 %v7128_v59  ;;  %2530 = vmatpush.bf16.msrb.mxu2 %v7129_v7  ;;  %3932 = vtanh.f32 %v2245_v30  ;;  %v7151_v30 = vld [vmem:[#allocation78_spill] sm:$0xff] }
 0x4f3   :  { %v2281_v26 = vadd.f32 0.5, %v2280_v39  ;;  %v291_v39 = vadd.f32 %v7151_v30, %v7150_v33  ;;  %v7152_v59 = vld [vmem:[#allocation34_spill] sm:$0xff] }
 0x4f4   :  { %v7153_v7 = vld [vmem:[#allocation82_spill] sm:$0xff] }
 0x4f5   :  { %v2270_v49 = vpop.f32.mrf.mxu3  ;;  %v2287_v60 = vmul.f32 %v2281_v26, %v7133_v57  ;;  %v7156_v26 = vld [vmem:[#allocation39_spill] sm:$0xff] }
 0x4f6   :  { %2505 = vmatpush.bf16.msrb.mxu0 %v7131_v31  ;;  %2531 = vmatpush.bf16.msrb.mxu2 %v7132_v4  ;;  %v2271_v1 = vadd.f32 %v2270_v49, %v2258_v62  ;;  %v7157_v49 = vld [vmem:[#allocation90_spill] sm:$0xff] }
 0x4f7   :  { %v2246_v61 = vpop.f32.mrf.mxu1  ;;  %v378_v31 = vadd.f32 %v7157_v49, %v7156_v26  ;;  %v3565_v49 = vld [vmem:[%s6460_s6 + $0x60] sm:$0xf] }
 0x4f8   :  { %v3933_v13 = vpop.eup %3932  ;;  %v2283_v46 = vmul.f32 0.5, %v2271_v1 }
 0x4f9   :  { %v2288_v47 = vmul.f32 %v3933_v13, %v2277_v8 }
 0x4fa   :  { %2550 = vmatpush.bf16.msra.mxu0 %v6860_v14  ;;  %2576 = vmatpush.bf16.msra.mxu2 %v6861_v11  ;;  %3934 = vtanh.f32 %v2283_v46 }
 0x4fb   :  { %v6000_v22 = vadd.f32 %v2288_v47, %v2287_v60 }
 0x4fd   :  { %3936 = vtanh.f32 %v6000_v22  ;;  %v2272_v9 = vpop.f32.mrf.mxu3 }
 0x4fe   :  { %2551 = vmatpush.bf16.msra.mxu0 %v6865_v2  ;;  %2577 = vmatpush.bf16.msra.mxu2 %v6866_v50 }
 0x500   :  { %v3935_v14 = vpop.eup %3934 }
 0x501   :  { %v2285_v11 = vmul.f32 0.5, %v3935_v14 }
 0x502   :  { %2552 = vmatpush.bf16.msra.mxu0 %v6807_v25  ;;  %2578 = vmatpush.bf16.msra.mxu2 %v6808_v54  ;;  %v7135_v25 = vld [vmem:[#allocation51_spill] sm:$0xff] }
 0x503   :  { %v3937_v15 = vpop.eup %3936  ;;  %v2286_v53 = vadd.f32 0.5, %v2285_v11  ;;  %v7136_v54 = vld [vmem:[#allocation55_spill] sm:$0xff] }
 0x505   :  { %v6007_v2 = vmul.f32 %v3937_v15, %v2286_v53 }
 0x506   :  { %2553 = vmatpush.bf16.msra.mxu0 %v6811_v19  ;;  %2579 = vmatpush.bf16.msra.mxu2 %v6812_v36  ;;  %v7134_v19 = vld [vmem:[#allocation49_spill] sm:$0xff]  ;;  %v7137_v36 = vld [vmem:[#allocation59_spill] sm:$0xff] }
 0x507   :  { %v2372_v50 = vpack.c.bf16 %v6007_v2, %v6007_v2 }
 0x509   :  { %2394 = vmatmul.bf16.vlgmr.msrb.gmra.mxu1 %v2372_v50  ;;  %2420 = vmatmul.bf16.vlgmr.msrb.gmra.mxu3 %v2372_v50 }
 0x50a   :  { %2554 = vmatpush.bf16.msra.mxu0 %v6816_v43  ;;  %2580 = vmatpush.bf16.msra.mxu2 %v6817_v10  ;;  %v7138_v43 = vld [vmem:[#allocation61_spill] sm:$0xff]  ;;  %v7139_v10 = vld [vmem:[#allocation63_spill] sm:$0xff] }
 0x50b   :  { %2511 = vmatpush.bf16.msrb.mxu1 %v7134_v19  ;;  %2537 = vmatpush.bf16.msrb.mxu3 %v7135_v25 }
 0x50e   :  { %2555 = vmatpush.bf16.msra.mxu0 %v6820_v45  ;;  %2581 = vmatpush.bf16.msra.mxu2 %v5152_v24  ;;  %v7140_v24 = vld [vmem:[#allocation67_spill] sm:$0xff]  ;;  %v7141_v45 = vld [vmem:[#allocation70_spill] sm:$0xff] }
 0x50f   :  { %2512 = vmatpush.bf16.msrb.mxu1 %v7136_v54  ;;  %2538 = vmatpush.bf16.msrb.mxu3 %v7137_v36 }
 0x512   :  { %2556 = vmatpush.bf16.msra.mxu0 %v5176_v6  ;;  %2582 = vmatpush.bf16.msra.mxu2 %v5188_v44  ;;  %v7142_v6 = vld [vmem:[#allocation73_spill] sm:$0xff]  ;;  %v7143_v44 = vld [vmem:[#allocation75_spill] sm:$0xff] }
 0x513   :  { %2513 = vmatpush.bf16.msrb.mxu1 %v7138_v43  ;;  %2539 = vmatpush.bf16.msrb.mxu3 %v7139_v10  ;;  %v3806_v43 = vld [vmem:[%s6460_s6 + $0xf4] sm:$0xf0] }
 0x516   :  { %2557 = vmatpush.bf16.msra.mxu0 %v5212_v58  ;;  %2583 = vmatpush.bf16.msra.mxu2 %v5218_v56  ;;  %v7146_v58 = vld [vmem:[#allocation85_spill] sm:$0xff]  ;;  %v7147_v56 = vld [vmem:[#allocation87_spill] sm:$0xff] }
 0x517   :  { %2514 = vmatpush.bf16.msrb.mxu1 %v7140_v24  ;;  %2540 = vmatpush.bf16.msrb.mxu3 %v7141_v45 }
 0x519   :  { %2446 = vmatmul.bf16.vlgmr.msra.gmra.mxu1 %v2372_v50  ;;  %2472 = vmatmul.bf16.vlgmr.msra.gmra.mxu3 %v2372_v50 }
 0x51b   :  { %2515 = vmatpush.bf16.msrb.mxu1 %v7142_v6  ;;  %2541 = vmatpush.bf16.msrb.mxu3 %v7143_v44  ;;  %v3613_v44 = vld [vmem:[%s6460_s6 + $0xc0] sm:$0xf] }
 0x51f   :  { %2516 = vmatpush.bf16.msrb.mxu1 %v7144_v55  ;;  %2542 = vmatpush.bf16.msrb.mxu3 %v7145_v38  ;;  %v3801_v38 = vld [vmem:[%s6460_s6 + $0xcc] sm:$0xf0] }
 0x520   :  { %v3614_v33 = vor.u32 %v3801_v38, %v3613_v44 }
 0x523   :  { %2517 = vmatpush.bf16.msrb.mxu1 %v7146_v58  ;;  %2543 = vmatpush.bf16.msrb.mxu3 %v7147_v56  ;;  %v3621_v58 = vld [vmem:[%s6460_s6 + $0xc8] sm:$0xf]  ;;  %v3802_v56 = vld [vmem:[%s6460_s6 + $0xd4] sm:$0xf0] }
 0x524   :  { %v3622_v30 = vor.u32 %v3802_v56, %v3621_v58 }
 0x527   :  { %2518 = vmatpush.bf16.msrb.mxu1 %v7148_v32  ;;  %2544 = vmatpush.bf16.msrb.mxu3 %v7149_v37 }
 0x52b   :  { %2563 = vmatpush.bf16.msra.mxu1 %v6863_v40  ;;  %2589 = vmatpush.bf16.msra.mxu3 %v6864_v0  ;;  %v320_v40 = vadd.f32 %v7153_v7, %v7152_v59  ;;  %v3797_v59 = vld [vmem:[%s6460_s6 + $0xac] sm:$0xf0]  ;;  %v3605_v7 = vld [vmem:[%s6460_s6 + $0xa8] sm:$0xf] }
 0x52f   :  { %2564 = vmatpush.bf16.msra.mxu1 %v6867_v3  ;;  %2590 = vmatpush.bf16.msra.mxu3 %v6868_v28  ;;  %v7155_v28 = vld [vmem:[#allocation88_spill] sm:$0xff] }
 0x533   :  { %2565 = vmatpush.bf16.msra.mxu1 %v6809_v63  ;;  %2591 = vmatpush.bf16.msra.mxu3 %v6810_v29 }
 0x535   :  { %v2307_v41 = vpop.f32.mrf.mxu0  ;;  %v2320_v0 = vpop.f32.mrf.mxu1 }
 0x536   :  { %v2350_v62 = vadd.f32 %v2307_v41, %v291_v39  ;;  %v2351_v3 = vadd.f32 %v2320_v0, %v320_v40  ;;  %v3597_v39 = vld [vmem:[%s6460_s6 + $0xa0] sm:$0xf]  ;;  %v3798_v40 = vld [vmem:[%s6460_s6 + $0xb4] sm:$0xf0] }
 0x537   :  { %2566 = vmatpush.bf16.msra.mxu1 %v6814_v18  ;;  %2592 = vmatpush.bf16.msra.mxu3 %v6928_v5  ;;  %v7154_v18 = vld [vmem:[#allocation38_spill] sm:$0xff]  ;;  %v3598_v41 = vor.u32 %v3797_v59, %v3597_v39  ;;  %v3606_v0 = vor.u32 %v3798_v40, %v3605_v7 }
 0x538   :  { %v2354_v63 = vmul.f32 0.5, %v2350_v62  ;;  %v2358_v29 = vmul.f32 0.5, %v2351_v3  ;;  %v349_v5 = vadd.f32 %v7155_v28, %v7154_v18  ;;  %v3581_v62 = vld [vmem:[%s6460_s6 + $0x80] sm:$0xf]  ;;  %v3793_v3 = vld [vmem:[%s6460_s6 + $0x8c] sm:$0xf0] }
 0x53a   :  { %3938 = vtanh.f32 %v2354_v63  ;;  %v3589_v63 = vld [vmem:[%s6460_s6 + $0x88] sm:$0xf] }
 0x53b   :  { %2567 = vmatpush.bf16.msra.mxu1 %v6929_v42  ;;  %2593 = vmatpush.bf16.msra.mxu3 %v6930_v17  ;;  %3940 = vtanh.f32 %v2358_v29  ;;  %v3794_v29 = vld [vmem:[%s6460_s6 + $0x94] sm:$0xf0] }
 0x53c   :  { %v2333_v4 = vpop.f32.mrf.mxu2  ;;  %v2346_v1 = vpop.f32.mrf.mxu3  ;;  %v3590_v26 = vor.u32 %v3794_v29, %v3589_v63 }
 0x53d   :  { %v2352_v8 = vadd.f32 %v2333_v4, %v349_v5  ;;  %v2353_v42 = vadd.f32 %v2346_v1, %v378_v31  ;;  %v2309_v61 = vpop.f32.mrf.mxu0  ;;  %v2322_v17 = vpop.f32.mrf.mxu1  ;;  %v3582_v5 = vor.u32 %v3793_v3, %v3581_v62  ;;  %v3789_v31 = vld [vmem:[%s6460_s6 + $0x6c] sm:$0xf0]  ;;  %v3573_v4 = vld [vmem:[%s6460_s6 + $0x68] sm:$0xf]  ;;  %v3790_v1 = vld [vmem:[%s6460_s6 + $0x74] sm:$0xf0] }
 0x53e   :  { %v3549_v61 = vld [vmem:[%s6460_s6 + $0x40] sm:$0xf]  ;;  %v3785_v17 = vld [vmem:[%s6460_s6 + $0x4c] sm:$0xf0] }
 0x53f   :  { %2568 = vmatpush.bf16.msra.mxu1 %v6821_v52  ;;  %2594 = vmatpush.bf16.msra.mxu3 %v6822_v16  ;;  %3942 = vtanh.f32 %v2352_v8  ;;  %v2363_v13 = vmul.f32 0.5, %v2353_v42  ;;  %v3566_v8 = vor.u32 %v3789_v31, %v3565_v49  ;;  %v3574_v42 = vor.u32 %v3790_v1, %v3573_v4 }
 0x540   :  { %v3939_v46 = vpop.eup %3938 }
 0x541   :  { %v3941_v57 = vpop.eup %3940  ;;  %v2356_v60 = vmul.f32 0.5, %v3939_v46  ;;  %3944 = vtanh.f32 %v2363_v13  ;;  %v3557_v13 = vld [vmem:[%s6460_s6 + $0x48] sm:$0xf]  ;;  %v3786_v46 = vld [vmem:[%s6460_s6 + $0x54] sm:$0xf0] }
 0x542   :  { %v2360_v47 = vmul.f32 0.5, %v3941_v57 }
 0x543   :  { %2569 = vmatpush.bf16.msra.mxu1 %v5178_v12  ;;  %2595 = vmatpush.bf16.msra.mxu3 %v5190_v27  ;;  %v2357_v52 = vadd.f32 0.5, %v2356_v60  ;;  %v3550_v60 = vor.u32 %v3785_v17, %v3549_v61  ;;  %v3631_v61 = vld [vmem:[%s6460_s6 + $0xf0] sm:$0xf0] }
 0x544   :  { %v2361_v16 = vadd.f32 0.5, %v2360_v47  ;;  %v2335_v9 = vpop.f32.mrf.mxu2  ;;  %v2348_v14 = vpop.f32.mrf.mxu3  ;;  %v3558_v47 = vor.u32 %v3786_v46, %v3557_v13  ;;  %v3639_v46 = vld [vmem:[%s6460_s6 + $0xf8] sm:$0xf0] }
 0x545   :  { %v3943_v11 = vpop.eup %3942  ;;  %v6059_v15 = vpop.f32.mrf.mxu0  ;;  %v3541_v9 = vld [vmem:[%s6460_s6 + $0x28] sm:$0xf]  ;;  %v3782_v14 = vld [vmem:[%s6460_s6 + $0x34] sm:$0xf0] }
 0x546   :  { %v2367_v12 = vmul.f32 %v2361_v16, %v5934_v20  ;;  %v2368_v53 = vmul.f32 %v3943_v11, %v2357_v52  ;;  %v3637_v20 = vld [vmem:[%s6460_s6 + $0xe8] sm:$0xf]  ;;  %v3533_v52 = vld [vmem:[%s6460_s6 + $0x20] sm:$0xf]  ;;  %v3781_v16 = vld [vmem:[%s6460_s6 + $0x2c] sm:$0xf0] }
 0x547   :  { %2570 = vmatpush.bf16.msra.mxu1 %v5214_v51  ;;  %2596 = vmatpush.bf16.msra.mxu3 %v5220_v35  ;;  %v3945_v27 = vpop.eup %3944  ;;  %v3629_v35 = vld [vmem:[%s6460_s6 + $0xe0] sm:$0xf]  ;;  %v3805_v51 = vld [vmem:[%s6460_s6 + $0xec] sm:$0xf0]  ;;  %v3638_v6 = vor.u32 %v3806_v43, %v3637_v20  ;;  %v3534_v11 = vor.u32 %v3781_v16, %v3533_v52  ;;  %v7160_v43 = vld [vmem:[#allocation103_spill] sm:$0xff] }
 0x548   :  { %v2369_v50 = vadd.f32 %v2368_v53, %v2367_v12  ;;  %v2365_v19 = vmul.f32 0.5, %v3945_v27  ;;  %v3630_v45 = vor.u32 %v3805_v51, %v3629_v35  ;;  %v3542_v12 = vor.u32 %v3782_v14, %v3541_v9  ;;  %v3517_v53 = vld [vmem:[%s6460_s6] sm:$0xf]  ;;  %v3777_v27 = vld [vmem:[%s6460_s6 + $0xc] sm:$0xf0] }
 0x549   :  { %v7158_v51 = vld [vmem:[#allocation102_spill] sm:$0xff]  ;;  %v3799_v52 = vld [vmem:[%s6460_s6 + $0xc4] sm:$0xf]  ;;  %v3800_v14 = vld [vmem:[%s6460_s6 + $0xcc] sm:$0xf] }
 0x54a   :  { %3946 = vtanh.f32 %v2369_v50  ;;  %v2366_v36 = vadd.f32 0.5, %v2365_v19  ;;  %v3525_v50 = vld [vmem:[%s6460_s6 + $0x8] sm:$0xf]  ;;  %v3778_v19 = vld [vmem:[%s6460_s6 + $0x14] sm:$0xf0] }
 0x54b   :  { %v3526_v35 = vor.u32 %v3778_v19, %v3525_v50  ;;  %v3615_v9 = vld [vmem:[%s6460_s6 + $0xd0] sm:$0xf0]  ;;  %v3796_v19 = vld [vmem:[%s6460_s6 + $0xac] sm:$0xf] }
 0x54c   :  { %v6062_v25 = vpop.f32.mrf.mxu2  ;;  %v3599_v50 = vld [vmem:[%s6460_s6 + $0xb0] sm:$0xf0] }
 0x54d   :  { %v2384_v54 = vpop.f32.mrf.mxu0 }
 0x54e   :  { %v3518_v54 = vor.u32 %v3777_v27, %v3517_v53  ;;  %v3795_v27 = vld [vmem:[%s6460_s6 + $0xa4] sm:$0xf] }
 0x550   :  { %v3947_v10 = vpop.eup %3946 }
 0x551   :  { %v2371_v24 = vmul.f32 %v3947_v10, %v2366_v36  ;;  %v7159_v36 = vld [vmem:[#allocation104_spill] sm:$0xff]  ;;  %v7161_v10 = vld [vmem:[#allocation106_spill] sm:$0xff] }
 0x552   :  { %v6166_v20 = vpack.c.bf16 %v7159_v36, %v7158_v51  ;;  %v3791_v36 = vld [vmem:[%s6460_s6 + $0x84] sm:$0xf] }
 0x553   :  { %v2496_v55 = vpack.c.bf16 %v2371_v24, %v2371_v24  ;;  %v6172_v24 = vpack.c.bf16 %v7161_v10, %v7160_v43  ;;  %v3583_v43 = vld [vmem:[%s6460_s6 + $0x90] sm:$0xf0]  ;;  %v3792_v10 = vld [vmem:[%s6460_s6 + $0x8c] sm:$0xf] }
 0x554   :  { %v2410_v32 = vpop.f32.mrf.mxu2 }
 0x555   :  { %2506 = vmatmul.bf16.vlgmr.msrb.gmra.mxu0 %v2496_v55  ;;  %2532 = vmatmul.bf16.vlgmr.msrb.gmra.mxu2 %v2496_v55 }
 0x556   :  { %v6088_v37 = vpop.f32.mrf.mxu0  ;;  %2835 = vmatpush.bf16.msrb.mxu0 %v3630_v45  ;;  %2893 = vmatpush.bf16.msrb.mxu2 %v3638_v6  ;;  %v2383_v45 = vadd.f32 %v6059_v15, %v5305_v23 }
 0x557   :  { %v2435_v59 = vadd.f32 %v6088_v37, %v7127_v48 }
 0x55a   :  { %2836 = vmatpush.bf16.msrb.mxu0 %v3614_v33  ;;  %2894 = vmatpush.bf16.msrb.mxu2 %v3622_v30  ;;  %v7162_v30 = vld [vmem:[#allocation107_spill] sm:$0xff] }
 0x55b   :  { %v6182_v39 = vpack.c.bf16 %v6007_v2, %v7162_v30  ;;  %v3783_v30 = vld [vmem:[%s6460_s6 + $0x44] sm:$0xf] }
 0x55c   :  { %v6114_v18 = vpop.f32.mrf.mxu2 }
 0x55d   :  { %v2461_v3 = vadd.f32 %v6114_v18, %v7130_v34  ;;  %v3803_v18 = vld [vmem:[%s6460_s6 + $0xe4] sm:$0xf] }
 0x55e   :  { %v2436_v28 = vpop.f32.mrf.mxu0  ;;  %2837 = vmatpush.bf16.msrb.mxu0 %v3598_v41  ;;  %2895 = vmatpush.bf16.msrb.mxu2 %v3606_v0 }
 0x562   :  { %2838 = vmatpush.bf16.msrb.mxu0 %v3582_v5  ;;  %2896 = vmatpush.bf16.msrb.mxu2 %v3590_v26 }
 0x564   :  { %v2462_v57 = vpop.f32.mrf.mxu2 }
 0x565   :  { %2558 = vmatmul.bf16.vlgmr.msra.gmra.mxu0 %v2496_v55  ;;  %2584 = vmatmul.bf16.vlgmr.msra.gmra.mxu2 %v2496_v55  ;;  %v2409_v55 = vadd.f32 %v6062_v25, %v6927_v21 }
 0x566   :  { %2839 = vmatpush.bf16.msrb.mxu0 %v3566_v8  ;;  %2897 = vmatpush.bf16.msrb.mxu2 %v3574_v42 }
 0x56a   :  { %2840 = vmatpush.bf16.msrb.mxu0 %v3550_v60  ;;  %2898 = vmatpush.bf16.msrb.mxu2 %v3558_v47  ;;  %v3634_v60 = vor.u32 %v3803_v18, %v3631_v61 }
 0x56e   :  { %2841 = vmatpush.bf16.msrb.mxu0 %v3534_v11  ;;  %2899 = vmatpush.bf16.msrb.mxu2 %v3542_v12  ;;  %v3623_v11 = vld [vmem:[%s6460_s6 + $0xd8] sm:$0xf0]  ;;  %v3618_v12 = vor.u32 %v3799_v52, %v3615_v9 }
 0x56f   :  { %v3626_v53 = vor.u32 %v3800_v14, %v3623_v11 }
 0x572   :  { %2842 = vmatpush.bf16.msrb.mxu0 %v3518_v54  ;;  %2900 = vmatpush.bf16.msrb.mxu2 %v3526_v35  ;;  %v3607_v54 = vld [vmem:[%s6460_s6 + $0xb8] sm:$0xf0]  ;;  %v3602_v35 = vor.u32 %v3795_v27, %v3599_v50 }
 0x573   :  { %v3610_v51 = vor.u32 %v3796_v19, %v3607_v54 }
 0x575   :  { %2843 = vmatmul.bf16.vlgmr.msrb.gmra.mxu0 %v6166_v20  ;;  %2901 = vmatmul.bf16.vlgmr.msrb.gmra.mxu2 %v6166_v20 }
 0x585   :  { %2848 = vmatmul.bf16.gmra.mxu0 %v6172_v24  ;;  %2906 = vmatmul.bf16.gmra.mxu2 %v6172_v24 }
 0x586   :  { %v2395_v6 = vpop.f32.mrf.mxu1 }
 0x587   :  { %v2396_v44 = vadd.f32 %v2395_v6, %v2383_v45  ;;  %v3591_v45 = vld [vmem:[%s6460_s6 + $0x98] sm:$0xf0]  ;;  %v3586_v6 = vor.u32 %v3791_v36, %v3583_v43 }
 0x589   :  { %v2477_v38 = vmul.f32 0.5, %v2396_v44  ;;  %v3594_v44 = vor.u32 %v3792_v10, %v3591_v45 }
 0x58b   :  { %3948 = vtanh.f32 %v2477_v38  ;;  %v3567_v38 = vld [vmem:[%s6460_s6 + $0x70] sm:$0xf0] }
 0x58c   :  { %v2421_v58 = vpop.f32.mrf.mxu3 }
 0x58d   :  { %v2422_v56 = vadd.f32 %v2421_v58, %v2409_v55  ;;  %v3787_v55 = vld [vmem:[%s6460_s6 + $0x64] sm:$0xf]  ;;  %v3788_v58 = vld [vmem:[%s6460_s6 + $0x6c] sm:$0xf] }
 0x58e   :  { %v2397_v32 = vpop.f32.mrf.mxu1 }
 0x58f   :  { %v2481_v33 = vmul.f32 0.5, %v2422_v56  ;;  %v3575_v56 = vld [vmem:[%s6460_s6 + $0x78] sm:$0xf0]  ;;  %v3570_v32 = vor.u32 %v3787_v55, %v3567_v38 }
 0x591   :  { %3950 = vtanh.f32 %v2481_v33  ;;  %v3949_v7 = vpop.eup %3948  ;;  %v3578_v33 = vor.u32 %v3788_v58, %v3575_v56 }
 0x592   :  { %v2479_v62 = vmul.f32 0.5, %v3949_v7  ;;  %v3559_v7 = vld [vmem:[%s6460_s6 + $0x58] sm:$0xf0] }
 0x594   :  { %v2423_v15 = vpop.f32.mrf.mxu3  ;;  %v2480_v28 = vadd.f32 0.5, %v2479_v62  ;;  %v3780_v62 = vld [vmem:[%s6460_s6 + $0x2c] sm:$0xf] }
 0x595   :  { %2853 = vmatmul.bf16.gmra.mxu0 %v6182_v39  ;;  %2911 = vmatmul.bf16.gmra.mxu2 %v6182_v39  ;;  %v3551_v15 = vld [vmem:[%s6460_s6 + $0x50] sm:$0xf0] }
 0x596   :  { %v2447_v25 = vpop.f32.mrf.mxu1 }
 0x597   :  { %v3951_v40 = vpop.eup %3950  ;;  %v2448_v41 = vadd.f32 %v2447_v25, %v2435_v59  ;;  %v3784_v59 = vld [vmem:[%s6460_s6 + $0x4c] sm:$0xf]  ;;  %v3554_v25 = vor.u32 %v3783_v30, %v3551_v15 }
 0x598   :  { %v2483_v0 = vmul.f32 0.5, %v3951_v40  ;;  %v3562_v40 = vor.u32 %v3784_v59, %v3559_v7 }
 0x599   :  { %3952 = vtanh.f32 %v2448_v41  ;;  %v3779_v41 = vld [vmem:[%s6460_s6 + $0x24] sm:$0xf] }
 0x59a   :  { %v2484_v2 = vadd.f32 0.5, %v2483_v0  ;;  %v3535_v0 = vld [vmem:[%s6460_s6 + $0x30] sm:$0xf0] }
 0x59c   :  { %v2473_v63 = vpop.f32.mrf.mxu3  ;;  %v2490_v49 = vmul.f32 %v2484_v2, %v6000_v22  ;;  %v3804_v22 = vld [vmem:[%s6460_s6 + $0xec] sm:$0xf]  ;;  %v3538_v2 = vor.u32 %v3779_v41, %v3535_v0 }
 0x59d   :  { %v2474_v29 = vadd.f32 %v2473_v63, %v2461_v3  ;;  %v3642_v47 = vor.u32 %v3804_v22, %v3639_v46  ;;  %v3543_v3 = vld [vmem:[%s6460_s6 + $0x38] sm:$0xf0] }
 0x59e   :  { %v2449_v5 = vpop.f32.mrf.mxu1  ;;  %v3546_v63 = vor.u32 %v3780_v62, %v3543_v3 }
 0x59f   :  { %v3953_v37 = vpop.eup %3952  ;;  %v2486_v26 = vmul.f32 0.5, %v2474_v29  ;;  %v3775_v29 = vld [vmem:[%s6460_s6 + $0x4] sm:$0xf]  ;;  %v3776_v5 = vld [vmem:[%s6460_s6 + $0xc] sm:$0xf] }
 0x5a0   :  { %v2491_v31 = vmul.f32 %v3953_v37, %v2480_v28  ;;  %v3519_v28 = vld [vmem:[%s6460_s6 + $0x10] sm:$0xf0]  ;;  %v3527_v37 = vld [vmem:[%s6460_s6 + $0x18] sm:$0xf0] }
 0x5a1   :  { %3954 = vtanh.f32 %v2486_v26  ;;  %v3522_v26 = vor.u32 %v3775_v29, %v3519_v28 }
 0x5a2   :  { %v6191_v4 = vadd.f32 %v2491_v31, %v2490_v49  ;;  %v3530_v49 = vor.u32 %v3776_v5, %v3527_v37 }
 0x5a4   :  { %3956 = vtanh.f32 %v6191_v4  ;;  %v2475_v1 = vpop.f32.mrf.mxu3 }
 0x5a7   :  { %v3955_v8 = vpop.eup %3954 }
 0x5a8   :  { %v2488_v42 = vmul.f32 0.5, %v3955_v8 }
 0x5aa   :  { %v3957_v17 = vpop.eup %3956  ;;  %v2489_v13 = vadd.f32 0.5, %v2488_v42 }
 0x5ac   :  { %v6206_v57 = vmul.f32 %v3957_v17, %v2489_v13  ;;  %v6303_v13 = vld [vmem:[%s6461_s7] sm:$0xf] }
 0x5ad   :  { %v6306_v22 = vperm.slane %v6303_v13, 0 }
 0x5ae   :  { %v2497_v16 = vpack.c.bf16 %v6206_v57, %v6206_v57 }
 0x5b0   :  { %2519 = vmatmul.bf16.vlgmr.msrb.gmra.mxu1 %v2497_v16  ;;  %2545 = vmatmul.bf16.vlgmr.msrb.gmra.mxu3 %v2497_v16 }
 0x5b1   :  { %2864 = vmatpush.bf16.msrb.mxu1 %v3634_v60  ;;  %2922 = vmatpush.bf16.msrb.mxu3 %v3642_v47  ;;  %v6315_v60 = vperm.slane %v6303_v13, 2 }
 0x5b5   :  { %2865 = vmatpush.bf16.msrb.mxu1 %v3618_v12  ;;  %2923 = vmatpush.bf16.msrb.mxu3 %v3626_v53 }
 0x5b9   :  { %2866 = vmatpush.bf16.msrb.mxu1 %v3602_v35  ;;  %2924 = vmatpush.bf16.msrb.mxu3 %v3610_v51 }
 0x5bd   :  { %2867 = vmatpush.bf16.msrb.mxu1 %v3586_v6  ;;  %2925 = vmatpush.bf16.msrb.mxu3 %v3594_v44 }
 0x5c0   :  { %2571 = vmatmul.bf16.vlgmr.msra.gmra.mxu1 %v2497_v16  ;;  %2597 = vmatmul.bf16.vlgmr.msra.gmra.mxu3 %v2497_v16 }
 0x5c1   :  { %2868 = vmatpush.bf16.msrb.mxu1 %v3570_v32  ;;  %2926 = vmatpush.bf16.msrb.mxu3 %v3578_v33 }
 0x5c5   :  { %2869 = vmatpush.bf16.msrb.mxu1 %v3554_v25  ;;  %2927 = vmatpush.bf16.msrb.mxu3 %v3562_v40 }
 0x5c9   :  { %2870 = vmatpush.bf16.msrb.mxu1 %v3538_v2  ;;  %2928 = vmatpush.bf16.msrb.mxu3 %v3546_v63 }
 0x5cd   :  { %2871 = vmatpush.bf16.msrb.mxu1 %v3522_v26  ;;  %2929 = vmatpush.bf16.msrb.mxu3 %v3530_v49 }
 0x5d0   :  { %2872 = vmatmul.bf16.vlgmr.msrb.gmra.mxu1 %v6166_v20  ;;  %2930 = vmatmul.bf16.vlgmr.msrb.gmra.mxu3 %v6166_v20 }
 0x5d2   :  { %v2507_v31 = vpop.f32.mrf.mxu0 }
 0x5d3   :  { %v2508_v38 = vadd.f32 %v2507_v31, %v5305_v23 }
 0x5d8   :  { %v2533_v1 = vpop.f32.mrf.mxu2 }
 0x5d9   :  { %v2534_v32 = vadd.f32 %v2533_v1, %v6927_v21 }
 0x5da   :  { %v2509_v8 = vpop.f32.mrf.mxu0 }
 0x5db   :  { %v6368_v8 = vperm.slane %v6303_v13, 1 }
 0x5e0   :  { %2877 = vmatmul.bf16.gmra.mxu1 %v6172_v24  ;;  %2935 = vmatmul.bf16.gmra.mxu3 %v6172_v24  ;;  %v2535_v42 = vpop.f32.mrf.mxu2 }
 0x5e2   :  { %v2559_v18 = vpop.f32.mrf.mxu0 }
 0x5e3   :  { %v2560_v40 = vadd.f32 %v2559_v18, %v7127_v48 }
 0x5e8   :  { %v6298_v61 = vpop.f32.mrf.mxu2 }
 0x5e9   :  { %v2586_v21 = vadd.f32 %v6298_v61, %v7130_v34 }
 0x5ea   :  { %v2561_v17 = vpop.f32.mrf.mxu0 }
 0x5f0   :  { %2882 = vmatmul.bf16.gmra.mxu1 %v6182_v39  ;;  %2940 = vmatmul.bf16.gmra.mxu3 %v6182_v39  ;;  %v2587_v20 = vpop.f32.mrf.mxu2 }
 0x5f1   :  { %v6375_v20 = vperm.slane %v6303_v13, 3 }
 0x5f2   :  { %v2844_v46 = vpop.f32.mrf.mxu0 }
 0x5f3   :  { %v2845_v24 = vadd.f32 %v2844_v46, %v6306_v22 }
 0x5f5   :  { %2951 = vst [vmem:[%s6462_s8] sm:$0xff] %v2845_v24 }
 0x5f8   :  { %v2902_v47 = vpop.f32.mrf.mxu2 }
 0x5f9   :  { %v2903_v52 = vadd.f32 %v2902_v47, %v6315_v60 }
 0x5fa   :  { %v2846_v16 = vpop.f32.mrf.mxu0 }
 0x5fb   :  { %2953 = vst [vmem:[%s6462_s8 + $0x10] sm:$0xff] %v2903_v52  ;;  %v2847_v39 = vadd.f32 %v2846_v16, %v6306_v22 }
 0x5fd   :  { %2955 = vst [vmem:[%s6462_s8 + $0x20] sm:$0xff] %v2847_v39 }
 0x600   :  { %v2904_v9 = vpop.f32.mrf.mxu2 }
 0x601   :  { %v2905_v14 = vadd.f32 %v2904_v9, %v6315_v60 }
 0x602   :  { %v2849_v11 = vpop.f32.mrf.mxu0 }
 0x603   :  { %2957 = vst [vmem:[%s6462_s8 + $0x30] sm:$0xff] %v2905_v14  ;;  %v2850_v12 = vadd.f32 %v2849_v11, %v6306_v22 }
 0x605   :  { %2959 = vst [vmem:[%s6462_s8 + $0x40] sm:$0xff] %v2850_v12 }
 0x608   :  { %v2907_v53 = vpop.f32.mrf.mxu2 }
 0x609   :  { %v2908_v27 = vadd.f32 %v2907_v53, %v6315_v60 }
 0x60a   :  { %v2851_v50 = vpop.f32.mrf.mxu0 }
 0x60b   :  { %2961 = vst [vmem:[%s6462_s8 + $0x50] sm:$0xff] %v2908_v27  ;;  %v2852_v19 = vadd.f32 %v2851_v50, %v6306_v22 }
 0x60d   :  { %2963 = vst [vmem:[%s6462_s8 + $0x60] sm:$0xff] %v2852_v19 }
 0x610   :  { %v2909_v54 = vpop.f32.mrf.mxu2 }
 0x611   :  { %v2910_v35 = vadd.f32 %v2909_v54, %v6315_v60 }
 0x612   :  { %v2854_v51 = vpop.f32.mrf.mxu0 }
 0x613   :  { %2965 = vst [vmem:[%s6462_s8 + $0x70] sm:$0xff] %v2910_v35  ;;  %v2855_v36 = vadd.f32 %v2854_v51, %v6306_v22 }
 0x615   :  { %2967 = vst [vmem:[%s6462_s8 + $0x80] sm:$0xff] %v2855_v36 }
 0x618   :  { %v2912_v43 = vpop.f32.mrf.mxu2 }
 0x619   :  { %v2913_v10 = vadd.f32 %v2912_v43, %v6315_v60 }
 0x61a   :  { %v2856_v45 = vpop.f32.mrf.mxu0 }
 0x61b   :  { %2969 = vst [vmem:[%s6462_s8 + $0x90] sm:$0xff] %v2913_v10  ;;  %v2857_v6 = vadd.f32 %v2856_v45, %v6306_v22 }
 0x61d   :  { %2971 = vst [vmem:[%s6462_s8 + $0xa0] sm:$0xff] %v2857_v6 }
 0x620   :  { %v2914_v44 = vpop.f32.mrf.mxu2 }
 0x621   :  { %v2915_v55 = vadd.f32 %v2914_v44, %v6315_v60 }
 0x623   :  { %2973 = vst [vmem:[%s6462_s8 + $0xb0] sm:$0xff] %v2915_v55 }
 0x62d   :  { %v2520_v58 = vpop.f32.mrf.mxu1 }
 0x62e   :  { %v2521_v56 = vadd.f32 %v2520_v58, %v2508_v38 }
 0x630   :  { %v2602_v33 = vmul.f32 0.5, %v2521_v56 }
 0x632   :  { %3958 = vtanh.f32 %v2602_v33 }
 0x633   :  { %v2546_v30 = vpop.f32.mrf.mxu3 }
 0x634   :  { %v2547_v15 = vadd.f32 %v2546_v30, %v2534_v32 }
 0x635   :  { %v2522_v59 = vpop.f32.mrf.mxu1 }
 0x636   :  { %v2606_v7 = vmul.f32 0.5, %v2547_v15 }
 0x638   :  { %3960 = vtanh.f32 %v2606_v7  ;;  %v3959_v41 = vpop.eup %3958 }
 0x639   :  { %v2604_v23 = vmul.f32 0.5, %v3959_v41 }
 0x63b   :  { %v2548_v25 = vpop.f32.mrf.mxu3  ;;  %v2605_v5 = vadd.f32 0.5, %v2604_v23 }
 0x63d   :  { %v2572_v0 = vpop.f32.mrf.mxu1 }
 0x63e   :  { %v3961_v62 = vpop.eup %3960  ;;  %v2573_v3 = vadd.f32 %v2572_v0, %v2560_v40 }
 0x63f   :  { %v2608_v2 = vmul.f32 0.5, %v3961_v62 }
 0x640   :  { %3962 = vtanh.f32 %v2573_v3 }
 0x641   :  { %v2609_v63 = vadd.f32 0.5, %v2608_v2 }
 0x643   :  { %v2598_v29 = vpop.f32.mrf.mxu3  ;;  %v2615_v31 = vmul.f32 %v2609_v63, %v6191_v4 }
 0x644   :  { %v2599_v28 = vadd.f32 %v2598_v29, %v2586_v21 }
 0x645   :  { %v2574_v37 = vpop.f32.mrf.mxu1 }
 0x646   :  { %v3963_v26 = vpop.eup %3962  ;;  %v2611_v49 = vmul.f32 0.5, %v2599_v28 }
 0x647   :  { %v2616_v48 = vmul.f32 %v3963_v26, %v2605_v5 }
 0x648   :  { %3964 = vtanh.f32 %v2611_v49 }
 0x649   :  { %v2617_v1 = vadd.f32 %v2616_v48, %v2615_v31 }
 0x64b   :  { %3966 = vtanh.f32 %v2617_v1  ;;  %v2600_v42 = vpop.f32.mrf.mxu3 }
 0x64d   :  { %v2873_v18 = vpop.f32.mrf.mxu1 }
 0x64e   :  { %v3965_v17 = vpop.eup %3964  ;;  %v2874_v34 = vadd.f32 %v2873_v18, %v6368_v8 }
 0x64f   :  { %v2613_v61 = vmul.f32 0.5, %v3965_v17 }
 0x650   :  { %2952 = vst [vmem:[%s6462_s8 + $0x8] sm:$0xff] %v2874_v34 }
 0x651   :  { %v3967_v4 = vpop.eup %3966  ;;  %v2614_v46 = vadd.f32 0.5, %v2613_v61 }
 0x653   :  { %v2619_v24 = vmul.f32 %v3967_v4, %v2614_v46  ;;  %v2931_v47 = vpop.f32.mrf.mxu3 }
 0x654   :  { %v2932_v52 = vadd.f32 %v2931_v47, %v6375_v20 }
 0x655   :  { %v2875_v16 = vpop.f32.mrf.mxu1  ;;  %v2632_v39 = vpack.c.bf16 %v2619_v24, %v6206_v57 }
 0x656   :  { %2954 = vst [vmem:[%s6462_s8 + $0x18] sm:$0xff] %v2932_v52  ;;  %v2876_v9 = vadd.f32 %v2875_v16, %v6368_v8 }
 0x657   :  { %2858 = vmatmul.bf16.gmra.mxu0 %v2632_v39  ;;  %2887 = vmatmul.bf16.gmra.mxu1 %v2632_v39 }
 0x658   :  { %2956 = vst [vmem:[%s6462_s8 + $0x28] sm:$0xff] %v2876_v9  ;;  %2916 = vmatmul.bf16.gmra.mxu2 %v2632_v39  ;;  %2945 = vmatmul.bf16.gmra.mxu3 %v2632_v39 }
 0x65b   :  { %v2933_v13 = vpop.f32.mrf.mxu3 }
 0x65c   :  { %v2934_v14 = vadd.f32 %v2933_v13, %v6375_v20 }
 0x65d   :  { %v2878_v11 = vpop.f32.mrf.mxu1 }
 0x65e   :  { %2958 = vst [vmem:[%s6462_s8 + $0x38] sm:$0xff] %v2934_v14  ;;  %v2879_v57 = vadd.f32 %v2878_v11, %v6368_v8 }
 0x660   :  { %2960 = vst [vmem:[%s6462_s8 + $0x48] sm:$0xff] %v2879_v57 }
 0x663   :  { %v2936_v12 = vpop.f32.mrf.mxu3 }
 0x664   :  { %v2937_v53 = vadd.f32 %v2936_v12, %v6375_v20 }
 0x665   :  { %v2880_v27 = vpop.f32.mrf.mxu1 }
 0x666   :  { %2962 = vst [vmem:[%s6462_s8 + $0x58] sm:$0xff] %v2937_v53  ;;  %v2881_v50 = vadd.f32 %v2880_v27, %v6368_v8 }
 0x668   :  { %2964 = vst [vmem:[%s6462_s8 + $0x68] sm:$0xff] %v2881_v50 }
 0x66b   :  { %v2938_v19 = vpop.f32.mrf.mxu3 }
 0x66c   :  { %v2939_v54 = vadd.f32 %v2938_v19, %v6375_v20 }
 0x66d   :  { %v2883_v35 = vpop.f32.mrf.mxu1 }
 0x66e   :  { %2966 = vst [vmem:[%s6462_s8 + $0x78] sm:$0xff] %v2939_v54  ;;  %v2884_v51 = vadd.f32 %v2883_v35, %v6368_v8 }
 0x670   :  { %2968 = vst [vmem:[%s6462_s8 + $0x88] sm:$0xff] %v2884_v51 }
 0x673   :  { %v2941_v36 = vpop.f32.mrf.mxu3 }
 0x674   :  { %v2942_v43 = vadd.f32 %v2941_v36, %v6375_v20 }
 0x675   :  { %v2885_v10 = vpop.f32.mrf.mxu1 }
 0x676   :  { %2970 = vst [vmem:[%s6462_s8 + $0x98] sm:$0xff] %v2942_v43  ;;  %v2886_v45 = vadd.f32 %v2885_v10, %v6368_v8 }
 0x678   :  { %2972 = vst [vmem:[%s6462_s8 + $0xa8] sm:$0xff] %v2886_v45 }
 0x67b   :  { %v2943_v6 = vpop.f32.mrf.mxu3 }
 0x67c   :  { %v2944_v44 = vadd.f32 %v2943_v6, %v6375_v20 }
 0x67e   :  { %2974 = vst [vmem:[%s6462_s8 + $0xb8] sm:$0xff] %v2944_v44 }
 0x6d4   :  { %v2859_v55 = vpop.f32.mrf.mxu0  ;;  %v2888_v38 = vpop.f32.mrf.mxu1 }
 0x6d5   :  { %v2860_v58 = vadd.f32 %v2859_v55, %v6306_v22  ;;  %v2889_v56 = vadd.f32 %v2888_v38, %v6368_v8 }
 0x6d7   :  { %2975 = vst [vmem:[%s6462_s8 + $0xc0] sm:$0xff] %v2860_v58 }
 0x6d8   :  { %2976 = vst [vmem:[%s6462_s8 + $0xc8] sm:$0xff] %v2889_v56 }
 0x6db   :  { %v2917_v32 = vpop.f32.mrf.mxu2  ;;  %v2946_v33 = vpop.f32.mrf.mxu3 }
 0x6dc   :  { %v2918_v30 = vadd.f32 %v2917_v32, %v6315_v60  ;;  %v2947_v15 = vadd.f32 %v2946_v33, %v6375_v20  ;;  %v2861_v59 = vpop.f32.mrf.mxu0  ;;  %v2890_v7 = vpop.f32.mrf.mxu1 }
 0x6dd   :  { %v2862_v25 = vadd.f32 %v2861_v59, %v6306_v22  ;;  %v2891_v40 = vadd.f32 %v2890_v7, %v6368_v8 }
 0x6de   :  { %2977 = vst [vmem:[%s6462_s8 + $0xd0] sm:$0xff] %v2918_v30 }
 0x6df   :  { %2978 = vst [vmem:[%s6462_s8 + $0xd8] sm:$0xff] %v2947_v15 }
 0x6e0   :  { %2979 = vst [vmem:[%s6462_s8 + $0xe0] sm:$0xff] %v2862_v25 }
 0x6e1   :  { %2980 = vst [vmem:[%s6462_s8 + $0xe8] sm:$0xff] %v2891_v40 }
 0x6e3   :  { %v2919_v41 = vpop.f32.mrf.mxu2  ;;  %v2948_v22 = vpop.f32.mrf.mxu3 }
 0x6e4   :  { %v2920_v0 = vadd.f32 %v2919_v41, %v6315_v60  ;;  %v2949_v62 = vadd.f32 %v2948_v22, %v6375_v20 }
 0x6e6   :  { %2981 = vst [vmem:[%s6462_s8 + $0xf0] sm:$0xff] %v2920_v0 }
 0x6e7   :  { %2982 = vst [vmem:[%s6462_s8 + $0xf8] sm:$0xff] %v2949_v62 }

</bundles_post_ra>
